<compile_context>
chip_gen: v7x
topology: tpu7x:2x2x1
jax: 0.10.0
libtpu: 0.0.40
codegen_flags: <defaults>
</compile_context>

<pallas_src>
import functools

import jax
import jax.numpy as jnp
from jax.experimental import pallas as pl
from jax.experimental.pallas import tpu as pltpu


# ---------------------------------------------------------------------------
# Fused forward kernel.
# Row layouts:
#   * conv rows are position-major, frames time-major: row = l * N + (t*B + b)
#     with N = B*T frames; the 3-tap unfold is then a contiguous row shift.
#   * LSTM / head rows are time-major: row = t*B + b.
# ---------------------------------------------------------------------------
def _event_detector_kernel(x_ref, w1_ref, b1_ref, w2_ref, b2_ref, wsp_ref, bsp_ref,
                           wih1_ref, whh1_ref, bl1_ref, wih2_ref, whh2_ref, bl2_ref,
                           wf1_ref, bf1_ref, wf2_ref, bf2_ref, o_ref,
                           *, n_frames, l_out, seq_len, batch, hidden):
    f32, bf16 = jnp.float32, jnp.bfloat16
    nf = n_frames
    rv = l_out * nf                        # valid conv-output rows (= L * N)
    H = hidden

    # ---------------- conv stack ----------------
    # conv1 + ReLU: single K=6 matmul (3 taps * 2 channels merged along lanes).
    h1 = jnp.maximum(
        jnp.dot(x_ref[...].astype(bf16), w1_ref[...], preferred_element_type=f32)
        + b1_ref[...], 0.0)                                            # (rv, 16)

    # conv2 + ReLU: zero pad rows (positions -1 and L) as a value-level row concat,
    # then a single K=48 matmul (3 taps * 16 channels merged along lanes).
    c1 = h1.shape[1]
    zpad = jnp.zeros((nf, c1), f32)
    h1p = jnp.concatenate([zpad, h1, zpad], axis=0)                    # ((L+2)*N, 16)
    lhs2 = jnp.concatenate(
        [h1p[0:rv], h1p[nf:nf + rv], h1p[2 * nf:2 * nf + rv]], axis=1).astype(bf16)
    h2 = jnp.maximum(
        jnp.dot(lhs2, w2_ref[...], preferred_element_type=f32) + b2_ref[...], 0.0)

    # Flatten (PyTorch (C, L) order folded into wsp) + Linear(32*L, 128) + ReLU:
    # re-lay h2 (position-major rows) as one frame-major (N, 32*L) operand -> one matmul.
    lhsf = jnp.concatenate(
        [h2[l * nf:(l + 1) * nf, :] for l in range(l_out)], axis=1).astype(bf16)
    feat = jnp.maximum(
        jnp.dot(lhsf, wsp_ref[...], preferred_element_type=f32) + bsp_ref[...], 0.0)
    # feat: (T*B, 128), rows time-major.

    # TODO(synk): nn.Dropout(0.5) branch (dropout=True) not implemented; module default
    # (dropout=False) is reproduced here.

    # ---------------- 2-layer bidirectional LSTM ----------------
    # Both directions run in the same unrolled step: gates lanes are
    # [i_f f_f g_f o_f | i_b f_b g_b o_b]; only the two g blocks use tanh.
    lane = jax.lax.broadcasted_iota(jnp.int32, (batch, 8 * H), 1)
    g_mask = ((lane >= 2 * H) & (lane < 3 * H)) | ((lane >= 6 * H) & (lane < 7 * H))

    def bilstm(x_in, wih_ref, whh_ref, b_ref):
        # Hoisted input projection for both directions: (T*B, Din) @ (Din, 8H) + bias.
        gates_x = jnp.dot(x_in.astype(bf16), wih_ref[...],
                          preferred_element_type=f32) + b_ref[...]
        whh = whh_ref[...]                       # (2H, 8H) block-diagonal (fwd | bwd)
        h_cat = jnp.zeros((batch, 2 * H), f32)   # [h_fwd | h_bwd]
        c_f = jnp.zeros((batch, H), f32)
        c_b = jnp.zeros((batch, H), f32)
        out_f = [None] * seq_len
        out_b = [None] * seq_len
        # T=8: fully unrolled recurrence (static indices, no [::-1] reversal anywhere).
        # TODO(synk): for large T switch to lax.fori_loop(..., unroll=2..4) with gates_x
        # staged in VMEM scratch to bound code size / vreg live ranges.
        for s in range(seq_len):
            tf = s                                # forward time index
            tb = seq_len - 1 - s                  # backward time index
            gx = jnp.concatenate(
                [gates_x[tf * batch:(tf + 1) * batch, 0:4 * H],
                 gates_x[tb * batch:(tb + 1) * batch, 4 * H:8 * H]], axis=1)
            g = gx + jnp.dot(h_cat.astype(bf16), whh, preferred_element_type=f32)
            a = jnp.where(g_mask, jnp.tanh(g), jax.nn.sigmoid(g))
            i_f, f_f = a[:, 0:H], a[:, H:2 * H]
            g_f, o_f = a[:, 2 * H:3 * H], a[:, 3 * H:4 * H]
            i_b, f_b = a[:, 4 * H:5 * H], a[:, 5 * H:6 * H]
            g_b, o_b = a[:, 6 * H:7 * H], a[:, 7 * H:8 * H]
            c_f = f_f * c_f + i_f * g_f
            c_b = f_b * c_b + i_b * g_b
            h_f = o_f * jnp.tanh(c_f)
            h_b = o_b * jnp.tanh(c_b)
            h_cat = jnp.concatenate([h_f, h_b], axis=1)
            out_f[tf] = h_f
            out_b[tb] = h_b
        # One lane-dense (T*B, 2H) layer output: fwd lanes 0:H, bwd lanes H:2H.
        return jnp.concatenate(
            [jnp.concatenate([out_f[t], out_b[t]], axis=1) for t in range(seq_len)],
            axis=0)

    h_lstm = bilstm(feat, wih1_ref, whh1_ref, bl1_ref)
    h_lstm = bilstm(h_lstm, wih2_ref, whh2_ref, bl2_ref)

    # ---------------- classifier head ----------------
    hh = jnp.maximum(
        jnp.dot(h_lstm.astype(bf16), wf1_ref[...], preferred_element_type=f32)
        + bf1_ref[...], 0.0)
    y = jnp.dot(hh.astype(bf16), wf2_ref[...], preferred_element_type=f32) + bf2_ref[...]
    o_ref[...] = y.astype(o_ref.dtype)


def pallas_event_detector(lhs1, params, *, n_frames, l_out, seq_len, batch):
    hidden = params["wf2"].shape[0]
    num_classes = params["wf2"].shape[1]
    args = (lhs1,
            params["w1m"], params["b1"], params["w2m"], params["b2"],
            params["wsp"], params["bsp"],
            params["l1_wih"], params["l1_whh"], params["l1_b"],
            params["l2_wih"], params["l2_whh"], params["l2_b"],
            params["wf1"], params["bf1"], params["wf2"], params["bf2"])
    kernel = functools.partial(_event_detector_kernel, n_frames=n_frames, l_out=l_out,
                               seq_len=seq_len, batch=batch, hidden=hidden)
    # One grid step: total working set (inputs + weights + intermediates) is < 0.5 MiB,
    # far below any generation's VMEM; no tiling / pipelining needed.
    return pl.pallas_call(
        kernel,
        out_shape=jax.ShapeDtypeStruct((seq_len * batch, num_classes), jnp.float32),
        grid=(1,),
        in_specs=[pl.BlockSpec(a.shape, lambda i: (0, 0)) for a in args],
        out_specs=pl.BlockSpec((seq_len * batch, num_classes), lambda i: (0, 0)),
        compiler_params=pltpu.CompilerParams(dimension_semantics=("arbitrary",)),
    )(*args)


# ---------------------------------------------------------------------------
# Forward pass (only KB-sized input/output layout glue lives outside the kernel).
# ---------------------------------------------------------------------------
def event_detector_forward(x, params):
    """x: (B, T, 2, 17) float32 -> (B, T, num_classes)."""
    bsz, seq, cin, length = x.shape
    n_frames = bsz * seq

    # (B,T,C,L) -> padded-position-major rows p*N + (t*B + b), lanes = channels.
    x_pm = jnp.pad(jnp.transpose(x.astype(jnp.float32), (3, 1, 0, 2)),
                   ((1, 1), (0, 0), (0, 0), (0, 0))).reshape((length + 2) * n_frames, cin)
    # 3-tap unfold for conv1 merged along lanes: (L*N, 3*C), lane = tap*C + channel.
    rv = length * n_frames
    lhs1 = jnp.concatenate([x_pm[0:rv], x_pm[n_frames:n_frames + rv],
                            x_pm[2 * n_frames:2 * n_frames + rv]], axis=1)

    y = pallas_event_detector(lhs1, params, n_frames=n_frames, l_out=length,
                              seq_len=seq, batch=bsz)                   # (T*B, nc)
    return y.reshape(seq, bsz, -1).transpose(1, 0, 2)                   # (B, T, nc)


# ---------------------------------------------------------------------------
# Deterministic synthetic parameters (PyTorch layouts -> matmul-ready layouts).
# Matmul weights are stored bf16 (single MXU pass); biases stay f32.
# ---------------------------------------------------------------------------
def init_params(key, hidden_dim, num_classes, length=17):
    hd = hidden_dim
    keys = iter(jax.random.split(key, 64))

    def nrm(shape, scale=0.1):
        return scale * jax.random.normal(next(keys), shape, dtype=jnp.float32)

    p = {}
    # Conv1d(2, 16, 3): PyTorch (16, 2, 3) -> merged-tap (6, 16), row = tap*2 + cin
    w1 = nrm((16, 2, 3))
    p["w1m"] = jnp.transpose(w1, (2, 1, 0)).reshape(6, 16).astype(jnp.bfloat16)
    p["b1"] = nrm((16,)).reshape(1, 16)
    # Conv1d(16, 32, 3): (32, 16, 3) -> (48, 32), row = tap*16 + cin
    w2 = nrm((32, 16, 3))
    p["w2m"] = jnp.transpose(w2, (2, 1, 0)).reshape(48, 32).astype(jnp.bfloat16)
    p["b2"] = nrm((32,)).reshape(1, 32)
    # Linear(32*17, 128): (128, 544) -> (544, 128) with row = l*32 + c
    # (folds the PyTorch (C, L) Flatten order into the weight).
    w_sp = nrm((128, 32 * length))
    p["wsp"] = jnp.transpose(w_sp.reshape(128, 32, length), (2, 1, 0)) \
                  .reshape(32 * length, 128).astype(jnp.bfloat16)
    p["bsp"] = nrm((128,)).reshape(1, 128)
    # 2-layer bidirectional LSTM; per layer: W_ih concat along lanes (Din, 8H),
    # W_hh block-diagonal (2H, 8H), fused bias (1, 8H).  Gate order [i, f, g, o].
    for layer in (1, 2):
        din = 128 if layer == 1 else 2 * hd
        wih_dirs, whh_dirs, b_dirs = [], [], []
        for _ in range(2):                                  # fwd, bwd
            w_ih = nrm((4 * hd, din))
            w_hh = nrm((4 * hd, hd))
            b_ih = nrm((4 * hd,))
            b_hh = nrm((4 * hd,))
            wih_dirs.append(w_ih.T)                          # (din, 4H)
            whh_dirs.append(w_hh.T)                          # (H, 4H)
            b_dirs.append((b_ih + b_hh).reshape(1, 4 * hd))
        p[f"l{layer}_wih"] = jnp.concatenate(wih_dirs, axis=1).astype(jnp.bfloat16)
        z = jnp.zeros((hd, 4 * hd), jnp.float32)
        whh_blk = jnp.concatenate(
            [jnp.concatenate([whh_dirs[0], z], axis=1),
             jnp.concatenate([z, whh_dirs[1]], axis=1)], axis=0)       # (2H, 8H)
        p[f"l{layer}_whh"] = whh_blk.astype(jnp.bfloat16)
        p[f"l{layer}_b"] = jnp.concatenate(b_dirs, axis=1)             # (1, 8H)
    # fc_layers: Linear(2H, H) + ReLU, Linear(H, num_classes)
    p["wf1"] = nrm((hd, 2 * hd)).T.astype(jnp.bfloat16)                # (2H, H)
    p["bf1"] = nrm((hd,)).reshape(1, hd)
    p["wf2"] = nrm((num_classes, hd)).T.astype(jnp.bfloat16)           # (H, nc)
    p["bf2"] = nrm((num_classes,)).reshape(1, num_classes)
    return p


if __name__ == "__main__":
    B, T, C, L = 2, 8, 2, 17               # L = 17 forced by Linear(32*17, 128)
    hidden_dim, num_classes = 32, 9

    key = jax.random.PRNGKey(0)
    kx, kp = jax.random.split(key)
    x = jax.random.normal(kx, (B, T, C, L), dtype=jnp.float32)
    params = init_params(kp, hidden_dim, num_classes, length=L)

    fwd = jax.jit(lambda xx: event_detector_forward(xx, params))
    out = jax.block_until_ready(fwd(x))

    assert out.shape == (B, T, num_classes), out.shape
    assert bool(jnp.all(jnp.isfinite(out)))
    print("KERNEL_OK")
</pallas_src>

<mosaic_0001>
module attributes {stable_mosaic.version = 11 : i64} {
  func.func @_event_detector_kernel(%arg0: i32, %arg1: memref<272x6xf32, #tpu.memory_space<vmem>>, %arg2: memref<6x16xbf16, #tpu.memory_space<vmem>>, %arg3: memref<1x16xf32, #tpu.memory_space<vmem>>, %arg4: memref<48x32xbf16, #tpu.memory_space<vmem>>, %arg5: memref<1x32xf32, #tpu.memory_space<vmem>>, %arg6: memref<544x128xbf16, #tpu.memory_space<vmem>>, %arg7: memref<1x128xf32, #tpu.memory_space<vmem>>, %arg8: memref<128x256xbf16, #tpu.memory_space<vmem>>, %arg9: memref<64x256xbf16, #tpu.memory_space<vmem>>, %arg10: memref<1x256xf32, #tpu.memory_space<vmem>>, %arg11: memref<64x256xbf16, #tpu.memory_space<vmem>>, %arg12: memref<64x256xbf16, #tpu.memory_space<vmem>>, %arg13: memref<1x256xf32, #tpu.memory_space<vmem>>, %arg14: memref<64x32xbf16, #tpu.memory_space<vmem>>, %arg15: memref<1x32xf32, #tpu.memory_space<vmem>>, %arg16: memref<32x9xbf16, #tpu.memory_space<vmem>>, %arg17: memref<1x9xf32, #tpu.memory_space<vmem>>, %arg18: memref<16x9xf32, #tpu.memory_space<vmem>>) attributes {dimension_semantics = [#tpu.dimension_semantics<arbitrary>], iteration_bounds = array<i64: 1>, scalar_prefetch = 0 : i64, scratch_operands = 0 : i64, tpu.core_type = #tpu.core_type<tc>, window_params = [{pipeline_mode = #tpu.pipeline_mode<synchronous>, transform_indices = @transform_0, window_bounds = array<i64: 272, 6>}, {pipeline_mode = #tpu.pipeline_mode<synchronous>, transform_indices = @transform_1, window_bounds = array<i64: 6, 16>}, {pipeline_mode = #tpu.pipeline_mode<synchronous>, transform_indices = @transform_2, window_bounds = array<i64: 1, 16>}, {pipeline_mode = #tpu.pipeline_mode<synchronous>, transform_indices = @transform_3, window_bounds = array<i64: 48, 32>}, {pipeline_mode = #tpu.pipeline_mode<synchronous>, transform_indices = @transform_4, window_bounds = array<i64: 1, 32>}, {pipeline_mode = #tpu.pipeline_mode<synchronous>, transform_indices = @transform_5, window_bounds = array<i64: 544, 128>}, {pipeline_mode = #tpu.pipeline_mode<synchronous>, transform_indices = @transform_6, window_bounds = array<i64: 1, 128>}, {pipeline_mode = #tpu.pipeline_mode<synchronous>, transform_indices = @transform_7, window_bounds = array<i64: 128, 256>}, {pipeline_mode = #tpu.pipeline_mode<synchronous>, transform_indices = @transform_8, window_bounds = array<i64: 64, 256>}, {pipeline_mode = #tpu.pipeline_mode<synchronous>, transform_indices = @transform_9, window_bounds = array<i64: 1, 256>}, {pipeline_mode = #tpu.pipeline_mode<synchronous>, transform_indices = @transform_10, window_bounds = array<i64: 64, 256>}, {pipeline_mode = #tpu.pipeline_mode<synchronous>, transform_indices = @transform_11, window_bounds = array<i64: 64, 256>}, {pipeline_mode = #tpu.pipeline_mode<synchronous>, transform_indices = @transform_12, window_bounds = array<i64: 1, 256>}, {pipeline_mode = #tpu.pipeline_mode<synchronous>, transform_indices = @transform_13, window_bounds = array<i64: 64, 32>}, {pipeline_mode = #tpu.pipeline_mode<synchronous>, transform_indices = @transform_14, window_bounds = array<i64: 1, 32>}, {pipeline_mode = #tpu.pipeline_mode<synchronous>, transform_indices = @transform_15, window_bounds = array<i64: 32, 9>}, {pipeline_mode = #tpu.pipeline_mode<synchronous>, transform_indices = @transform_16, window_bounds = array<i64: 1, 9>}, {pipeline_mode = #tpu.pipeline_mode<synchronous>, transform_indices = @transform_17, window_bounds = array<i64: 16, 9>}]} {
    %c0 = arith.constant 0 : index
    %c0_0 = arith.constant 0 : index
    %0 = vector.load %arg1[%c0, %c0_0] : memref<272x6xf32, #tpu.memory_space<vmem>>, vector<272x6xf32>
    %1 = arith.truncf %0 : vector<272x6xf32> to vector<272x6xbf16>
    %c0_1 = arith.constant 0 : index
    %c0_2 = arith.constant 0 : index
    %2 = vector.load %arg2[%c0_1, %c0_2] : memref<6x16xbf16, #tpu.memory_space<vmem>>, vector<6x16xbf16>
    %cst = arith.constant dense<0.000000e+00> : vector<272x16xf32>
    %3 = tpu.matmul %1, %2, %cst {dimension_numbers = #tpu.dot_dimension_numbers<[1], [0], [0], [1], [0, 0, 1, 1], [], []>} : vector<272x6xbf16>, vector<6x16xbf16>, vector<272x16xf32> -> vector<272x16xf32>
    %c0_3 = arith.constant 0 : index
    %c0_4 = arith.constant 0 : index
    %4 = vector.load %arg3[%c0_3, %c0_4] : memref<1x16xf32, #tpu.memory_space<vmem>>, vector<1x16xf32>
    %5 = vector.broadcast %4 : vector<1x16xf32> to vector<272x16xf32>
    %6 = arith.addf %3, %5 : vector<272x16xf32>
    %cst_5 = arith.constant 0.000000e+00 : f32
    %7 = vector.broadcast %cst_5 : f32 to vector<272x16xf32>
    %8 = arith.maximumf %6, %7 : vector<272x16xf32>
    %cst_6 = arith.constant 0.000000e+00 : f32
    %9 = vector.broadcast %cst_6 : f32 to vector<16x16xf32>
    %10 = tpu.concatenate %9, %8, %9 in 0 : vector<16x16xf32>, vector<272x16xf32>, vector<16x16xf32> -> vector<304x16xf32>
    %11 = vector.extract_strided_slice %10 {offsets = [0, 0], sizes = [272, 16], strides = [1, 1]} : vector<304x16xf32> to vector<272x16xf32>
    %12 = vector.extract_strided_slice %10 {offsets = [16, 0], sizes = [272, 16], strides = [1, 1]} : vector<304x16xf32> to vector<272x16xf32>
    %13 = vector.extract_strided_slice %10 {offsets = [32, 0], sizes = [272, 16], strides = [1, 1]} : vector<304x16xf32> to vector<272x16xf32>
    %14 = tpu.concatenate %11, %12, %13 in 1 : vector<272x16xf32>, vector<272x16xf32>, vector<272x16xf32> -> vector<272x48xf32>
    %15 = arith.truncf %14 : vector<272x48xf32> to vector<272x48xbf16>
    %c0_7 = arith.constant 0 : index
    %c0_8 = arith.constant 0 : index
    %16 = vector.load %arg4[%c0_7, %c0_8] : memref<48x32xbf16, #tpu.memory_space<vmem>>, vector<48x32xbf16>
    %cst_9 = arith.constant dense<0.000000e+00> : vector<272x32xf32>
    %17 = tpu.matmul %15, %16, %cst_9 {dimension_numbers = #tpu.dot_dimension_numbers<[1], [0], [0], [1], [0, 0, 1, 1], [], []>} : vector<272x48xbf16>, vector<48x32xbf16>, vector<272x32xf32> -> vector<272x32xf32>
    %c0_10 = arith.constant 0 : index
    %c0_11 = arith.constant 0 : index
    %18 = vector.load %arg5[%c0_10, %c0_11] : memref<1x32xf32, #tpu.memory_space<vmem>>, vector<1x32xf32>
    %19 = vector.broadcast %18 : vector<1x32xf32> to vector<272x32xf32>
    %20 = arith.addf %17, %19 : vector<272x32xf32>
    %cst_12 = arith.constant 0.000000e+00 : f32
    %21 = vector.broadcast %cst_12 : f32 to vector<272x32xf32>
    %22 = arith.maximumf %20, %21 : vector<272x32xf32>
    %23 = vector.extract_strided_slice %22 {offsets = [0, 0], sizes = [16, 32], strides = [1, 1]} : vector<272x32xf32> to vector<16x32xf32>
    %24 = vector.extract_strided_slice %22 {offsets = [16, 0], sizes = [16, 32], strides = [1, 1]} : vector<272x32xf32> to vector<16x32xf32>
    %25 = vector.extract_strided_slice %22 {offsets = [32, 0], sizes = [16, 32], strides = [1, 1]} : vector<272x32xf32> to vector<16x32xf32>
    %26 = vector.extract_strided_slice %22 {offsets = [48, 0], sizes = [16, 32], strides = [1, 1]} : vector<272x32xf32> to vector<16x32xf32>
    %27 = vector.extract_strided_slice %22 {offsets = [64, 0], sizes = [16, 32], strides = [1, 1]} : vector<272x32xf32> to vector<16x32xf32>
    %28 = vector.extract_strided_slice %22 {offsets = [80, 0], sizes = [16, 32], strides = [1, 1]} : vector<272x32xf32> to vector<16x32xf32>
    %29 = vector.extract_strided_slice %22 {offsets = [96, 0], sizes = [16, 32], strides = [1, 1]} : vector<272x32xf32> to vector<16x32xf32>
    %30 = vector.extract_strided_slice %22 {offsets = [112, 0], sizes = [16, 32], strides = [1, 1]} : vector<272x32xf32> to vector<16x32xf32>
    %31 = vector.extract_strided_slice %22 {offsets = [128, 0], sizes = [16, 32], strides = [1, 1]} : vector<272x32xf32> to vector<16x32xf32>
    %32 = vector.extract_strided_slice %22 {offsets = [144, 0], sizes = [16, 32], strides = [1, 1]} : vector<272x32xf32> to vector<16x32xf32>
    %33 = vector.extract_strided_slice %22 {offsets = [160, 0], sizes = [16, 32], strides = [1, 1]} : vector<272x32xf32> to vector<16x32xf32>
    %34 = vector.extract_strided_slice %22 {offsets = [176, 0], sizes = [16, 32], strides = [1, 1]} : vector<272x32xf32> to vector<16x32xf32>
    %35 = vector.extract_strided_slice %22 {offsets = [192, 0], sizes = [16, 32], strides = [1, 1]} : vector<272x32xf32> to vector<16x32xf32>
    %36 = vector.extract_strided_slice %22 {offsets = [208, 0], sizes = [16, 32], strides = [1, 1]} : vector<272x32xf32> to vector<16x32xf32>
    %37 = vector.extract_strided_slice %22 {offsets = [224, 0], sizes = [16, 32], strides = [1, 1]} : vector<272x32xf32> to vector<16x32xf32>
    %38 = vector.extract_strided_slice %22 {offsets = [240, 0], sizes = [16, 32], strides = [1, 1]} : vector<272x32xf32> to vector<16x32xf32>
    %39 = vector.extract_strided_slice %22 {offsets = [256, 0], sizes = [16, 32], strides = [1, 1]} : vector<272x32xf32> to vector<16x32xf32>
    %40 = tpu.concatenate %23, %24, %25, %26, %27, %28, %29, %30, %31, %32, %33, %34, %35, %36, %37, %38 in 1 : vector<16x32xf32>, vector<16x32xf32>, vector<16x32xf32>, vector<16x32xf32>, vector<16x32xf32>, vector<16x32xf32>, vector<16x32xf32>, vector<16x32xf32>, vector<16x32xf32>, vector<16x32xf32>, vector<16x32xf32>, vector<16x32xf32>, vector<16x32xf32>, vector<16x32xf32>, vector<16x32xf32>, vector<16x32xf32> -> vector<16x512xf32>
    %41 = tpu.concatenate %40, %39 in 1 : vector<16x512xf32>, vector<16x32xf32> -> vector<16x544xf32>
    %42 = arith.truncf %41 : vector<16x544xf32> to vector<16x544xbf16>
    %c0_13 = arith.constant 0 : index
    %c0_14 = arith.constant 0 : index
    %43 = vector.load %arg6[%c0_13, %c0_14] : memref<544x128xbf16, #tpu.memory_space<vmem>>, vector<544x128xbf16>
    %cst_15 = arith.constant dense<0.000000e+00> : vector<16x128xf32>
    %44 = tpu.matmul %42, %43, %cst_15 {dimension_numbers = #tpu.dot_dimension_numbers<[1], [0], [0], [1], [0, 0, 1, 1], [], []>} : vector<16x544xbf16>, vector<544x128xbf16>, vector<16x128xf32> -> vector<16x128xf32>
    %c0_16 = arith.constant 0 : index
    %c0_17 = arith.constant 0 : index
    %45 = vector.load %arg7[%c0_16, %c0_17] : memref<1x128xf32, #tpu.memory_space<vmem>>, vector<1x128xf32>
    %46 = vector.broadcast %45 : vector<1x128xf32> to vector<16x128xf32>
    %47 = arith.addf %44, %46 : vector<16x128xf32>
    %cst_18 = arith.constant 0.000000e+00 : f32
    %48 = vector.broadcast %cst_18 : f32 to vector<16x128xf32>
    %49 = arith.maximumf %47, %48 : vector<16x128xf32>
    %50 = tpu.iota {dimensions = array<i32: 1>} : vector<2x256xi32>
    %c64_i32 = arith.constant 64 : i32
    %51 = vector.broadcast %c64_i32 : i32 to vector<2x256xi32>
    %52 = arith.cmpi sge, %50, %51 : vector<2x256xi32>
    %c96_i32 = arith.constant 96 : i32
    %53 = vector.broadcast %c96_i32 : i32 to vector<2x256xi32>
    %54 = arith.cmpi slt, %50, %53 : vector<2x256xi32>
    %55 = arith.andi %52, %54 : vector<2x256xi1>
    %c192_i32 = arith.constant 192 : i32
    %56 = vector.broadcast %c192_i32 : i32 to vector<2x256xi32>
    %57 = arith.cmpi sge, %50, %56 : vector<2x256xi32>
    %c224_i32 = arith.constant 224 : i32
    %58 = vector.broadcast %c224_i32 : i32 to vector<2x256xi32>
    %59 = arith.cmpi slt, %50, %58 : vector<2x256xi32>
    %60 = arith.andi %57, %59 : vector<2x256xi1>
    %61 = arith.ori %55, %60 : vector<2x256xi1>
    %62 = arith.truncf %49 : vector<16x128xf32> to vector<16x128xbf16>
    %c0_19 = arith.constant 0 : index
    %c0_20 = arith.constant 0 : index
    %63 = vector.load %arg8[%c0_19, %c0_20] : memref<128x256xbf16, #tpu.memory_space<vmem>>, vector<128x256xbf16>
    %cst_21 = arith.constant dense<0.000000e+00> : vector<16x256xf32>
    %64 = tpu.matmul %62, %63, %cst_21 {dimension_numbers = #tpu.dot_dimension_numbers<[1], [0], [0], [1], [0, 0, 1, 1], [], []>} : vector<16x128xbf16>, vector<128x256xbf16>, vector<16x256xf32> -> vector<16x256xf32>
    %c0_22 = arith.constant 0 : index
    %c0_23 = arith.constant 0 : index
    %65 = vector.load %arg10[%c0_22, %c0_23] : memref<1x256xf32, #tpu.memory_space<vmem>>, vector<1x256xf32>
    %66 = vector.broadcast %65 : vector<1x256xf32> to vector<16x256xf32>
    %67 = arith.addf %64, %66 : vector<16x256xf32>
    %c0_24 = arith.constant 0 : index
    %c0_25 = arith.constant 0 : index
    %68 = vector.load %arg9[%c0_24, %c0_25] : memref<64x256xbf16, #tpu.memory_space<vmem>>, vector<64x256xbf16>
    %cst_26 = arith.constant 0.000000e+00 : f32
    %69 = vector.broadcast %cst_26 : f32 to vector<2x64xf32>
    %cst_27 = arith.constant 0.000000e+00 : f32
    %70 = vector.broadcast %cst_27 : f32 to vector<2x32xf32>
    %cst_28 = arith.constant 0.000000e+00 : f32
    %71 = vector.broadcast %cst_28 : f32 to vector<2x32xf32>
    %72 = vector.extract_strided_slice %67 {offsets = [0, 0], sizes = [2, 128], strides = [1, 1]} : vector<16x256xf32> to vector<2x128xf32>
    %73 = vector.extract_strided_slice %67 {offsets = [14, 128], sizes = [2, 128], strides = [1, 1]} : vector<16x256xf32> to vector<2x128xf32>
    %74 = tpu.concatenate %72, %73 in 1 : vector<2x128xf32>, vector<2x128xf32> -> vector<2x256xf32>
    %75 = arith.truncf %69 : vector<2x64xf32> to vector<2x64xbf16>
    %cst_29 = arith.constant dense<0.000000e+00> : vector<2x256xf32>
    %76 = tpu.matmul %75, %68, %cst_29 {dimension_numbers = #tpu.dot_dimension_numbers<[1], [0], [0], [1], [0, 0, 1, 1], [], []>} : vector<2x64xbf16>, vector<64x256xbf16>, vector<2x256xf32> -> vector<2x256xf32>
    %77 = arith.addf %74, %76 : vector<2x256xf32>
    %78 = math.tanh %77 : vector<2x256xf32>
    %79 = arith.negf %77 : vector<2x256xf32>
    %80 = math.exp %79 : vector<2x256xf32>
    %cst_30 = arith.constant 1.000000e+00 : f32
    %81 = vector.broadcast %cst_30 : f32 to vector<2x256xf32>
    %82 = arith.addf %81, %80 : vector<2x256xf32>
    %83 = arith.divf %81, %82 : vector<2x256xf32>
    %84 = arith.select %61, %78, %83 : vector<2x256xi1>, vector<2x256xf32>
    %85 = vector.extract_strided_slice %84 {offsets = [0, 0], sizes = [2, 32], strides = [1, 1]} : vector<2x256xf32> to vector<2x32xf32>
    %86 = vector.extract_strided_slice %84 {offsets = [0, 32], sizes = [2, 32], strides = [1, 1]} : vector<2x256xf32> to vector<2x32xf32>
    %87 = vector.extract_strided_slice %84 {offsets = [0, 64], sizes = [2, 32], strides = [1, 1]} : vector<2x256xf32> to vector<2x32xf32>
    %88 = vector.extract_strided_slice %84 {offsets = [0, 96], sizes = [2, 32], strides = [1, 1]} : vector<2x256xf32> to vector<2x32xf32>
    %89 = vector.extract_strided_slice %84 {offsets = [0, 128], sizes = [2, 32], strides = [1, 1]} : vector<2x256xf32> to vector<2x32xf32>
    %90 = vector.extract_strided_slice %84 {offsets = [0, 160], sizes = [2, 32], strides = [1, 1]} : vector<2x256xf32> to vector<2x32xf32>
    %91 = vector.extract_strided_slice %84 {offsets = [0, 192], sizes = [2, 32], strides = [1, 1]} : vector<2x256xf32> to vector<2x32xf32>
    %92 = vector.extract_strided_slice %84 {offsets = [0, 224], sizes = [2, 32], strides = [1, 1]} : vector<2x256xf32> to vector<2x32xf32>
    %93 = arith.mulf %86, %70 : vector<2x32xf32>
    %94 = arith.mulf %85, %87 : vector<2x32xf32>
    %95 = arith.addf %93, %94 : vector<2x32xf32>
    %96 = arith.mulf %90, %71 : vector<2x32xf32>
    %97 = arith.mulf %89, %91 : vector<2x32xf32>
    %98 = arith.addf %96, %97 : vector<2x32xf32>
    %99 = math.tanh %95 : vector<2x32xf32>
    %100 = arith.mulf %88, %99 : vector<2x32xf32>
    %101 = math.tanh %98 : vector<2x32xf32>
    %102 = arith.mulf %92, %101 : vector<2x32xf32>
    %103 = tpu.concatenate %100, %102 in 1 : vector<2x32xf32>, vector<2x32xf32> -> vector<2x64xf32>
    %104 = vector.extract_strided_slice %67 {offsets = [2, 0], sizes = [2, 128], strides = [1, 1]} : vector<16x256xf32> to vector<2x128xf32>
    %105 = vector.extract_strided_slice %67 {offsets = [12, 128], sizes = [2, 128], strides = [1, 1]} : vector<16x256xf32> to vector<2x128xf32>
    %106 = tpu.concatenate %104, %105 in 1 : vector<2x128xf32>, vector<2x128xf32> -> vector<2x256xf32>
    %107 = arith.truncf %103 : vector<2x64xf32> to vector<2x64xbf16>
    %cst_31 = arith.constant dense<0.000000e+00> : vector<2x256xf32>
    %108 = tpu.matmul %107, %68, %cst_31 {dimension_numbers = #tpu.dot_dimension_numbers<[1], [0], [0], [1], [0, 0, 1, 1], [], []>} : vector<2x64xbf16>, vector<64x256xbf16>, vector<2x256xf32> -> vector<2x256xf32>
    %109 = arith.addf %106, %108 : vector<2x256xf32>
    %110 = math.tanh %109 : vector<2x256xf32>
    %111 = arith.negf %109 : vector<2x256xf32>
    %112 = math.exp %111 : vector<2x256xf32>
    %cst_32 = arith.constant 1.000000e+00 : f32
    %113 = vector.broadcast %cst_32 : f32 to vector<2x256xf32>
    %114 = arith.addf %113, %112 : vector<2x256xf32>
    %115 = arith.divf %113, %114 : vector<2x256xf32>
    %116 = arith.select %61, %110, %115 : vector<2x256xi1>, vector<2x256xf32>
    %117 = vector.extract_strided_slice %116 {offsets = [0, 0], sizes = [2, 32], strides = [1, 1]} : vector<2x256xf32> to vector<2x32xf32>
    %118 = vector.extract_strided_slice %116 {offsets = [0, 32], sizes = [2, 32], strides = [1, 1]} : vector<2x256xf32> to vector<2x32xf32>
    %119 = vector.extract_strided_slice %116 {offsets = [0, 64], sizes = [2, 32], strides = [1, 1]} : vector<2x256xf32> to vector<2x32xf32>
    %120 = vector.extract_strided_slice %116 {offsets = [0, 96], sizes = [2, 32], strides = [1, 1]} : vector<2x256xf32> to vector<2x32xf32>
    %121 = vector.extract_strided_slice %116 {offsets = [0, 128], sizes = [2, 32], strides = [1, 1]} : vector<2x256xf32> to vector<2x32xf32>
    %122 = vector.extract_strided_slice %116 {offsets = [0, 160], sizes = [2, 32], strides = [1, 1]} : vector<2x256xf32> to vector<2x32xf32>
    %123 = vector.extract_strided_slice %116 {offsets = [0, 192], sizes = [2, 32], strides = [1, 1]} : vector<2x256xf32> to vector<2x32xf32>
    %124 = vector.extract_strided_slice %116 {offsets = [0, 224], sizes = [2, 32], strides = [1, 1]} : vector<2x256xf32> to vector<2x32xf32>
    %125 = arith.mulf %118, %95 : vector<2x32xf32>
    %126 = arith.mulf %117, %119 : vector<2x32xf32>
    %127 = arith.addf %125, %126 : vector<2x32xf32>
    %128 = arith.mulf %122, %98 : vector<2x32xf32>
    %129 = arith.mulf %121, %123 : vector<2x32xf32>
    %130 = arith.addf %128, %129 : vector<2x32xf32>
    %131 = math.tanh %127 : vector<2x32xf32>
    %132 = arith.mulf %120, %131 : vector<2x32xf32>
    %133 = math.tanh %130 : vector<2x32xf32>
    %134 = arith.mulf %124, %133 : vector<2x32xf32>
    %135 = tpu.concatenate %132, %134 in 1 : vector<2x32xf32>, vector<2x32xf32> -> vector<2x64xf32>
    %136 = vector.extract_strided_slice %67 {offsets = [4, 0], sizes = [2, 128], strides = [1, 1]} : vector<16x256xf32> to vector<2x128xf32>
    %137 = vector.extract_strided_slice %67 {offsets = [10, 128], sizes = [2, 128], strides = [1, 1]} : vector<16x256xf32> to vector<2x128xf32>
    %138 = tpu.concatenate %136, %137 in 1 : vector<2x128xf32>, vector<2x128xf32> -> vector<2x256xf32>
    %139 = arith.truncf %135 : vector<2x64xf32> to vector<2x64xbf16>
    %cst_33 = arith.constant dense<0.000000e+00> : vector<2x256xf32>
    %140 = tpu.matmul %139, %68, %cst_33 {dimension_numbers = #tpu.dot_dimension_numbers<[1], [0], [0], [1], [0, 0, 1, 1], [], []>} : vector<2x64xbf16>, vector<64x256xbf16>, vector<2x256xf32> -> vector<2x256xf32>
    %141 = arith.addf %138, %140 : vector<2x256xf32>
    %142 = math.tanh %141 : vector<2x256xf32>
    %143 = arith.negf %141 : vector<2x256xf32>
    %144 = math.exp %143 : vector<2x256xf32>
    %cst_34 = arith.constant 1.000000e+00 : f32
    %145 = vector.broadcast %cst_34 : f32 to vector<2x256xf32>
    %146 = arith.addf %145, %144 : vector<2x256xf32>
    %147 = arith.divf %145, %146 : vector<2x256xf32>
    %148 = arith.select %61, %142, %147 : vector<2x256xi1>, vector<2x256xf32>
    %149 = vector.extract_strided_slice %148 {offsets = [0, 0], sizes = [2, 32], strides = [1, 1]} : vector<2x256xf32> to vector<2x32xf32>
    %150 = vector.extract_strided_slice %148 {offsets = [0, 32], sizes = [2, 32], strides = [1, 1]} : vector<2x256xf32> to vector<2x32xf32>
    %151 = vector.extract_strided_slice %148 {offsets = [0, 64], sizes = [2, 32], strides = [1, 1]} : vector<2x256xf32> to vector<2x32xf32>
    %152 = vector.extract_strided_slice %148 {offsets = [0, 96], sizes = [2, 32], strides = [1, 1]} : vector<2x256xf32> to vector<2x32xf32>
    %153 = vector.extract_strided_slice %148 {offsets = [0, 128], sizes = [2, 32], strides = [1, 1]} : vector<2x256xf32> to vector<2x32xf32>
    %154 = vector.extract_strided_slice %148 {offsets = [0, 160], sizes = [2, 32], strides = [1, 1]} : vector<2x256xf32> to vector<2x32xf32>
    %155 = vector.extract_strided_slice %148 {offsets = [0, 192], sizes = [2, 32], strides = [1, 1]} : vector<2x256xf32> to vector<2x32xf32>
    %156 = vector.extract_strided_slice %148 {offsets = [0, 224], sizes = [2, 32], strides = [1, 1]} : vector<2x256xf32> to vector<2x32xf32>
    %157 = arith.mulf %150, %127 : vector<2x32xf32>
    %158 = arith.mulf %149, %151 : vector<2x32xf32>
    %159 = arith.addf %157, %158 : vector<2x32xf32>
    %160 = arith.mulf %154, %130 : vector<2x32xf32>
    %161 = arith.mulf %153, %155 : vector<2x32xf32>
    %162 = arith.addf %160, %161 : vector<2x32xf32>
    %163 = math.tanh %159 : vector<2x32xf32>
    %164 = arith.mulf %152, %163 : vector<2x32xf32>
    %165 = math.tanh %162 : vector<2x32xf32>
    %166 = arith.mulf %156, %165 : vector<2x32xf32>
    %167 = tpu.concatenate %164, %166 in 1 : vector<2x32xf32>, vector<2x32xf32> -> vector<2x64xf32>
    %168 = vector.extract_strided_slice %67 {offsets = [6, 0], sizes = [2, 128], strides = [1, 1]} : vector<16x256xf32> to vector<2x128xf32>
    %169 = vector.extract_strided_slice %67 {offsets = [8, 128], sizes = [2, 128], strides = [1, 1]} : vector<16x256xf32> to vector<2x128xf32>
    %170 = tpu.concatenate %168, %169 in 1 : vector<2x128xf32>, vector<2x128xf32> -> vector<2x256xf32>
    %171 = arith.truncf %167 : vector<2x64xf32> to vector<2x64xbf16>
    %cst_35 = arith.constant dense<0.000000e+00> : vector<2x256xf32>
    %172 = tpu.matmul %171, %68, %cst_35 {dimension_numbers = #tpu.dot_dimension_numbers<[1], [0], [0], [1], [0, 0, 1, 1], [], []>} : vector<2x64xbf16>, vector<64x256xbf16>, vector<2x256xf32> -> vector<2x256xf32>
    %173 = arith.addf %170, %172 : vector<2x256xf32>
    %174 = math.tanh %173 : vector<2x256xf32>
    %175 = arith.negf %173 : vector<2x256xf32>
    %176 = math.exp %175 : vector<2x256xf32>
    %cst_36 = arith.constant 1.000000e+00 : f32
    %177 = vector.broadcast %cst_36 : f32 to vector<2x256xf32>
    %178 = arith.addf %177, %176 : vector<2x256xf32>
    %179 = arith.divf %177, %178 : vector<2x256xf32>
    %180 = arith.select %61, %174, %179 : vector<2x256xi1>, vector<2x256xf32>
    %181 = vector.extract_strided_slice %180 {offsets = [0, 0], sizes = [2, 32], strides = [1, 1]} : vector<2x256xf32> to vector<2x32xf32>
    %182 = vector.extract_strided_slice %180 {offsets = [0, 32], sizes = [2, 32], strides = [1, 1]} : vector<2x256xf32> to vector<2x32xf32>
    %183 = vector.extract_strided_slice %180 {offsets = [0, 64], sizes = [2, 32], strides = [1, 1]} : vector<2x256xf32> to vector<2x32xf32>
    %184 = vector.extract_strided_slice %180 {offsets = [0, 96], sizes = [2, 32], strides = [1, 1]} : vector<2x256xf32> to vector<2x32xf32>
    %185 = vector.extract_strided_slice %180 {offsets = [0, 128], sizes = [2, 32], strides = [1, 1]} : vector<2x256xf32> to vector<2x32xf32>
    %186 = vector.extract_strided_slice %180 {offsets = [0, 160], sizes = [2, 32], strides = [1, 1]} : vector<2x256xf32> to vector<2x32xf32>
    %187 = vector.extract_strided_slice %180 {offsets = [0, 192], sizes = [2, 32], strides = [1, 1]} : vector<2x256xf32> to vector<2x32xf32>
    %188 = vector.extract_strided_slice %180 {offsets = [0, 224], sizes = [2, 32], strides = [1, 1]} : vector<2x256xf32> to vector<2x32xf32>
    %189 = arith.mulf %182, %159 : vector<2x32xf32>
    %190 = arith.mulf %181, %183 : vector<2x32xf32>
    %191 = arith.addf %189, %190 : vector<2x32xf32>
    %192 = arith.mulf %186, %162 : vector<2x32xf32>
    %193 = arith.mulf %185, %187 : vector<2x32xf32>
    %194 = arith.addf %192, %193 : vector<2x32xf32>
    %195 = math.tanh %191 : vector<2x32xf32>
    %196 = arith.mulf %184, %195 : vector<2x32xf32>
    %197 = math.tanh %194 : vector<2x32xf32>
    %198 = arith.mulf %188, %197 : vector<2x32xf32>
    %199 = tpu.concatenate %196, %198 in 1 : vector<2x32xf32>, vector<2x32xf32> -> vector<2x64xf32>
    %200 = vector.extract_strided_slice %67 {offsets = [8, 0], sizes = [2, 128], strides = [1, 1]} : vector<16x256xf32> to vector<2x128xf32>
    %201 = vector.extract_strided_slice %67 {offsets = [6, 128], sizes = [2, 128], strides = [1, 1]} : vector<16x256xf32> to vector<2x128xf32>
    %202 = tpu.concatenate %200, %201 in 1 : vector<2x128xf32>, vector<2x128xf32> -> vector<2x256xf32>
    %203 = arith.truncf %199 : vector<2x64xf32> to vector<2x64xbf16>
    %cst_37 = arith.constant dense<0.000000e+00> : vector<2x256xf32>
    %204 = tpu.matmul %203, %68, %cst_37 {dimension_numbers = #tpu.dot_dimension_numbers<[1], [0], [0], [1], [0, 0, 1, 1], [], []>} : vector<2x64xbf16>, vector<64x256xbf16>, vector<2x256xf32> -> vector<2x256xf32>
    %205 = arith.addf %202, %204 : vector<2x256xf32>
    %206 = math.tanh %205 : vector<2x256xf32>
    %207 = arith.negf %205 : vector<2x256xf32>
    %208 = math.exp %207 : vector<2x256xf32>
    %cst_38 = arith.constant 1.000000e+00 : f32
    %209 = vector.broadcast %cst_38 : f32 to vector<2x256xf32>
    %210 = arith.addf %209, %208 : vector<2x256xf32>
    %211 = arith.divf %209, %210 : vector<2x256xf32>
    %212 = arith.select %61, %206, %211 : vector<2x256xi1>, vector<2x256xf32>
    %213 = vector.extract_strided_slice %212 {offsets = [0, 0], sizes = [2, 32], strides = [1, 1]} : vector<2x256xf32> to vector<2x32xf32>
    %214 = vector.extract_strided_slice %212 {offsets = [0, 32], sizes = [2, 32], strides = [1, 1]} : vector<2x256xf32> to vector<2x32xf32>
    %215 = vector.extract_strided_slice %212 {offsets = [0, 64], sizes = [2, 32], strides = [1, 1]} : vector<2x256xf32> to vector<2x32xf32>
    %216 = vector.extract_strided_slice %212 {offsets = [0, 96], sizes = [2, 32], strides = [1, 1]} : vector<2x256xf32> to vector<2x32xf32>
    %217 = vector.extract_strided_slice %212 {offsets = [0, 128], sizes = [2, 32], strides = [1, 1]} : vector<2x256xf32> to vector<2x32xf32>
    %218 = vector.extract_strided_slice %212 {offsets = [0, 160], sizes = [2, 32], strides = [1, 1]} : vector<2x256xf32> to vector<2x32xf32>
    %219 = vector.extract_strided_slice %212 {offsets = [0, 192], sizes = [2, 32], strides = [1, 1]} : vector<2x256xf32> to vector<2x32xf32>
    %220 = vector.extract_strided_slice %212 {offsets = [0, 224], sizes = [2, 32], strides = [1, 1]} : vector<2x256xf32> to vector<2x32xf32>
    %221 = arith.mulf %214, %191 : vector<2x32xf32>
    %222 = arith.mulf %213, %215 : vector<2x32xf32>
    %223 = arith.addf %221, %222 : vector<2x32xf32>
    %224 = arith.mulf %218, %194 : vector<2x32xf32>
    %225 = arith.mulf %217, %219 : vector<2x32xf32>
    %226 = arith.addf %224, %225 : vector<2x32xf32>
    %227 = math.tanh %223 : vector<2x32xf32>
    %228 = arith.mulf %216, %227 : vector<2x32xf32>
    %229 = math.tanh %226 : vector<2x32xf32>
    %230 = arith.mulf %220, %229 : vector<2x32xf32>
    %231 = tpu.concatenate %228, %230 in 1 : vector<2x32xf32>, vector<2x32xf32> -> vector<2x64xf32>
    %232 = vector.extract_strided_slice %67 {offsets = [10, 0], sizes = [2, 128], strides = [1, 1]} : vector<16x256xf32> to vector<2x128xf32>
    %233 = vector.extract_strided_slice %67 {offsets = [4, 128], sizes = [2, 128], strides = [1, 1]} : vector<16x256xf32> to vector<2x128xf32>
    %234 = tpu.concatenate %232, %233 in 1 : vector<2x128xf32>, vector<2x128xf32> -> vector<2x256xf32>
    %235 = arith.truncf %231 : vector<2x64xf32> to vector<2x64xbf16>
    %cst_39 = arith.constant dense<0.000000e+00> : vector<2x256xf32>
    %236 = tpu.matmul %235, %68, %cst_39 {dimension_numbers = #tpu.dot_dimension_numbers<[1], [0], [0], [1], [0, 0, 1, 1], [], []>} : vector<2x64xbf16>, vector<64x256xbf16>, vector<2x256xf32> -> vector<2x256xf32>
    %237 = arith.addf %234, %236 : vector<2x256xf32>
    %238 = math.tanh %237 : vector<2x256xf32>
    %239 = arith.negf %237 : vector<2x256xf32>
    %240 = math.exp %239 : vector<2x256xf32>
    %cst_40 = arith.constant 1.000000e+00 : f32
    %241 = vector.broadcast %cst_40 : f32 to vector<2x256xf32>
    %242 = arith.addf %241, %240 : vector<2x256xf32>
    %243 = arith.divf %241, %242 : vector<2x256xf32>
    %244 = arith.select %61, %238, %243 : vector<2x256xi1>, vector<2x256xf32>
    %245 = vector.extract_strided_slice %244 {offsets = [0, 0], sizes = [2, 32], strides = [1, 1]} : vector<2x256xf32> to vector<2x32xf32>
    %246 = vector.extract_strided_slice %244 {offsets = [0, 32], sizes = [2, 32], strides = [1, 1]} : vector<2x256xf32> to vector<2x32xf32>
    %247 = vector.extract_strided_slice %244 {offsets = [0, 64], sizes = [2, 32], strides = [1, 1]} : vector<2x256xf32> to vector<2x32xf32>
    %248 = vector.extract_strided_slice %244 {offsets = [0, 96], sizes = [2, 32], strides = [1, 1]} : vector<2x256xf32> to vector<2x32xf32>
    %249 = vector.extract_strided_slice %244 {offsets = [0, 128], sizes = [2, 32], strides = [1, 1]} : vector<2x256xf32> to vector<2x32xf32>
    %250 = vector.extract_strided_slice %244 {offsets = [0, 160], sizes = [2, 32], strides = [1, 1]} : vector<2x256xf32> to vector<2x32xf32>
    %251 = vector.extract_strided_slice %244 {offsets = [0, 192], sizes = [2, 32], strides = [1, 1]} : vector<2x256xf32> to vector<2x32xf32>
    %252 = vector.extract_strided_slice %244 {offsets = [0, 224], sizes = [2, 32], strides = [1, 1]} : vector<2x256xf32> to vector<2x32xf32>
    %253 = arith.mulf %246, %223 : vector<2x32xf32>
    %254 = arith.mulf %245, %247 : vector<2x32xf32>
    %255 = arith.addf %253, %254 : vector<2x32xf32>
    %256 = arith.mulf %250, %226 : vector<2x32xf32>
    %257 = arith.mulf %249, %251 : vector<2x32xf32>
    %258 = arith.addf %256, %257 : vector<2x32xf32>
    %259 = math.tanh %255 : vector<2x32xf32>
    %260 = arith.mulf %248, %259 : vector<2x32xf32>
    %261 = math.tanh %258 : vector<2x32xf32>
    %262 = arith.mulf %252, %261 : vector<2x32xf32>
    %263 = tpu.concatenate %260, %262 in 1 : vector<2x32xf32>, vector<2x32xf32> -> vector<2x64xf32>
    %264 = vector.extract_strided_slice %67 {offsets = [12, 0], sizes = [2, 128], strides = [1, 1]} : vector<16x256xf32> to vector<2x128xf32>
    %265 = vector.extract_strided_slice %67 {offsets = [2, 128], sizes = [2, 128], strides = [1, 1]} : vector<16x256xf32> to vector<2x128xf32>
    %266 = tpu.concatenate %264, %265 in 1 : vector<2x128xf32>, vector<2x128xf32> -> vector<2x256xf32>
    %267 = arith.truncf %263 : vector<2x64xf32> to vector<2x64xbf16>
    %cst_41 = arith.constant dense<0.000000e+00> : vector<2x256xf32>
    %268 = tpu.matmul %267, %68, %cst_41 {dimension_numbers = #tpu.dot_dimension_numbers<[1], [0], [0], [1], [0, 0, 1, 1], [], []>} : vector<2x64xbf16>, vector<64x256xbf16>, vector<2x256xf32> -> vector<2x256xf32>
    %269 = arith.addf %266, %268 : vector<2x256xf32>
    %270 = math.tanh %269 : vector<2x256xf32>
    %271 = arith.negf %269 : vector<2x256xf32>
    %272 = math.exp %271 : vector<2x256xf32>
    %cst_42 = arith.constant 1.000000e+00 : f32
    %273 = vector.broadcast %cst_42 : f32 to vector<2x256xf32>
    %274 = arith.addf %273, %272 : vector<2x256xf32>
    %275 = arith.divf %273, %274 : vector<2x256xf32>
    %276 = arith.select %61, %270, %275 : vector<2x256xi1>, vector<2x256xf32>
    %277 = vector.extract_strided_slice %276 {offsets = [0, 0], sizes = [2, 32], strides = [1, 1]} : vector<2x256xf32> to vector<2x32xf32>
    %278 = vector.extract_strided_slice %276 {offsets = [0, 32], sizes = [2, 32], strides = [1, 1]} : vector<2x256xf32> to vector<2x32xf32>
    %279 = vector.extract_strided_slice %276 {offsets = [0, 64], sizes = [2, 32], strides = [1, 1]} : vector<2x256xf32> to vector<2x32xf32>
    %280 = vector.extract_strided_slice %276 {offsets = [0, 96], sizes = [2, 32], strides = [1, 1]} : vector<2x256xf32> to vector<2x32xf32>
    %281 = vector.extract_strided_slice %276 {offsets = [0, 128], sizes = [2, 32], strides = [1, 1]} : vector<2x256xf32> to vector<2x32xf32>
    %282 = vector.extract_strided_slice %276 {offsets = [0, 160], sizes = [2, 32], strides = [1, 1]} : vector<2x256xf32> to vector<2x32xf32>
    %283 = vector.extract_strided_slice %276 {offsets = [0, 192], sizes = [2, 32], strides = [1, 1]} : vector<2x256xf32> to vector<2x32xf32>
    %284 = vector.extract_strided_slice %276 {offsets = [0, 224], sizes = [2, 32], strides = [1, 1]} : vector<2x256xf32> to vector<2x32xf32>
    %285 = arith.mulf %278, %255 : vector<2x32xf32>
    %286 = arith.mulf %277, %279 : vector<2x32xf32>
    %287 = arith.addf %285, %286 : vector<2x32xf32>
    %288 = arith.mulf %282, %258 : vector<2x32xf32>
    %289 = arith.mulf %281, %283 : vector<2x32xf32>
    %290 = arith.addf %288, %289 : vector<2x32xf32>
    %291 = math.tanh %287 : vector<2x32xf32>
    %292 = arith.mulf %280, %291 : vector<2x32xf32>
    %293 = math.tanh %290 : vector<2x32xf32>
    %294 = arith.mulf %284, %293 : vector<2x32xf32>
    %295 = tpu.concatenate %292, %294 in 1 : vector<2x32xf32>, vector<2x32xf32> -> vector<2x64xf32>
    %296 = vector.extract_strided_slice %67 {offsets = [14, 0], sizes = [2, 128], strides = [1, 1]} : vector<16x256xf32> to vector<2x128xf32>
    %297 = vector.extract_strided_slice %67 {offsets = [0, 128], sizes = [2, 128], strides = [1, 1]} : vector<16x256xf32> to vector<2x128xf32>
    %298 = tpu.concatenate %296, %297 in 1 : vector<2x128xf32>, vector<2x128xf32> -> vector<2x256xf32>
    %299 = arith.truncf %295 : vector<2x64xf32> to vector<2x64xbf16>
    %cst_43 = arith.constant dense<0.000000e+00> : vector<2x256xf32>
    %300 = tpu.matmul %299, %68, %cst_43 {dimension_numbers = #tpu.dot_dimension_numbers<[1], [0], [0], [1], [0, 0, 1, 1], [], []>} : vector<2x64xbf16>, vector<64x256xbf16>, vector<2x256xf32> -> vector<2x256xf32>
    %301 = arith.addf %298, %300 : vector<2x256xf32>
    %302 = math.tanh %301 : vector<2x256xf32>
    %303 = arith.negf %301 : vector<2x256xf32>
    %304 = math.exp %303 : vector<2x256xf32>
    %cst_44 = arith.constant 1.000000e+00 : f32
    %305 = vector.broadcast %cst_44 : f32 to vector<2x256xf32>
    %306 = arith.addf %305, %304 : vector<2x256xf32>
    %307 = arith.divf %305, %306 : vector<2x256xf32>
    %308 = arith.select %61, %302, %307 : vector<2x256xi1>, vector<2x256xf32>
    %309 = vector.extract_strided_slice %308 {offsets = [0, 0], sizes = [2, 32], strides = [1, 1]} : vector<2x256xf32> to vector<2x32xf32>
    %310 = vector.extract_strided_slice %308 {offsets = [0, 32], sizes = [2, 32], strides = [1, 1]} : vector<2x256xf32> to vector<2x32xf32>
    %311 = vector.extract_strided_slice %308 {offsets = [0, 64], sizes = [2, 32], strides = [1, 1]} : vector<2x256xf32> to vector<2x32xf32>
    %312 = vector.extract_strided_slice %308 {offsets = [0, 96], sizes = [2, 32], strides = [1, 1]} : vector<2x256xf32> to vector<2x32xf32>
    %313 = vector.extract_strided_slice %308 {offsets = [0, 128], sizes = [2, 32], strides = [1, 1]} : vector<2x256xf32> to vector<2x32xf32>
    %314 = vector.extract_strided_slice %308 {offsets = [0, 160], sizes = [2, 32], strides = [1, 1]} : vector<2x256xf32> to vector<2x32xf32>
    %315 = vector.extract_strided_slice %308 {offsets = [0, 192], sizes = [2, 32], strides = [1, 1]} : vector<2x256xf32> to vector<2x32xf32>
    %316 = vector.extract_strided_slice %308 {offsets = [0, 224], sizes = [2, 32], strides = [1, 1]} : vector<2x256xf32> to vector<2x32xf32>
    %317 = arith.mulf %310, %287 : vector<2x32xf32>
    %318 = arith.mulf %309, %311 : vector<2x32xf32>
    %319 = arith.addf %317, %318 : vector<2x32xf32>
    %320 = arith.mulf %314, %290 : vector<2x32xf32>
    %321 = arith.mulf %313, %315 : vector<2x32xf32>
    %322 = arith.addf %320, %321 : vector<2x32xf32>
    %323 = math.tanh %319 : vector<2x32xf32>
    %324 = arith.mulf %312, %323 : vector<2x32xf32>
    %325 = math.tanh %322 : vector<2x32xf32>
    %326 = arith.mulf %316, %325 : vector<2x32xf32>
    %327 = tpu.concatenate %100, %326 in 1 : vector<2x32xf32>, vector<2x32xf32> -> vector<2x64xf32>
    %328 = tpu.concatenate %132, %294 in 1 : vector<2x32xf32>, vector<2x32xf32> -> vector<2x64xf32>
    %329 = tpu.concatenate %164, %262 in 1 : vector<2x32xf32>, vector<2x32xf32> -> vector<2x64xf32>
    %330 = tpu.concatenate %196, %230 in 1 : vector<2x32xf32>, vector<2x32xf32> -> vector<2x64xf32>
    %331 = tpu.concatenate %228, %198 in 1 : vector<2x32xf32>, vector<2x32xf32> -> vector<2x64xf32>
    %332 = tpu.concatenate %260, %166 in 1 : vector<2x32xf32>, vector<2x32xf32> -> vector<2x64xf32>
    %333 = tpu.concatenate %292, %134 in 1 : vector<2x32xf32>, vector<2x32xf32> -> vector<2x64xf32>
    %334 = tpu.concatenate %324, %102 in 1 : vector<2x32xf32>, vector<2x32xf32> -> vector<2x64xf32>
    %335 = tpu.concatenate %327, %328, %329, %330, %331, %332, %333, %334 in 0 : vector<2x64xf32>, vector<2x64xf32>, vector<2x64xf32>, vector<2x64xf32>, vector<2x64xf32>, vector<2x64xf32>, vector<2x64xf32>, vector<2x64xf32> -> vector<16x64xf32>
    %336 = arith.truncf %335 : vector<16x64xf32> to vector<16x64xbf16>
    %c0_45 = arith.constant 0 : index
    %c0_46 = arith.constant 0 : index
    %337 = vector.load %arg11[%c0_45, %c0_46] : memref<64x256xbf16, #tpu.memory_space<vmem>>, vector<64x256xbf16>
    %cst_47 = arith.constant dense<0.000000e+00> : vector<16x256xf32>
    %338 = tpu.matmul %336, %337, %cst_47 {dimension_numbers = #tpu.dot_dimension_numbers<[1], [0], [0], [1], [0, 0, 1, 1], [], []>} : vector<16x64xbf16>, vector<64x256xbf16>, vector<16x256xf32> -> vector<16x256xf32>
    %c0_48 = arith.constant 0 : index
    %c0_49 = arith.constant 0 : index
    %339 = vector.load %arg13[%c0_48, %c0_49] : memref<1x256xf32, #tpu.memory_space<vmem>>, vector<1x256xf32>
    %340 = vector.broadcast %339 : vector<1x256xf32> to vector<16x256xf32>
    %341 = arith.addf %338, %340 : vector<16x256xf32>
    %c0_50 = arith.constant 0 : index
    %c0_51 = arith.constant 0 : index
    %342 = vector.load %arg12[%c0_50, %c0_51] : memref<64x256xbf16, #tpu.memory_space<vmem>>, vector<64x256xbf16>
    %cst_52 = arith.constant 0.000000e+00 : f32
    %343 = vector.broadcast %cst_52 : f32 to vector<2x64xf32>
    %cst_53 = arith.constant 0.000000e+00 : f32
    %344 = vector.broadcast %cst_53 : f32 to vector<2x32xf32>
    %cst_54 = arith.constant 0.000000e+00 : f32
    %345 = vector.broadcast %cst_54 : f32 to vector<2x32xf32>
    %346 = vector.extract_strided_slice %341 {offsets = [0, 0], sizes = [2, 128], strides = [1, 1]} : vector<16x256xf32> to vector<2x128xf32>
    %347 = vector.extract_strided_slice %341 {offsets = [14, 128], sizes = [2, 128], strides = [1, 1]} : vector<16x256xf32> to vector<2x128xf32>
    %348 = tpu.concatenate %346, %347 in 1 : vector<2x128xf32>, vector<2x128xf32> -> vector<2x256xf32>
    %349 = arith.truncf %343 : vector<2x64xf32> to vector<2x64xbf16>
    %cst_55 = arith.constant dense<0.000000e+00> : vector<2x256xf32>
    %350 = tpu.matmul %349, %342, %cst_55 {dimension_numbers = #tpu.dot_dimension_numbers<[1], [0], [0], [1], [0, 0, 1, 1], [], []>} : vector<2x64xbf16>, vector<64x256xbf16>, vector<2x256xf32> -> vector<2x256xf32>
    %351 = arith.addf %348, %350 : vector<2x256xf32>
    %352 = math.tanh %351 : vector<2x256xf32>
    %353 = arith.negf %351 : vector<2x256xf32>
    %354 = math.exp %353 : vector<2x256xf32>
    %cst_56 = arith.constant 1.000000e+00 : f32
    %355 = vector.broadcast %cst_56 : f32 to vector<2x256xf32>
    %356 = arith.addf %355, %354 : vector<2x256xf32>
    %357 = arith.divf %355, %356 : vector<2x256xf32>
    %358 = arith.select %61, %352, %357 : vector<2x256xi1>, vector<2x256xf32>
    %359 = vector.extract_strided_slice %358 {offsets = [0, 0], sizes = [2, 32], strides = [1, 1]} : vector<2x256xf32> to vector<2x32xf32>
    %360 = vector.extract_strided_slice %358 {offsets = [0, 32], sizes = [2, 32], strides = [1, 1]} : vector<2x256xf32> to vector<2x32xf32>
    %361 = vector.extract_strided_slice %358 {offsets = [0, 64], sizes = [2, 32], strides = [1, 1]} : vector<2x256xf32> to vector<2x32xf32>
    %362 = vector.extract_strided_slice %358 {offsets = [0, 96], sizes = [2, 32], strides = [1, 1]} : vector<2x256xf32> to vector<2x32xf32>
    %363 = vector.extract_strided_slice %358 {offsets = [0, 128], sizes = [2, 32], strides = [1, 1]} : vector<2x256xf32> to vector<2x32xf32>
    %364 = vector.extract_strided_slice %358 {offsets = [0, 160], sizes = [2, 32], strides = [1, 1]} : vector<2x256xf32> to vector<2x32xf32>
    %365 = vector.extract_strided_slice %358 {offsets = [0, 192], sizes = [2, 32], strides = [1, 1]} : vector<2x256xf32> to vector<2x32xf32>
    %366 = vector.extract_strided_slice %358 {offsets = [0, 224], sizes = [2, 32], strides = [1, 1]} : vector<2x256xf32> to vector<2x32xf32>
    %367 = arith.mulf %360, %344 : vector<2x32xf32>
    %368 = arith.mulf %359, %361 : vector<2x32xf32>
    %369 = arith.addf %367, %368 : vector<2x32xf32>
    %370 = arith.mulf %364, %345 : vector<2x32xf32>
    %371 = arith.mulf %363, %365 : vector<2x32xf32>
    %372 = arith.addf %370, %371 : vector<2x32xf32>
    %373 = math.tanh %369 : vector<2x32xf32>
    %374 = arith.mulf %362, %373 : vector<2x32xf32>
    %375 = math.tanh %372 : vector<2x32xf32>
    %376 = arith.mulf %366, %375 : vector<2x32xf32>
    %377 = tpu.concatenate %374, %376 in 1 : vector<2x32xf32>, vector<2x32xf32> -> vector<2x64xf32>
    %378 = vector.extract_strided_slice %341 {offsets = [2, 0], sizes = [2, 128], strides = [1, 1]} : vector<16x256xf32> to vector<2x128xf32>
    %379 = vector.extract_strided_slice %341 {offsets = [12, 128], sizes = [2, 128], strides = [1, 1]} : vector<16x256xf32> to vector<2x128xf32>
    %380 = tpu.concatenate %378, %379 in 1 : vector<2x128xf32>, vector<2x128xf32> -> vector<2x256xf32>
    %381 = arith.truncf %377 : vector<2x64xf32> to vector<2x64xbf16>
    %cst_57 = arith.constant dense<0.000000e+00> : vector<2x256xf32>
    %382 = tpu.matmul %381, %342, %cst_57 {dimension_numbers = #tpu.dot_dimension_numbers<[1], [0], [0], [1], [0, 0, 1, 1], [], []>} : vector<2x64xbf16>, vector<64x256xbf16>, vector<2x256xf32> -> vector<2x256xf32>
    %383 = arith.addf %380, %382 : vector<2x256xf32>
    %384 = math.tanh %383 : vector<2x256xf32>
    %385 = arith.negf %383 : vector<2x256xf32>
    %386 = math.exp %385 : vector<2x256xf32>
    %cst_58 = arith.constant 1.000000e+00 : f32
    %387 = vector.broadcast %cst_58 : f32 to vector<2x256xf32>
    %388 = arith.addf %387, %386 : vector<2x256xf32>
    %389 = arith.divf %387, %388 : vector<2x256xf32>
    %390 = arith.select %61, %384, %389 : vector<2x256xi1>, vector<2x256xf32>
    %391 = vector.extract_strided_slice %390 {offsets = [0, 0], sizes = [2, 32], strides = [1, 1]} : vector<2x256xf32> to vector<2x32xf32>
    %392 = vector.extract_strided_slice %390 {offsets = [0, 32], sizes = [2, 32], strides = [1, 1]} : vector<2x256xf32> to vector<2x32xf32>
    %393 = vector.extract_strided_slice %390 {offsets = [0, 64], sizes = [2, 32], strides = [1, 1]} : vector<2x256xf32> to vector<2x32xf32>
    %394 = vector.extract_strided_slice %390 {offsets = [0, 96], sizes = [2, 32], strides = [1, 1]} : vector<2x256xf32> to vector<2x32xf32>
    %395 = vector.extract_strided_slice %390 {offsets = [0, 128], sizes = [2, 32], strides = [1, 1]} : vector<2x256xf32> to vector<2x32xf32>
    %396 = vector.extract_strided_slice %390 {offsets = [0, 160], sizes = [2, 32], strides = [1, 1]} : vector<2x256xf32> to vector<2x32xf32>
    %397 = vector.extract_strided_slice %390 {offsets = [0, 192], sizes = [2, 32], strides = [1, 1]} : vector<2x256xf32> to vector<2x32xf32>
    %398 = vector.extract_strided_slice %390 {offsets = [0, 224], sizes = [2, 32], strides = [1, 1]} : vector<2x256xf32> to vector<2x32xf32>
    %399 = arith.mulf %392, %369 : vector<2x32xf32>
    %400 = arith.mulf %391, %393 : vector<2x32xf32>
    %401 = arith.addf %399, %400 : vector<2x32xf32>
    %402 = arith.mulf %396, %372 : vector<2x32xf32>
    %403 = arith.mulf %395, %397 : vector<2x32xf32>
    %404 = arith.addf %402, %403 : vector<2x32xf32>
    %405 = math.tanh %401 : vector<2x32xf32>
    %406 = arith.mulf %394, %405 : vector<2x32xf32>
    %407 = math.tanh %404 : vector<2x32xf32>
    %408 = arith.mulf %398, %407 : vector<2x32xf32>
    %409 = tpu.concatenate %406, %408 in 1 : vector<2x32xf32>, vector<2x32xf32> -> vector<2x64xf32>
    %410 = vector.extract_strided_slice %341 {offsets = [4, 0], sizes = [2, 128], strides = [1, 1]} : vector<16x256xf32> to vector<2x128xf32>
    %411 = vector.extract_strided_slice %341 {offsets = [10, 128], sizes = [2, 128], strides = [1, 1]} : vector<16x256xf32> to vector<2x128xf32>
    %412 = tpu.concatenate %410, %411 in 1 : vector<2x128xf32>, vector<2x128xf32> -> vector<2x256xf32>
    %413 = arith.truncf %409 : vector<2x64xf32> to vector<2x64xbf16>
    %cst_59 = arith.constant dense<0.000000e+00> : vector<2x256xf32>
    %414 = tpu.matmul %413, %342, %cst_59 {dimension_numbers = #tpu.dot_dimension_numbers<[1], [0], [0], [1], [0, 0, 1, 1], [], []>} : vector<2x64xbf16>, vector<64x256xbf16>, vector<2x256xf32> -> vector<2x256xf32>
    %415 = arith.addf %412, %414 : vector<2x256xf32>
    %416 = math.tanh %415 : vector<2x256xf32>
    %417 = arith.negf %415 : vector<2x256xf32>
    %418 = math.exp %417 : vector<2x256xf32>
    %cst_60 = arith.constant 1.000000e+00 : f32
    %419 = vector.broadcast %cst_60 : f32 to vector<2x256xf32>
    %420 = arith.addf %419, %418 : vector<2x256xf32>
    %421 = arith.divf %419, %420 : vector<2x256xf32>
    %422 = arith.select %61, %416, %421 : vector<2x256xi1>, vector<2x256xf32>
    %423 = vector.extract_strided_slice %422 {offsets = [0, 0], sizes = [2, 32], strides = [1, 1]} : vector<2x256xf32> to vector<2x32xf32>
    %424 = vector.extract_strided_slice %422 {offsets = [0, 32], sizes = [2, 32], strides = [1, 1]} : vector<2x256xf32> to vector<2x32xf32>
    %425 = vector.extract_strided_slice %422 {offsets = [0, 64], sizes = [2, 32], strides = [1, 1]} : vector<2x256xf32> to vector<2x32xf32>
    %426 = vector.extract_strided_slice %422 {offsets = [0, 96], sizes = [2, 32], strides = [1, 1]} : vector<2x256xf32> to vector<2x32xf32>
    %427 = vector.extract_strided_slice %422 {offsets = [0, 128], sizes = [2, 32], strides = [1, 1]} : vector<2x256xf32> to vector<2x32xf32>
    %428 = vector.extract_strided_slice %422 {offsets = [0, 160], sizes = [2, 32], strides = [1, 1]} : vector<2x256xf32> to vector<2x32xf32>
    %429 = vector.extract_strided_slice %422 {offsets = [0, 192], sizes = [2, 32], strides = [1, 1]} : vector<2x256xf32> to vector<2x32xf32>
    %430 = vector.extract_strided_slice %422 {offsets = [0, 224], sizes = [2, 32], strides = [1, 1]} : vector<2x256xf32> to vector<2x32xf32>
    %431 = arith.mulf %424, %401 : vector<2x32xf32>
    %432 = arith.mulf %423, %425 : vector<2x32xf32>
    %433 = arith.addf %431, %432 : vector<2x32xf32>
    %434 = arith.mulf %428, %404 : vector<2x32xf32>
    %435 = arith.mulf %427, %429 : vector<2x32xf32>
    %436 = arith.addf %434, %435 : vector<2x32xf32>
    %437 = math.tanh %433 : vector<2x32xf32>
    %438 = arith.mulf %426, %437 : vector<2x32xf32>
    %439 = math.tanh %436 : vector<2x32xf32>
    %440 = arith.mulf %430, %439 : vector<2x32xf32>
    %441 = tpu.concatenate %438, %440 in 1 : vector<2x32xf32>, vector<2x32xf32> -> vector<2x64xf32>
    %442 = vector.extract_strided_slice %341 {offsets = [6, 0], sizes = [2, 128], strides = [1, 1]} : vector<16x256xf32> to vector<2x128xf32>
    %443 = vector.extract_strided_slice %341 {offsets = [8, 128], sizes = [2, 128], strides = [1, 1]} : vector<16x256xf32> to vector<2x128xf32>
    %444 = tpu.concatenate %442, %443 in 1 : vector<2x128xf32>, vector<2x128xf32> -> vector<2x256xf32>
    %445 = arith.truncf %441 : vector<2x64xf32> to vector<2x64xbf16>
    %cst_61 = arith.constant dense<0.000000e+00> : vector<2x256xf32>
    %446 = tpu.matmul %445, %342, %cst_61 {dimension_numbers = #tpu.dot_dimension_numbers<[1], [0], [0], [1], [0, 0, 1, 1], [], []>} : vector<2x64xbf16>, vector<64x256xbf16>, vector<2x256xf32> -> vector<2x256xf32>
    %447 = arith.addf %444, %446 : vector<2x256xf32>
    %448 = math.tanh %447 : vector<2x256xf32>
    %449 = arith.negf %447 : vector<2x256xf32>
    %450 = math.exp %449 : vector<2x256xf32>
    %cst_62 = arith.constant 1.000000e+00 : f32
    %451 = vector.broadcast %cst_62 : f32 to vector<2x256xf32>
    %452 = arith.addf %451, %450 : vector<2x256xf32>
    %453 = arith.divf %451, %452 : vector<2x256xf32>
    %454 = arith.select %61, %448, %453 : vector<2x256xi1>, vector<2x256xf32>
    %455 = vector.extract_strided_slice %454 {offsets = [0, 0], sizes = [2, 32], strides = [1, 1]} : vector<2x256xf32> to vector<2x32xf32>
    %456 = vector.extract_strided_slice %454 {offsets = [0, 32], sizes = [2, 32], strides = [1, 1]} : vector<2x256xf32> to vector<2x32xf32>
    %457 = vector.extract_strided_slice %454 {offsets = [0, 64], sizes = [2, 32], strides = [1, 1]} : vector<2x256xf32> to vector<2x32xf32>
    %458 = vector.extract_strided_slice %454 {offsets = [0, 96], sizes = [2, 32], strides = [1, 1]} : vector<2x256xf32> to vector<2x32xf32>
    %459 = vector.extract_strided_slice %454 {offsets = [0, 128], sizes = [2, 32], strides = [1, 1]} : vector<2x256xf32> to vector<2x32xf32>
    %460 = vector.extract_strided_slice %454 {offsets = [0, 160], sizes = [2, 32], strides = [1, 1]} : vector<2x256xf32> to vector<2x32xf32>
    %461 = vector.extract_strided_slice %454 {offsets = [0, 192], sizes = [2, 32], strides = [1, 1]} : vector<2x256xf32> to vector<2x32xf32>
    %462 = vector.extract_strided_slice %454 {offsets = [0, 224], sizes = [2, 32], strides = [1, 1]} : vector<2x256xf32> to vector<2x32xf32>
    %463 = arith.mulf %456, %433 : vector<2x32xf32>
    %464 = arith.mulf %455, %457 : vector<2x32xf32>
    %465 = arith.addf %463, %464 : vector<2x32xf32>
    %466 = arith.mulf %460, %436 : vector<2x32xf32>
    %467 = arith.mulf %459, %461 : vector<2x32xf32>
    %468 = arith.addf %466, %467 : vector<2x32xf32>
    %469 = math.tanh %465 : vector<2x32xf32>
    %470 = arith.mulf %458, %469 : vector<2x32xf32>
    %471 = math.tanh %468 : vector<2x32xf32>
    %472 = arith.mulf %462, %471 : vector<2x32xf32>
    %473 = tpu.concatenate %470, %472 in 1 : vector<2x32xf32>, vector<2x32xf32> -> vector<2x64xf32>
    %474 = vector.extract_strided_slice %341 {offsets = [8, 0], sizes = [2, 128], strides = [1, 1]} : vector<16x256xf32> to vector<2x128xf32>
    %475 = vector.extract_strided_slice %341 {offsets = [6, 128], sizes = [2, 128], strides = [1, 1]} : vector<16x256xf32> to vector<2x128xf32>
    %476 = tpu.concatenate %474, %475 in 1 : vector<2x128xf32>, vector<2x128xf32> -> vector<2x256xf32>
    %477 = arith.truncf %473 : vector<2x64xf32> to vector<2x64xbf16>
    %cst_63 = arith.constant dense<0.000000e+00> : vector<2x256xf32>
    %478 = tpu.matmul %477, %342, %cst_63 {dimension_numbers = #tpu.dot_dimension_numbers<[1], [0], [0], [1], [0, 0, 1, 1], [], []>} : vector<2x64xbf16>, vector<64x256xbf16>, vector<2x256xf32> -> vector<2x256xf32>
    %479 = arith.addf %476, %478 : vector<2x256xf32>
    %480 = math.tanh %479 : vector<2x256xf32>
    %481 = arith.negf %479 : vector<2x256xf32>
    %482 = math.exp %481 : vector<2x256xf32>
    %cst_64 = arith.constant 1.000000e+00 : f32
    %483 = vector.broadcast %cst_64 : f32 to vector<2x256xf32>
    %484 = arith.addf %483, %482 : vector<2x256xf32>
    %485 = arith.divf %483, %484 : vector<2x256xf32>
    %486 = arith.select %61, %480, %485 : vector<2x256xi1>, vector<2x256xf32>
    %487 = vector.extract_strided_slice %486 {offsets = [0, 0], sizes = [2, 32], strides = [1, 1]} : vector<2x256xf32> to vector<2x32xf32>
    %488 = vector.extract_strided_slice %486 {offsets = [0, 32], sizes = [2, 32], strides = [1, 1]} : vector<2x256xf32> to vector<2x32xf32>
    %489 = vector.extract_strided_slice %486 {offsets = [0, 64], sizes = [2, 32], strides = [1, 1]} : vector<2x256xf32> to vector<2x32xf32>
    %490 = vector.extract_strided_slice %486 {offsets = [0, 96], sizes = [2, 32], strides = [1, 1]} : vector<2x256xf32> to vector<2x32xf32>
    %491 = vector.extract_strided_slice %486 {offsets = [0, 128], sizes = [2, 32], strides = [1, 1]} : vector<2x256xf32> to vector<2x32xf32>
    %492 = vector.extract_strided_slice %486 {offsets = [0, 160], sizes = [2, 32], strides = [1, 1]} : vector<2x256xf32> to vector<2x32xf32>
    %493 = vector.extract_strided_slice %486 {offsets = [0, 192], sizes = [2, 32], strides = [1, 1]} : vector<2x256xf32> to vector<2x32xf32>
    %494 = vector.extract_strided_slice %486 {offsets = [0, 224], sizes = [2, 32], strides = [1, 1]} : vector<2x256xf32> to vector<2x32xf32>
    %495 = arith.mulf %488, %465 : vector<2x32xf32>
    %496 = arith.mulf %487, %489 : vector<2x32xf32>
    %497 = arith.addf %495, %496 : vector<2x32xf32>
    %498 = arith.mulf %492, %468 : vector<2x32xf32>
    %499 = arith.mulf %491, %493 : vector<2x32xf32>
    %500 = arith.addf %498, %499 : vector<2x32xf32>
    %501 = math.tanh %497 : vector<2x32xf32>
    %502 = arith.mulf %490, %501 : vector<2x32xf32>
    %503 = math.tanh %500 : vector<2x32xf32>
    %504 = arith.mulf %494, %503 : vector<2x32xf32>
    %505 = tpu.concatenate %502, %504 in 1 : vector<2x32xf32>, vector<2x32xf32> -> vector<2x64xf32>
    %506 = vector.extract_strided_slice %341 {offsets = [10, 0], sizes = [2, 128], strides = [1, 1]} : vector<16x256xf32> to vector<2x128xf32>
    %507 = vector.extract_strided_slice %341 {offsets = [4, 128], sizes = [2, 128], strides = [1, 1]} : vector<16x256xf32> to vector<2x128xf32>
    %508 = tpu.concatenate %506, %507 in 1 : vector<2x128xf32>, vector<2x128xf32> -> vector<2x256xf32>
    %509 = arith.truncf %505 : vector<2x64xf32> to vector<2x64xbf16>
    %cst_65 = arith.constant dense<0.000000e+00> : vector<2x256xf32>
    %510 = tpu.matmul %509, %342, %cst_65 {dimension_numbers = #tpu.dot_dimension_numbers<[1], [0], [0], [1], [0, 0, 1, 1], [], []>} : vector<2x64xbf16>, vector<64x256xbf16>, vector<2x256xf32> -> vector<2x256xf32>
    %511 = arith.addf %508, %510 : vector<2x256xf32>
    %512 = math.tanh %511 : vector<2x256xf32>
    %513 = arith.negf %511 : vector<2x256xf32>
    %514 = math.exp %513 : vector<2x256xf32>
    %cst_66 = arith.constant 1.000000e+00 : f32
    %515 = vector.broadcast %cst_66 : f32 to vector<2x256xf32>
    %516 = arith.addf %515, %514 : vector<2x256xf32>
    %517 = arith.divf %515, %516 : vector<2x256xf32>
    %518 = arith.select %61, %512, %517 : vector<2x256xi1>, vector<2x256xf32>
    %519 = vector.extract_strided_slice %518 {offsets = [0, 0], sizes = [2, 32], strides = [1, 1]} : vector<2x256xf32> to vector<2x32xf32>
    %520 = vector.extract_strided_slice %518 {offsets = [0, 32], sizes = [2, 32], strides = [1, 1]} : vector<2x256xf32> to vector<2x32xf32>
    %521 = vector.extract_strided_slice %518 {offsets = [0, 64], sizes = [2, 32], strides = [1, 1]} : vector<2x256xf32> to vector<2x32xf32>
    %522 = vector.extract_strided_slice %518 {offsets = [0, 96], sizes = [2, 32], strides = [1, 1]} : vector<2x256xf32> to vector<2x32xf32>
    %523 = vector.extract_strided_slice %518 {offsets = [0, 128], sizes = [2, 32], strides = [1, 1]} : vector<2x256xf32> to vector<2x32xf32>
    %524 = vector.extract_strided_slice %518 {offsets = [0, 160], sizes = [2, 32], strides = [1, 1]} : vector<2x256xf32> to vector<2x32xf32>
    %525 = vector.extract_strided_slice %518 {offsets = [0, 192], sizes = [2, 32], strides = [1, 1]} : vector<2x256xf32> to vector<2x32xf32>
    %526 = vector.extract_strided_slice %518 {offsets = [0, 224], sizes = [2, 32], strides = [1, 1]} : vector<2x256xf32> to vector<2x32xf32>
    %527 = arith.mulf %520, %497 : vector<2x32xf32>
    %528 = arith.mulf %519, %521 : vector<2x32xf32>
    %529 = arith.addf %527, %528 : vector<2x32xf32>
    %530 = arith.mulf %524, %500 : vector<2x32xf32>
    %531 = arith.mulf %523, %525 : vector<2x32xf32>
    %532 = arith.addf %530, %531 : vector<2x32xf32>
    %533 = math.tanh %529 : vector<2x32xf32>
    %534 = arith.mulf %522, %533 : vector<2x32xf32>
    %535 = math.tanh %532 : vector<2x32xf32>
    %536 = arith.mulf %526, %535 : vector<2x32xf32>
    %537 = tpu.concatenate %534, %536 in 1 : vector<2x32xf32>, vector<2x32xf32> -> vector<2x64xf32>
    %538 = vector.extract_strided_slice %341 {offsets = [12, 0], sizes = [2, 128], strides = [1, 1]} : vector<16x256xf32> to vector<2x128xf32>
    %539 = vector.extract_strided_slice %341 {offsets = [2, 128], sizes = [2, 128], strides = [1, 1]} : vector<16x256xf32> to vector<2x128xf32>
    %540 = tpu.concatenate %538, %539 in 1 : vector<2x128xf32>, vector<2x128xf32> -> vector<2x256xf32>
    %541 = arith.truncf %537 : vector<2x64xf32> to vector<2x64xbf16>
    %cst_67 = arith.constant dense<0.000000e+00> : vector<2x256xf32>
    %542 = tpu.matmul %541, %342, %cst_67 {dimension_numbers = #tpu.dot_dimension_numbers<[1], [0], [0], [1], [0, 0, 1, 1], [], []>} : vector<2x64xbf16>, vector<64x256xbf16>, vector<2x256xf32> -> vector<2x256xf32>
    %543 = arith.addf %540, %542 : vector<2x256xf32>
    %544 = math.tanh %543 : vector<2x256xf32>
    %545 = arith.negf %543 : vector<2x256xf32>
    %546 = math.exp %545 : vector<2x256xf32>
    %cst_68 = arith.constant 1.000000e+00 : f32
    %547 = vector.broadcast %cst_68 : f32 to vector<2x256xf32>
    %548 = arith.addf %547, %546 : vector<2x256xf32>
    %549 = arith.divf %547, %548 : vector<2x256xf32>
    %550 = arith.select %61, %544, %549 : vector<2x256xi1>, vector<2x256xf32>
    %551 = vector.extract_strided_slice %550 {offsets = [0, 0], sizes = [2, 32], strides = [1, 1]} : vector<2x256xf32> to vector<2x32xf32>
    %552 = vector.extract_strided_slice %550 {offsets = [0, 32], sizes = [2, 32], strides = [1, 1]} : vector<2x256xf32> to vector<2x32xf32>
    %553 = vector.extract_strided_slice %550 {offsets = [0, 64], sizes = [2, 32], strides = [1, 1]} : vector<2x256xf32> to vector<2x32xf32>
    %554 = vector.extract_strided_slice %550 {offsets = [0, 96], sizes = [2, 32], strides = [1, 1]} : vector<2x256xf32> to vector<2x32xf32>
    %555 = vector.extract_strided_slice %550 {offsets = [0, 128], sizes = [2, 32], strides = [1, 1]} : vector<2x256xf32> to vector<2x32xf32>
    %556 = vector.extract_strided_slice %550 {offsets = [0, 160], sizes = [2, 32], strides = [1, 1]} : vector<2x256xf32> to vector<2x32xf32>
    %557 = vector.extract_strided_slice %550 {offsets = [0, 192], sizes = [2, 32], strides = [1, 1]} : vector<2x256xf32> to vector<2x32xf32>
    %558 = vector.extract_strided_slice %550 {offsets = [0, 224], sizes = [2, 32], strides = [1, 1]} : vector<2x256xf32> to vector<2x32xf32>
    %559 = arith.mulf %552, %529 : vector<2x32xf32>
    %560 = arith.mulf %551, %553 : vector<2x32xf32>
    %561 = arith.addf %559, %560 : vector<2x32xf32>
    %562 = arith.mulf %556, %532 : vector<2x32xf32>
    %563 = arith.mulf %555, %557 : vector<2x32xf32>
    %564 = arith.addf %562, %563 : vector<2x32xf32>
    %565 = math.tanh %561 : vector<2x32xf32>
    %566 = arith.mulf %554, %565 : vector<2x32xf32>
    %567 = math.tanh %564 : vector<2x32xf32>
    %568 = arith.mulf %558, %567 : vector<2x32xf32>
    %569 = tpu.concatenate %566, %568 in 1 : vector<2x32xf32>, vector<2x32xf32> -> vector<2x64xf32>
    %570 = vector.extract_strided_slice %341 {offsets = [14, 0], sizes = [2, 128], strides = [1, 1]} : vector<16x256xf32> to vector<2x128xf32>
    %571 = vector.extract_strided_slice %341 {offsets = [0, 128], sizes = [2, 128], strides = [1, 1]} : vector<16x256xf32> to vector<2x128xf32>
    %572 = tpu.concatenate %570, %571 in 1 : vector<2x128xf32>, vector<2x128xf32> -> vector<2x256xf32>
    %573 = arith.truncf %569 : vector<2x64xf32> to vector<2x64xbf16>
    %cst_69 = arith.constant dense<0.000000e+00> : vector<2x256xf32>
    %574 = tpu.matmul %573, %342, %cst_69 {dimension_numbers = #tpu.dot_dimension_numbers<[1], [0], [0], [1], [0, 0, 1, 1], [], []>} : vector<2x64xbf16>, vector<64x256xbf16>, vector<2x256xf32> -> vector<2x256xf32>
    %575 = arith.addf %572, %574 : vector<2x256xf32>
    %576 = math.tanh %575 : vector<2x256xf32>
    %577 = arith.negf %575 : vector<2x256xf32>
    %578 = math.exp %577 : vector<2x256xf32>
    %cst_70 = arith.constant 1.000000e+00 : f32
    %579 = vector.broadcast %cst_70 : f32 to vector<2x256xf32>
    %580 = arith.addf %579, %578 : vector<2x256xf32>
    %581 = arith.divf %579, %580 : vector<2x256xf32>
    %582 = arith.select %61, %576, %581 : vector<2x256xi1>, vector<2x256xf32>
    %583 = vector.extract_strided_slice %582 {offsets = [0, 0], sizes = [2, 32], strides = [1, 1]} : vector<2x256xf32> to vector<2x32xf32>
    %584 = vector.extract_strided_slice %582 {offsets = [0, 32], sizes = [2, 32], strides = [1, 1]} : vector<2x256xf32> to vector<2x32xf32>
    %585 = vector.extract_strided_slice %582 {offsets = [0, 64], sizes = [2, 32], strides = [1, 1]} : vector<2x256xf32> to vector<2x32xf32>
    %586 = vector.extract_strided_slice %582 {offsets = [0, 96], sizes = [2, 32], strides = [1, 1]} : vector<2x256xf32> to vector<2x32xf32>
    %587 = vector.extract_strided_slice %582 {offsets = [0, 128], sizes = [2, 32], strides = [1, 1]} : vector<2x256xf32> to vector<2x32xf32>
    %588 = vector.extract_strided_slice %582 {offsets = [0, 160], sizes = [2, 32], strides = [1, 1]} : vector<2x256xf32> to vector<2x32xf32>
    %589 = vector.extract_strided_slice %582 {offsets = [0, 192], sizes = [2, 32], strides = [1, 1]} : vector<2x256xf32> to vector<2x32xf32>
    %590 = vector.extract_strided_slice %582 {offsets = [0, 224], sizes = [2, 32], strides = [1, 1]} : vector<2x256xf32> to vector<2x32xf32>
    %591 = arith.mulf %584, %561 : vector<2x32xf32>
    %592 = arith.mulf %583, %585 : vector<2x32xf32>
    %593 = arith.addf %591, %592 : vector<2x32xf32>
    %594 = arith.mulf %588, %564 : vector<2x32xf32>
    %595 = arith.mulf %587, %589 : vector<2x32xf32>
    %596 = arith.addf %594, %595 : vector<2x32xf32>
    %597 = math.tanh %593 : vector<2x32xf32>
    %598 = arith.mulf %586, %597 : vector<2x32xf32>
    %599 = math.tanh %596 : vector<2x32xf32>
    %600 = arith.mulf %590, %599 : vector<2x32xf32>
    %601 = tpu.concatenate %374, %600 in 1 : vector<2x32xf32>, vector<2x32xf32> -> vector<2x64xf32>
    %602 = tpu.concatenate %406, %568 in 1 : vector<2x32xf32>, vector<2x32xf32> -> vector<2x64xf32>
    %603 = tpu.concatenate %438, %536 in 1 : vector<2x32xf32>, vector<2x32xf32> -> vector<2x64xf32>
    %604 = tpu.concatenate %470, %504 in 1 : vector<2x32xf32>, vector<2x32xf32> -> vector<2x64xf32>
    %605 = tpu.concatenate %502, %472 in 1 : vector<2x32xf32>, vector<2x32xf32> -> vector<2x64xf32>
    %606 = tpu.concatenate %534, %440 in 1 : vector<2x32xf32>, vector<2x32xf32> -> vector<2x64xf32>
    %607 = tpu.concatenate %566, %408 in 1 : vector<2x32xf32>, vector<2x32xf32> -> vector<2x64xf32>
    %608 = tpu.concatenate %598, %376 in 1 : vector<2x32xf32>, vector<2x32xf32> -> vector<2x64xf32>
    %609 = tpu.concatenate %601, %602, %603, %604, %605, %606, %607, %608 in 0 : vector<2x64xf32>, vector<2x64xf32>, vector<2x64xf32>, vector<2x64xf32>, vector<2x64xf32>, vector<2x64xf32>, vector<2x64xf32>, vector<2x64xf32> -> vector<16x64xf32>
    %610 = arith.truncf %609 : vector<16x64xf32> to vector<16x64xbf16>
    %c0_71 = arith.constant 0 : index
    %c0_72 = arith.constant 0 : index
    %611 = vector.load %arg14[%c0_71, %c0_72] : memref<64x32xbf16, #tpu.memory_space<vmem>>, vector<64x32xbf16>
    %cst_73 = arith.constant dense<0.000000e+00> : vector<16x32xf32>
    %612 = tpu.matmul %610, %611, %cst_73 {dimension_numbers = #tpu.dot_dimension_numbers<[1], [0], [0], [1], [0, 0, 1, 1], [], []>} : vector<16x64xbf16>, vector<64x32xbf16>, vector<16x32xf32> -> vector<16x32xf32>
    %c0_74 = arith.constant 0 : index
    %c0_75 = arith.constant 0 : index
    %613 = vector.load %arg15[%c0_74, %c0_75] : memref<1x32xf32, #tpu.memory_space<vmem>>, vector<1x32xf32>
    %614 = vector.broadcast %613 : vector<1x32xf32> to vector<16x32xf32>
    %615 = arith.addf %612, %614 : vector<16x32xf32>
    %cst_76 = arith.constant 0.000000e+00 : f32
    %616 = vector.broadcast %cst_76 : f32 to vector<16x32xf32>
    %617 = arith.maximumf %615, %616 : vector<16x32xf32>
    %618 = arith.truncf %617 : vector<16x32xf32> to vector<16x32xbf16>
    %c0_77 = arith.constant 0 : index
    %c0_78 = arith.constant 0 : index
    %619 = vector.load %arg16[%c0_77, %c0_78] : memref<32x9xbf16, #tpu.memory_space<vmem>>, vector<32x9xbf16>
    %cst_79 = arith.constant dense<0.000000e+00> : vector<16x9xf32>
    %620 = tpu.matmul %618, %619, %cst_79 {dimension_numbers = #tpu.dot_dimension_numbers<[1], [0], [0], [1], [0, 0, 1, 1], [], []>} : vector<16x32xbf16>, vector<32x9xbf16>, vector<16x9xf32> -> vector<16x9xf32>
    %c0_80 = arith.constant 0 : index
    %c0_81 = arith.constant 0 : index
    %621 = vector.load %arg17[%c0_80, %c0_81] : memref<1x9xf32, #tpu.memory_space<vmem>>, vector<1x9xf32>
    %622 = vector.broadcast %621 : vector<1x9xf32> to vector<16x9xf32>
    %623 = arith.addf %620, %622 : vector<16x9xf32>
    %c0_82 = arith.constant 0 : index
    %c0_83 = arith.constant 0 : index
    %624 = vector.load %arg18[%c0_82, %c0_83] : memref<16x9xf32, #tpu.memory_space<vmem>>, vector<16x9xf32>
    tpu.vector_store %arg18[%c0_82, %c0_83], %623 {strides = array<i32>} : memref<16x9xf32, #tpu.memory_space<vmem>>, vector<16x9xf32>,
    return
  }
  func.func @transform_0(%arg0: i32) -> (i32, i32) {
    %c0_i32 = arith.constant 0 : i32
    %c0_i32_0 = arith.constant 0 : i32
    %c0_i32_1 = arith.constant 0 : i32
    return %c0_i32, %c0_i32_0 : i32, i32
  }
  func.func @transform_1(%arg0: i32) -> (i32, i32) {
    %c0_i32 = arith.constant 0 : i32
    %c0_i32_0 = arith.constant 0 : i32
    %c0_i32_1 = arith.constant 0 : i32
    return %c0_i32, %c0_i32_0 : i32, i32
  }
  func.func @transform_2(%arg0: i32) -> (i32, i32) {
    %c0_i32 = arith.constant 0 : i32
    %c0_i32_0 = arith.constant 0 : i32
    %c0_i32_1 = arith.constant 0 : i32
    return %c0_i32, %c0_i32_0 : i32, i32
  }
  func.func @transform_3(%arg0: i32) -> (i32, i32) {
    %c0_i32 = arith.constant 0 : i32
    %c0_i32_0 = arith.constant 0 : i32
    %c0_i32_1 = arith.constant 0 : i32
    return %c0_i32, %c0_i32_0 : i32, i32
  }
  func.func @transform_4(%arg0: i32) -> (i32, i32) {
    %c0_i32 = arith.constant 0 : i32
    %c0_i32_0 = arith.constant 0 : i32
    %c0_i32_1 = arith.constant 0 : i32
    return %c0_i32, %c0_i32_0 : i32, i32
  }
  func.func @transform_5(%arg0: i32) -> (i32, i32) {
    %c0_i32 = arith.constant 0 : i32
    %c0_i32_0 = arith.constant 0 : i32
    %c0_i32_1 = arith.constant 0 : i32
    return %c0_i32, %c0_i32_0 : i32, i32
  }
  func.func @transform_6(%arg0: i32) -> (i32, i32) {
    %c0_i32 = arith.constant 0 : i32
    %c0_i32_0 = arith.constant 0 : i32
    %c0_i32_1 = arith.constant 0 : i32
    return %c0_i32, %c0_i32_0 : i32, i32
  }
  func.func @transform_7(%arg0: i32) -> (i32, i32) {
    %c0_i32 = arith.constant 0 : i32
    %c0_i32_0 = arith.constant 0 : i32
    %c0_i32_1 = arith.constant 0 : i32
    return %c0_i32, %c0_i32_0 : i32, i32
  }
  func.func @transform_8(%arg0: i32) -> (i32, i32) {
    %c0_i32 = arith.constant 0 : i32
    %c0_i32_0 = arith.constant 0 : i32
    %c0_i32_1 = arith.constant 0 : i32
    return %c0_i32, %c0_i32_0 : i32, i32
  }
  func.func @transform_9(%arg0: i32) -> (i32, i32) {
    %c0_i32 = arith.constant 0 : i32
    %c0_i32_0 = arith.constant 0 : i32
    %c0_i32_1 = arith.constant 0 : i32
    return %c0_i32, %c0_i32_0 : i32, i32
  }
  func.func @transform_10(%arg0: i32) -> (i32, i32) {
    %c0_i32 = arith.constant 0 : i32
    %c0_i32_0 = arith.constant 0 : i32
    %c0_i32_1 = arith.constant 0 : i32
    return %c0_i32, %c0_i32_0 : i32, i32
  }
  func.func @transform_11(%arg0: i32) -> (i32, i32) {
    %c0_i32 = arith.constant 0 : i32
    %c0_i32_0 = arith.constant 0 : i32
    %c0_i32_1 = arith.constant 0 : i32
    return %c0_i32, %c0_i32_0 : i32, i32
  }
  func.func @transform_12(%arg0: i32) -> (i32, i32) {
    %c0_i32 = arith.constant 0 : i32
    %c0_i32_0 = arith.constant 0 : i32
    %c0_i32_1 = arith.constant 0 : i32
    return %c0_i32, %c0_i32_0 : i32, i32
  }
  func.func @transform_13(%arg0: i32) -> (i32, i32) {
    %c0_i32 = arith.constant 0 : i32
    %c0_i32_0 = arith.constant 0 : i32
    %c0_i32_1 = arith.constant 0 : i32
    return %c0_i32, %c0_i32_0 : i32, i32
  }
  func.func @transform_14(%arg0: i32) -> (i32, i32) {
    %c0_i32 = arith.constant 0 : i32
    %c0_i32_0 = arith.constant 0 : i32
    %c0_i32_1 = arith.constant 0 : i32
    return %c0_i32, %c0_i32_0 : i32, i32
  }
  func.func @transform_15(%arg0: i32) -> (i32, i32) {
    %c0_i32 = arith.constant 0 : i32
    %c0_i32_0 = arith.constant 0 : i32
    %c0_i32_1 = arith.constant 0 : i32
    return %c0_i32, %c0_i32_0 : i32, i32
  }
  func.func @transform_16(%arg0: i32) -> (i32, i32) {
    %c0_i32 = arith.constant 0 : i32
    %c0_i32_0 = arith.constant 0 : i32
    %c0_i32_1 = arith.constant 0 : i32
    return %c0_i32, %c0_i32_0 : i32, i32
  }
  func.func @transform_17(%arg0: i32) -> (i32, i32) {
    %c0_i32 = arith.constant 0 : i32
    %c0_i32_0 = arith.constant 0 : i32
    %c0_i32_1 = arith.constant 0 : i32
    return %c0_i32, %c0_i32_0 : i32, i32
  }
}

</mosaic_0001>

<bundles_post_ra>
// kernel: _lambda_.1
= control target key start
LH: loop header
LB: loop body
LE: loop exit
PB: predicated region body
PF: predicated region fallthrough
CT: control target
= control target key end

     0   :  { %vm168_vm0 = vcmask 1042432   ;;  %v5093_v0 = vmov 0.0   ;;  %vm5094_vm1 = vmmov 0   ;;  %vm116_vm2 = vcmask 48128   ;;  %s5095_s18 = smov 16   ;;  %s6872_s1 = inlined_call_operand.vmem [shape: bf16[6,16], index: 1, kind: input, shape index: {}]   ;;  %s6873_s0 = inlined_call_operand.vmem [shape: f32[272,6], index: 0, kind: input, shape index: {}]   ;;  %s6874_s2 = inlined_call_operand.vmem [shape: f32[1,16], index: 2, kind: input, shape index: {}]   ;;  %s6875_s3 = inlined_call_operand.vmem [shape: bf16[48,32], index: 3, kind: input, shape index: {}]   ;;  %s6876_s5 = inlined_call_operand.vmem [shape: bf16[544,128], index: 5, kind: input, shape index: {}]   ;;  %s6877_s4 = inlined_call_operand.vmem [shape: f32[1,32], index: 4, kind: input, shape index: {}]   ;;  %s6878_s7 = inlined_call_operand.vmem [shape: bf16[128,256], index: 7, kind: input, shape index: {}]   ;;  %s6879_s8 = inlined_call_operand.vmem [shape: bf16[64,256], index: 8, kind: input, shape index: {}]   ;;  %s6880_s6 = inlined_call_operand.vmem [shape: f32[1,128], index: 6, kind: input, shape index: {}]   ;;  %s6881_s9 = inlined_call_operand.vmem [shape: f32[1,256], index: 9, kind: input, shape index: {}]   ;;  %s6882_s10 = inlined_call_operand.vmem [shape: bf16[64,256], index: 10, kind: input, shape index: {}]   ;;  %s6883_s11 = inlined_call_operand.vmem [shape: bf16[64,256], index: 11, kind: input, shape index: {}]   ;;  %s6884_s12 = inlined_call_operand.vmem [shape: f32[1,256], index: 12, kind: input, shape index: {}]   ;;  %s6885_s13 = inlined_call_operand.vmem [shape: bf16[64,32], index: 13, kind: input, shape index: {}]   ;;  %s6886_s15 = inlined_call_operand.vmem [shape: bf16[32,9], index: 15, kind: input, shape index: {}]   ;;  %s6887_s14 = inlined_call_operand.vmem [shape: f32[1,32], index: 14, kind: input, shape index: {}]   ;;  %s6888_s16 = inlined_call_operand.vmem [shape: f32[1,9], index: 16, kind: input, shape index: {}]   ;;  %s6889_s17 = inlined_call_operand.vmem [shape: f32[16,9], index: 17, kind: output, shape index: {}]  }
   0x1   :  { %6911 = sst [smem:[#allocation2_spill]] %s6872_s1  ;;  %4290 = vmatprep.subr.bf16.mxu0 %v5093_v0  ;;  %4292 = vmatprep.mubr.msk.bf16.mxu0 %vm5094_vm1, %v5093_v0  ;;  %v4734_v54 = vld [vmem:[%s6875_s3] sm:$0xff]   ;;  %v4735_v57 = vld [vmem:[%s6875_s3 + $0x8] sm:$0xff]   ;;  %vm611_vm3 = vcmask 130048   ;;  %vm646_vm4 = vcmask 261120   ;;  %vm729_vm5 = vcmask 392192  }
   0x2   :  { %6912 = sst [smem:[#allocation3_spill]] %s6873_s0  ;;  %s6913_s26 = sld [smem:[#allocation2_spill]]  ;;  %4360 = vmatprep.subr.bf16.mxu1 %v5093_v0  ;;  %4366 = vmatprep.mubr.msk.bf16.mxu1 %vm5094_vm1, %v5093_v0  ;;  %v5356_v55 = vld [vmem:[%s6874_s2] ss:$0 sm:$0xff]  ;;  %vm1082_vm6 = vcmask 523264   ;;  %vm1085_vm7 = vcmask 785408  }
   0x3   :  { %s6914_s29 = sld [smem:[#allocation3_spill]]  ;;  %4361 = vmatpush3.bf16.msra.mxu1 %v4734_v54  ;;  %s5097_s2 = smov 64   ;;  %vm2716_vm14 = vcmask 1041408   ;;  %vm2718_vm15 = vcmask 1043456  }
   0x4   :  { %4362 = vmatprep.subr.bf16.mxu1 %v5093_v0 }
   0x7   :  { %4363 = vmatpush3.bf16.msra.mxu1 %v4735_v57 }
   0x8   :  { %v108_v1 = vld [vmem:[%s6913_s26] sm:$0x7]  ;;  %4364 = vmatprep.subr.bf16.mxu1 %v5093_v0 }
   0x9   :  { %v57_v2 = vld [vmem:[%s6914_s29] sm:$0xff]  ;;  %v58_v3 = vld [vmem:[%s6914_s29 + $0x8] sm:$0xff]  ;;  %v170_v4 = vsel %vm168_vm0, %v108_v1, 0  ;;  %v59_v6 = vld [vmem:[%s6914_s29 + $0x10] sm:$0xff]  ;;  %vm2720_vm0 = vcmask 1045504  }
   0xa   :  { %v91_v5 = vpack.c.bf16 %v58_v3, %v57_v2  ;;  %4291 = vmatpush3.bf16.msra.mxu0 %v170_v4  ;;  %v60_v7 = vld [vmem:[%s6914_s29 + $0x18] sm:$0xff]  ;;  %v61_v9 = vld [vmem:[%s6914_s29 + $0x20] sm:$0xff]  ;;  %v62_v10 = vld [vmem:[%s6914_s29 + $0x28] sm:$0xff] }
   0xb   :  { %v92_v8 = vpack.c.bf16 %v60_v7, %v59_v6  ;;  %v93_v11 = vpack.c.bf16 %v62_v10, %v61_v9  ;;  %v63_v12 = vld [vmem:[%s6914_s29 + $0x30] sm:$0xff]  ;;  %v64_v13 = vld [vmem:[%s6914_s29 + $0x38] sm:$0xff]  ;;  %v65_v15 = vld [vmem:[%s6914_s29 + $0x40] sm:$0xff] }
   0xc   :  { %v94_v14 = vpack.c.bf16 %v64_v13, %v63_v12  ;;  %v66_v16 = vld [vmem:[%s6914_s29 + $0x48] sm:$0xff]  ;;  %v67_v18 = vld [vmem:[%s6914_s29 + $0x50] sm:$0xff]  ;;  %v68_v19 = vld [vmem:[%s6914_s29 + $0x58] sm:$0xff] }
   0xd   :  { %4293 = vmatmul.mubr.msk.bf16.vlgmr.msra.gmra.mrb[0].mxu0 %vm116_vm2, %v91_v5  ;;  %v95_v17 = vpack.c.bf16 %v66_v16, %v65_v15  ;;  %v96_v20 = vpack.c.bf16 %v68_v19, %v67_v18  ;;  %v69_v21 = vld [vmem:[%s6914_s29 + $0x60] sm:$0xff]  ;;  %v70_v22 = vld [vmem:[%s6914_s29 + $0x68] sm:$0xff]  ;;  %v71_v24 = vld [vmem:[%s6914_s29 + $0x70] sm:$0xff] }
   0xe   :  { %4296 = vmatprep.mubr.msk.bf16.mxu0 %vm5094_vm1, %v5093_v0  ;;  %v97_v23 = vpack.c.bf16 %v70_v22, %v69_v21  ;;  %v72_v25 = vld [vmem:[%s6914_s29 + $0x78] sm:$0xff]  ;;  %v73_v27 = vld [vmem:[%s6914_s29 + $0x80] sm:$0xff]  ;;  %v74_v28 = vld [vmem:[%s6914_s29 + $0x88] sm:$0xff] }
   0xf   :  { %v98_v26 = vpack.c.bf16 %v72_v25, %v71_v24  ;;  %v99_v29 = vpack.c.bf16 %v74_v28, %v73_v27  ;;  %v75_v30 = vld [vmem:[%s6914_s29 + $0x90] sm:$0xff]  ;;  %v76_v31 = vld [vmem:[%s6914_s29 + $0x98] sm:$0xff]  ;;  %v77_v33 = vld [vmem:[%s6914_s29 + $0xa0] sm:$0xff] }
  0x10   :  { %v100_v32 = vpack.c.bf16 %v76_v31, %v75_v30  ;;  %v78_v34 = vld [vmem:[%s6914_s29 + $0xa8] sm:$0xff]  ;;  %v79_v36 = vld [vmem:[%s6914_s29 + $0xb0] sm:$0xff]  ;;  %v80_v37 = vld [vmem:[%s6914_s29 + $0xb8] sm:$0xff] }
  0x11   :  { %v101_v35 = vpack.c.bf16 %v78_v34, %v77_v33  ;;  %v102_v38 = vpack.c.bf16 %v80_v37, %v79_v36  ;;  %v81_v39 = vld [vmem:[%s6914_s29 + $0xc0] sm:$0xff]  ;;  %v82_v40 = vld [vmem:[%s6914_s29 + $0xc8] sm:$0xff]  ;;  %v83_v42 = vld [vmem:[%s6914_s29 + $0xd0] sm:$0xff] }
  0x12   :  { %v103_v41 = vpack.c.bf16 %v82_v40, %v81_v39  ;;  %v84_v43 = vld [vmem:[%s6914_s29 + $0xd8] sm:$0xff]  ;;  %v85_v45 = vld [vmem:[%s6914_s29 + $0xe0] sm:$0xff]  ;;  %v86_v46 = vld [vmem:[%s6914_s29 + $0xe8] sm:$0xff] }
  0x13   :  { %v104_v44 = vpack.c.bf16 %v84_v43, %v83_v42  ;;  %v105_v47 = vpack.c.bf16 %v86_v46, %v85_v45  ;;  %v87_v48 = vld [vmem:[%s6914_s29 + $0xf0] sm:$0xff]  ;;  %v88_v49 = vld [vmem:[%s6914_s29 + $0xf8] sm:$0xff]  ;;  %v89_v51 = vld [vmem:[%s6914_s29 + $0x100] sm:$0xff] }
  0x14   :  { %v106_v50 = vpack.c.bf16 %v88_v49, %v87_v48  ;;  %v90_v52 = vld [vmem:[%s6914_s29 + $0x108] sm:$0xff]  ;;  %v4736_v2 = vld [vmem:[%s6875_s3 + $0x10] sm:$0xff]   ;;  %s5096_s3 = smov 32   ;;  %s5098_s29 = smov 96  }
  0x15   :  { %4297 = vmatmul.mubr.msk.bf16.gmra.mrb[4].mxu0 %vm116_vm2, %v92_v8  ;;  %v107_v53 = vpack.c.bf16 %v90_v52, %v89_v51  ;;  %4365 = vmatpush3.bf16.msra.mxu1 %v4736_v2 }
  0x16   :  { %4300 = vmatprep.mubr.msk.bf16.mxu0 %vm5094_vm1, %v5093_v0 }
  0x1d   :  { %4301 = vmatmul.mubr.msk.bf16.gmra.mrb[8].mxu0 %vm116_vm2, %v93_v11 }
  0x1e   :  { %4304 = vmatprep.mubr.msk.bf16.mxu0 %vm5094_vm1, %v5093_v0 }
  0x25   :  { %4305 = vmatmul.mubr.msk.bf16.gmra.mrb[12].mxu0 %vm116_vm2, %v94_v14 }
  0x26   :  { %4308 = vmatprep.mubr.msk.bf16.mxu0 %vm5094_vm1, %v5093_v0 }
  0x2d   :  { %4309 = vmatmul.mubr.msk.bf16.gmra.mrb[16].mxu0 %vm116_vm2, %v95_v17 }
  0x2e   :  { %4312 = vmatprep.mubr.msk.bf16.mxu0 %vm5094_vm1, %v5093_v0 }
  0x35   :  { %4313 = vmatmul.mubr.msk.bf16.gmra.mrb[20].mxu0 %vm116_vm2, %v96_v20 }
  0x36   :  { %4316 = vmatprep.mubr.msk.bf16.mxu0 %vm5094_vm1, %v5093_v0 }
  0x3d   :  { %4317 = vmatmul.mubr.msk.bf16.gmra.mrb[24].mxu0 %vm116_vm2, %v97_v23 }
  0x3e   :  { %4320 = vmatprep.mubr.msk.bf16.mxu0 %vm5094_vm1, %v5093_v0 }
  0x45   :  { %4321 = vmatmul.mubr.msk.bf16.gmra.mrb[28].mxu0 %vm116_vm2, %v98_v26 }
  0x46   :  { %4324 = vmatprep.mubr.msk.bf16.mxu0 %vm5094_vm1, %v5093_v0 }
  0x4d   :  { %4325 = vmatmul.mubr.msk.bf16.gmra.mrb[32].mxu0 %vm116_vm2, %v99_v29 }
  0x4e   :  { %4328 = vmatprep.mubr.msk.bf16.mxu0 %vm5094_vm1, %v5093_v0 }
  0x55   :  { %4329 = vmatmul.mubr.msk.bf16.gmra.mrb[36].mxu0 %vm116_vm2, %v100_v32 }
  0x56   :  { %4332 = vmatprep.mubr.msk.bf16.mxu0 %vm5094_vm1, %v5093_v0 }
  0x5d   :  { %4333 = vmatmul.mubr.msk.bf16.gmra.mrb[40].mxu0 %vm116_vm2, %v101_v35 }
  0x5e   :  { %4336 = vmatprep.mubr.msk.bf16.mxu0 %vm5094_vm1, %v5093_v0 }
  0x65   :  { %4337 = vmatmul.mubr.msk.bf16.gmra.mrb[44].mxu0 %vm116_vm2, %v102_v38 }
  0x66   :  { %4340 = vmatprep.mubr.msk.bf16.mxu0 %vm5094_vm1, %v5093_v0 }
  0x6d   :  { %4341 = vmatmul.mubr.msk.bf16.gmra.mrb[48].mxu0 %vm116_vm2, %v103_v41 }
  0x6e   :  { %4344 = vmatprep.mubr.msk.bf16.mxu0 %vm5094_vm1, %v5093_v0 }
  0x75   :  { %4345 = vmatmul.mubr.msk.bf16.gmra.mrb[52].mxu0 %vm116_vm2, %v104_v44 }
  0x76   :  { %4348 = vmatprep.mubr.msk.bf16.mxu0 %vm5094_vm1, %v5093_v0 }
  0x7d   :  { %4349 = vmatmul.mubr.msk.bf16.gmra.mrb[56].mxu0 %vm116_vm2, %v105_v47 }
  0x7e   :  { %4352 = vmatprep.mubr.msk.bf16.mxu0 %vm5094_vm1, %v5093_v0 }
  0x85   :  { %4353 = vmatmul.mubr.msk.bf16.gmra.mrb[60].mxu0 %vm116_vm2, %v106_v50 }
  0x86   :  { %4356 = vmatprep.mubr.msk.bf16.mxu0 %vm5094_vm1, %v5093_v0 }
  0x8d   :  { %4357 = vmatmul.mubr.msk.bf16.gmra.mrb[64].mxu0 %vm116_vm2, %v107_v53 }
  0xe0   :  { %v206_v56 = vpop.f32.mrb[0].mxu0 }
  0xe1   :  { %v5363_v58 = vadd.f32 %v5356_v55, %v206_v56  ;;  %v4294_v59 = vpop.f32.mrb[1].mxu0 }
  0xe2   :  { %v209_v60 = vpop.f32.mrb[2].mxu0 }
  0xe3   :  { %v5366_v61 = vadd.f32 %v5356_v55, %v209_v60  ;;  %v4295_v62 = vpop.f32.mrb[3].mxu0  ;;  %v341_v63 = vmax.f32 %v5363_v58, 0.0 }
  0xe5   :  { %v342_v1 = vmax.f32 %v5366_v61, 0.0 }
  0xe7   :  { %v4469_v3 = vpack.i.bf16 %v342_v1, %v341_v63 }
  0xe8   :  { %v214_v4 = vpop.f32.mrb[4].mxu0 }
  0xe9   :  { %v5379_v5 = vadd.f32 %v5356_v55, %v214_v4  ;;  %4470 = vrot.lane.b32.xlu0 %v4469_v3, %s5095_s18  ;;  %v4298_v6 = vpop.f32.mrb[5].mxu0 }
  0xea   :  { %v217_v7 = vpop.f32.mrb[6].mxu0 }
  0xeb   :  { %v5383_v8 = vadd.f32 %v5356_v55, %v217_v7  ;;  %v4299_v9 = vpop.f32.mrb[7].mxu0  ;;  %v343_v10 = vmax.f32 %v5379_v5, 0.0 }
  0xed   :  { %v344_v11 = vmax.f32 %v5383_v8, 0.0 }
  0xef   :  { %v4479_v12 = vpack.i.bf16 %v344_v11, %v343_v10 }
  0xf0   :  { %v222_v13 = vpop.f32.mrb[8].mxu0 }
  0xf1   :  { %v5392_v14 = vadd.f32 %v5356_v55, %v222_v13  ;;  %4480 = vrot.lane.b32.xlu1 %v4479_v12, %s5095_s18  ;;  %4475 = vrot.lane.b32.xlu0 %v4479_v12, %s5096_s3  ;;  %v4302_v15 = vpop.f32.mrb[9].mxu0 }
  0xf2   :  { %v225_v16 = vpop.f32.mrb[10].mxu0 }
  0xf3   :  { %v5397_v17 = vadd.f32 %v5356_v55, %v225_v16  ;;  %v4303_v18 = vpop.f32.mrb[11].mxu0  ;;  %v345_v19 = vmax.f32 %v5392_v14, 0.0 }
  0xf5   :  { %v346_v20 = vmax.f32 %v5397_v17, 0.0 }
  0xf7   :  { %v4489_v21 = vpack.i.bf16 %v346_v20, %v345_v19 }
  0xf8   :  { %v230_v22 = vpop.f32.mrb[12].mxu0 }
  0xf9   :  { %v5406_v23 = vadd.f32 %v5356_v55, %v230_v22  ;;  %4490 = vrot.lane.b32.xlu0 %v4489_v21, %s5095_s18  ;;  %4485 = vrot.lane.b32.xlu1 %v4489_v21, %s5096_s3  ;;  %v4306_v24 = vpop.f32.mrb[13].mxu0 }
  0xfa   :  { %v233_v25 = vpop.f32.mrb[14].mxu0 }
  0xfb   :  { %v5411_v26 = vadd.f32 %v5356_v55, %v233_v25  ;;  %v4307_v27 = vpop.f32.mrb[15].mxu0  ;;  %v347_v28 = vmax.f32 %v5406_v23, 0.0 }
  0xfd   :  { %v348_v29 = vmax.f32 %v5411_v26, 0.0 }
  0xff   :  { %v4499_v30 = vpack.i.bf16 %v348_v29, %v347_v28 }
 0x100   :  { %v238_v31 = vpop.f32.mrb[16].mxu0 }
 0x101   :  { %v5420_v32 = vadd.f32 %v5356_v55, %v238_v31  ;;  %4500 = vrot.lane.b32.xlu0 %v4499_v30, %s5095_s18  ;;  %4495 = vrot.lane.b32.xlu1 %v4499_v30, %s5096_s3  ;;  %v4310_v33 = vpop.f32.mrb[17].mxu0 }
 0x102   :  { %v241_v34 = vpop.f32.mrb[18].mxu0 }
 0x103   :  { %v5425_v35 = vadd.f32 %v5356_v55, %v241_v34  ;;  %v4311_v36 = vpop.f32.mrb[19].mxu0  ;;  %v349_v37 = vmax.f32 %v5420_v32, 0.0 }
 0x105   :  { %v350_v38 = vmax.f32 %v5425_v35, 0.0 }
 0x107   :  { %v4509_v39 = vpack.i.bf16 %v350_v38, %v349_v37 }
 0x108   :  { %v246_v40 = vpop.f32.mrb[20].mxu0 }
 0x109   :  { %v5434_v41 = vadd.f32 %v5356_v55, %v246_v40  ;;  %4510 = vrot.lane.b32.xlu0 %v4509_v39, %s5095_s18  ;;  %4505 = vrot.lane.b32.xlu1 %v4509_v39, %s5096_s3  ;;  %v4314_v42 = vpop.f32.mrb[21].mxu0 }
 0x10a   :  { %v249_v43 = vpop.f32.mrb[22].mxu0 }
 0x10b   :  { %v5439_v44 = vadd.f32 %v5356_v55, %v249_v43  ;;  %v4315_v45 = vpop.f32.mrb[23].mxu0  ;;  %v351_v46 = vmax.f32 %v5434_v41, 0.0 }
 0x10d   :  { %v352_v47 = vmax.f32 %v5439_v44, 0.0 }
 0x10f   :  { %v4519_v48 = vpack.i.bf16 %v352_v47, %v351_v46 }
 0x110   :  { %v254_v49 = vpop.f32.mrb[24].mxu0 }
 0x111   :  { %v5448_v50 = vadd.f32 %v5356_v55, %v254_v49  ;;  %4520 = vrot.lane.b32.xlu0 %v4519_v48, %s5095_s18  ;;  %4515 = vrot.lane.b32.xlu1 %v4519_v48, %s5096_s3  ;;  %v4318_v51 = vpop.f32.mrb[25].mxu0 }
 0x112   :  { %v257_v52 = vpop.f32.mrb[26].mxu0 }
 0x113   :  { %v5453_v53 = vadd.f32 %v5356_v55, %v257_v52  ;;  %v4319_v54 = vpop.f32.mrb[27].mxu0  ;;  %v6909_v56 = vmax.f32 %v5448_v50, 0.0 }
 0x115   :  { %v6910_v57 = vmax.f32 %v5453_v53, 0.0  ;;  %v6915_v41 = vmax.f32 %v5453_v53, 0.0 }
 0x117   :  { %v4529_v59 = vpack.i.bf16 %v6910_v57, %v6909_v56 }
 0x118   :  { %v262_v60 = vpop.f32.mrb[28].mxu0 }
 0x119   :  { %v5462_v62 = vadd.f32 %v5356_v55, %v262_v60  ;;  %4530 = vrot.lane.b32.xlu0 %v4529_v59, %s5095_s18  ;;  %4525 = vrot.lane.b32.xlu1 %v4529_v59, %s5096_s3  ;;  %v4322_v2 = vpop.f32.mrb[29].mxu0 }
 0x11a   :  { %v265_v3 = vpop.f32.mrb[30].mxu0 }
 0x11b   :  { %v5467_v4 = vadd.f32 %v5356_v55, %v265_v3  ;;  %v4323_v6 = vpop.f32.mrb[31].mxu0  ;;  %v6905_v7 = vmax.f32 %v5462_v62, 0.0 }
 0x11d   :  { %v6908_v9 = vmax.f32 %v5467_v4, 0.0 }
 0x11f   :  { %v4539_v12 = vpack.i.bf16 %v6908_v9, %v6905_v7 }
 0x120   :  { %v270_v13 = vpop.f32.mrb[32].mxu0 }
 0x121   :  { %v5476_v15 = vadd.f32 %v5356_v55, %v270_v13  ;;  %4540 = vrot.lane.b32.xlu0 %v4539_v12, %s5095_s18  ;;  %4535 = vrot.lane.b32.xlu1 %v4539_v12, %s5096_s3  ;;  %v4326_v16 = vpop.f32.mrb[33].mxu0 }
 0x122   :  { %v273_v18 = vpop.f32.mrb[34].mxu0 }
 0x123   :  { %v5481_v21 = vadd.f32 %v5356_v55, %v273_v18  ;;  %v4327_v22 = vpop.f32.mrb[35].mxu0  ;;  %v6903_v24 = vmax.f32 %v5476_v15, 0.0 }
 0x125   :  { %v6904_v25 = vmax.f32 %v5481_v21, 0.0 }
 0x127   :  { %v4549_v27 = vpack.i.bf16 %v6904_v25, %v6903_v24 }
 0x128   :  { %v278_v30 = vpop.f32.mrb[36].mxu0 }
 0x129   :  { %v5490_v31 = vadd.f32 %v5356_v55, %v278_v30  ;;  %4550 = vrot.lane.b32.xlu0 %v4549_v27, %s5095_s18  ;;  %4545 = vrot.lane.b32.xlu1 %v4549_v27, %s5096_s3  ;;  %v4330_v33 = vpop.f32.mrb[37].mxu0 }
 0x12a   :  { %v281_v34 = vpop.f32.mrb[38].mxu0 }
 0x12b   :  { %v5495_v36 = vadd.f32 %v5356_v55, %v281_v34  ;;  %v4331_v39 = vpop.f32.mrb[39].mxu0  ;;  %v6901_v40 = vmax.f32 %v5490_v31, 0.0 }
 0x12d   :  { %v6902_v42 = vmax.f32 %v5495_v36, 0.0 }
 0x12f   :  { %v4559_v43 = vpack.i.bf16 %v6902_v42, %v6901_v40 }
 0x130   :  { %v286_v45 = vpop.f32.mrb[40].mxu0 }
 0x131   :  { %v5504_v48 = vadd.f32 %v5356_v55, %v286_v45  ;;  %4560 = vrot.lane.b32.xlu0 %v4559_v43, %s5095_s18  ;;  %4555 = vrot.lane.b32.xlu1 %v4559_v43, %s5096_s3  ;;  %v4334_v49 = vpop.f32.mrb[41].mxu0 }
 0x132   :  { %v289_v51 = vpop.f32.mrb[42].mxu0 }
 0x133   :  { %v5509_v52 = vadd.f32 %v5356_v55, %v289_v51  ;;  %v4335_v54 = vpop.f32.mrb[43].mxu0  ;;  %v6897_v59 = vmax.f32 %v5504_v48, 0.0 }
 0x135   :  { %v6898_v60 = vmax.f32 %v5509_v52, 0.0 }
 0x137   :  { %v4569_v2 = vpack.i.bf16 %v6898_v60, %v6897_v59 }
 0x138   :  { %v294_v3 = vpop.f32.mrb[44].mxu0 }
 0x139   :  { %v5518_v6 = vadd.f32 %v5356_v55, %v294_v3  ;;  %4570 = vrot.lane.b32.xlu0 %v4569_v2, %s5095_s18  ;;  %4565 = vrot.lane.b32.xlu1 %v4569_v2, %s5096_s3  ;;  %v4338_v12 = vpop.f32.mrb[45].mxu0 }
 0x13a   :  { %v297_v13 = vpop.f32.mrb[46].mxu0 }
 0x13b   :  { %v5523_v16 = vadd.f32 %v5356_v55, %v297_v13  ;;  %v4339_v18 = vpop.f32.mrb[47].mxu0  ;;  %v6893_v22 = vmax.f32 %v5518_v6, 0.0 }
 0x13d   :  { %v6896_v27 = vmax.f32 %v5523_v16, 0.0 }
 0x13f   :  { %v4579_v30 = vpack.i.bf16 %v6896_v27, %v6893_v22 }
 0x140   :  { %v302_v33 = vpop.f32.mrb[48].mxu0 }
 0x141   :  { %v5532_v34 = vadd.f32 %v5356_v55, %v302_v33  ;;  %4580 = vrot.lane.b32.xlu0 %v4579_v30, %s5095_s18  ;;  %4575 = vrot.lane.b32.xlu1 %v4579_v30, %s5096_s3  ;;  %v4342_v39 = vpop.f32.mrb[49].mxu0 }
 0x142   :  { %v305_v43 = vpop.f32.mrb[50].mxu0 }
 0x143   :  { %v5537_v45 = vadd.f32 %v5356_v55, %v305_v43  ;;  %v4343_v49 = vpop.f32.mrb[51].mxu0  ;;  %v6891_v51 = vmax.f32 %v5532_v34, 0.0 }
 0x145   :  { %v6892_v54 = vmax.f32 %v5537_v45, 0.0 }
 0x147   :  { %v4589_v2 = vpack.i.bf16 %v6892_v54, %v6891_v51 }
 0x148   :  { %v310_v3 = vpop.f32.mrb[52].mxu0 }
 0x149   :  { %v5546_v12 = vadd.f32 %v5356_v55, %v310_v3  ;;  %4590 = vrot.lane.b32.xlu0 %v4589_v2, %s5095_s18  ;;  %4585 = vrot.lane.b32.xlu1 %v4589_v2, %s5096_s3  ;;  %v4346_v13 = vpop.f32.mrb[53].mxu0 }
 0x14a   :  { %v313_v18 = vpop.f32.mrb[54].mxu0 }
 0x14b   :  { %v5551_v30 = vadd.f32 %v5356_v55, %v313_v18  ;;  %v4347_v33 = vpop.f32.mrb[55].mxu0  ;;  %v6894_v39 = vmax.f32 %v5546_v12, 0.0 }
 0x14d   :  { %v6895_v43 = vmax.f32 %v5551_v30, 0.0 }
 0x14f   :  { %v4599_v49 = vpack.i.bf16 %v6895_v43, %v6894_v39 }
 0x150   :  { %v318_v3 = vpop.f32.mrb[56].mxu0 }
 0x151   :  { %v5560_v51 = vadd.f32 %v5356_v55, %v318_v3  ;;  %4600 = vrot.lane.b32.xlu0 %v4599_v49, %s5095_s18  ;;  %4595 = vrot.lane.b32.xlu1 %v4599_v49, %s5096_s3  ;;  %v4350_v2 = vpop.f32.mrb[57].mxu0 }
 0x152   :  { %v321_v13 = vpop.f32.mrb[58].mxu0 }
 0x153   :  { %v5565_v18 = vadd.f32 %v5356_v55, %v321_v13  ;;  %v4351_v33 = vpop.f32.mrb[59].mxu0  ;;  %v6899_v54 = vmax.f32 %v5560_v51, 0.0 }
 0x155   :  { %v6900_v22 = vmax.f32 %v5565_v18, 0.0 }
 0x157   :  { %v4609_v3 = vpack.i.bf16 %v6900_v22, %v6899_v54 }
 0x158   :  { %v326_v39 = vpop.f32.mrb[60].mxu0 }
 0x159   :  { %v5574_v43 = vadd.f32 %v5356_v55, %v326_v39  ;;  %4610 = vrot.lane.b32.xlu0 %v4609_v3, %s5095_s18  ;;  %4605 = vrot.lane.b32.xlu1 %v4609_v3, %s5096_s3  ;;  %v4354_v49 = vpop.f32.mrb[61].mxu0 }
 0x15a   :  { %v329_v2 = vpop.f32.mrb[62].mxu0 }
 0x15b   :  { %v5579_v13 = vadd.f32 %v5356_v55, %v329_v2  ;;  %v4355_v33 = vpop.f32.mrb[63].mxu0  ;;  %v6907_v27 = vmax.f32 %v5574_v43, 0.0  ;;  %v4471_v60 = vpop.permute.xlu0 %4470 }
 0x15c   :  { %v4473_v22 = vunpack.i.h.bf16 %v4471_v60  ;;  %v4472_v40 = vunpack.i.l.bf16 %v4471_v60 }
 0x15d   :  { %v6906_v59 = vmax.f32 %v5579_v13, 0.0 }
 0x15e   :  { %v612_v60 = vsel %vm611_vm3, 0.0, %v4472_v40 }
 0x15f   :  { %v4619_v39 = vpack.i.bf16 %v6906_v59, %v6907_v27  ;;  %v613_v59 = vsel %vm611_vm3, 0.0, %v4473_v22 }
 0x160   :  { %v334_v54 = vpop.f32.mrb[64].mxu0 }
 0x161   :  { %v335_v3 = vadd.f32 %v5356_v55, %v334_v54  ;;  %4620 = vrot.lane.b32.xlu0 %v4619_v39, %s5095_s18  ;;  %4615 = vrot.lane.b32.xlu1 %v4619_v39, %s5096_s3  ;;  %v4358_v49 = vpop.f32.mrb[65].mxu0 }
 0x162   :  { %v337_v2 = vpop.f32.mrb[66].mxu0 }
 0x163   :  { %v338_v33 = vadd.f32 %v5356_v55, %v337_v2  ;;  %v4476_v42 = vpop.permute.xlu0 %4475  ;;  %v4359_v7 = vpop.f32.mrb[67].mxu0  ;;  %v373_v27 = vmax.f32 %v335_v3, 0.0 }
 0x164   :  { %v4478_v24 = vunpack.i.h.bf16 %v4476_v42  ;;  %v4477_v25 = vunpack.i.l.bf16 %v4476_v42  ;;  %v4481_v9 = vpop.permute.xlu1 %4480 }
 0x165   :  { %v374_v54 = vmax.f32 %v338_v33, 0.0  ;;  %v4483_v55 = vunpack.i.h.bf16 %v4481_v9  ;;  %v4482_v2 = vunpack.i.l.bf16 %v4481_v9 }
 0x166   :  { %v648_v56 = vsel %vm646_vm4, %v613_v59, %v4478_v24  ;;  %v647_v39 = vsel %vm646_vm4, %v612_v60, %v4477_v25 }
 0x167   :  { %v4629_v49 = vpack.i.bf16 %v374_v54, %v373_v27  ;;  %v681_v57 = vpack.c.bf16 %v648_v56, %v647_v39  ;;  %v615_v24 = vsel %vm611_vm3, %v342_v1, %v4483_v55  ;;  %v614_v56 = vsel %vm611_vm3, %v341_v63, %v4482_v2 }
 0x169   :  { %4367 = vmatmul.mubr.msk.bf16.vlgmr.msra.gmra.mrb[0].mxu1 %vm729_vm5, %v681_v57  ;;  %4630 = vrot.lane.b32.xlu0 %v4629_v49, %s5095_s18 }
 0x16a   :  { %4625 = vrot.lane.b32.xlu1 %v4629_v49, %s5096_s3  ;;  %4370 = vmatprep.mubr.msk.bf16.mxu1 %vm5094_vm1, %v5093_v0 }
 0x16b   :  { %v4486_v7 = vpop.permute.xlu1 %4485  ;;  %v4491_v9 = vpop.permute.xlu0 %4490 }
 0x16c   :  { %v4488_v40 = vunpack.i.h.bf16 %v4486_v7  ;;  %v4487_v42 = vunpack.i.l.bf16 %v4486_v7  ;;  %v4493_v22 = vunpack.i.h.bf16 %v4491_v9  ;;  %v4492_v27 = vunpack.i.l.bf16 %v4491_v9 }
 0x16e   :  { %v650_v57 = vsel %vm646_vm4, %v615_v24, %v4488_v40  ;;  %v649_v25 = vsel %vm646_vm4, %v614_v56, %v4487_v42  ;;  %576 = vrot.lane.b32.xlu1 %v5093_v0, %s5096_s3  ;;  %v617_v63 = vsel %vm611_vm3, %v344_v11, %v4493_v22  ;;  %v616_v3 = vsel %vm611_vm3, %v343_v10, %v4492_v27 }
 0x16f   :  { %v682_v59 = vpack.c.bf16 %v650_v57, %v649_v25 }
 0x171   :  { %4371 = vmatmul.mubr.msk.bf16.gmra.mrb[4].mxu1 %vm729_vm5, %v682_v59 }
 0x172   :  { %4374 = vmatprep.mubr.msk.bf16.mxu1 %vm5094_vm1, %v5093_v0 }
 0x173   :  { %v4496_v61 = vpop.permute.xlu1 %4495  ;;  %v4501_v33 = vpop.permute.xlu0 %4500 }
 0x174   :  { %v4498_v58 = vunpack.i.h.bf16 %v4496_v61  ;;  %v4497_v1 = vunpack.i.l.bf16 %v4496_v61  ;;  %v4503_v49 = vunpack.i.h.bf16 %v4501_v33  ;;  %v4502_v55 = vunpack.i.l.bf16 %v4501_v33 }
 0x176   :  { %v652_v60 = vsel %vm646_vm4, %v617_v63, %v4498_v58  ;;  %v651_v54 = vsel %vm646_vm4, %v616_v3, %v4497_v1  ;;  %v619_v5 = vsel %vm611_vm3, %v346_v20, %v4503_v49  ;;  %v618_v10 = vsel %vm611_vm3, %v345_v19, %v4502_v55 }
 0x177   :  { %v683_v39 = vpack.c.bf16 %v652_v60, %v651_v54 }
 0x179   :  { %4375 = vmatmul.mubr.msk.bf16.gmra.mrb[8].mxu1 %vm729_vm5, %v683_v39 }
 0x17a   :  { %4378 = vmatprep.mubr.msk.bf16.mxu1 %vm5094_vm1, %v5093_v0 }
 0x17b   :  { %v4506_v8 = vpop.permute.xlu1 %4505  ;;  %v4511_v7 = vpop.permute.xlu0 %4510 }
 0x17c   :  { %v4508_v2 = vunpack.i.h.bf16 %v4506_v8  ;;  %v4507_v11 = vunpack.i.l.bf16 %v4506_v8  ;;  %v4513_v56 = vunpack.i.h.bf16 %v4511_v7  ;;  %v4512_v9 = vunpack.i.l.bf16 %v4511_v7 }
 0x17e   :  { %v654_v40 = vsel %vm646_vm4, %v619_v5, %v4508_v2  ;;  %v653_v42 = vsel %vm646_vm4, %v618_v10, %v4507_v11  ;;  %v621_v14 = vsel %vm611_vm3, %v348_v29, %v4513_v56  ;;  %v620_v19 = vsel %vm611_vm3, %v347_v28, %v4512_v9 }
 0x17f   :  { %v684_v24 = vpack.c.bf16 %v654_v40, %v653_v42  ;;  %v6916_v40 = vmax.f32 %v5448_v50, 0.0  ;;  %v6917_v50 = vmax.f32 %v5467_v4, 0.0 }
 0x181   :  { %4379 = vmatmul.mubr.msk.bf16.gmra.mrb[12].mxu1 %vm729_vm5, %v684_v24 }
 0x182   :  { %4382 = vmatprep.mubr.msk.bf16.mxu1 %vm5094_vm1, %v5093_v0 }
 0x183   :  { %v4516_v17 = vpop.permute.xlu1 %4515  ;;  %v4521_v25 = vpop.permute.xlu0 %4520 }
 0x184   :  { %v4518_v57 = vunpack.i.h.bf16 %v4516_v17  ;;  %v4517_v20 = vunpack.i.l.bf16 %v4516_v17  ;;  %v4523_v61 = vunpack.i.h.bf16 %v4521_v25  ;;  %v4522_v58 = vunpack.i.l.bf16 %v4521_v25 }
 0x186   :  { %v656_v59 = vsel %vm646_vm4, %v621_v14, %v4518_v57  ;;  %v655_v22 = vsel %vm646_vm4, %v620_v19, %v4517_v20  ;;  %v623_v23 = vsel %vm611_vm3, %v350_v38, %v4523_v61  ;;  %v622_v28 = vsel %vm611_vm3, %v349_v37, %v4522_v58 }
 0x187   :  { %v685_v27 = vpack.c.bf16 %v656_v59, %v655_v22  ;;  %v6918_v59 = vmax.f32 %v5462_v62, 0.0  ;;  %v6919_v62 = vmax.f32 %v5481_v21, 0.0 }
 0x189   :  { %4383 = vmatmul.mubr.msk.bf16.gmra.mrb[16].mxu1 %vm729_vm5, %v685_v27 }
 0x18a   :  { %4386 = vmatprep.mubr.msk.bf16.mxu1 %vm5094_vm1, %v5093_v0 }
 0x18b   :  { %v4526_v26 = vpop.permute.xlu1 %4525  ;;  %v4531_v63 = vpop.permute.xlu0 %4530 }
 0x18c   :  { %v4528_v1 = vunpack.i.h.bf16 %v4526_v26  ;;  %v4527_v29 = vunpack.i.l.bf16 %v4526_v26  ;;  %v4533_v54 = vunpack.i.h.bf16 %v4531_v63  ;;  %v4532_v39 = vunpack.i.l.bf16 %v4531_v63 }
 0x18e   :  { %v658_v3 = vsel %vm646_vm4, %v623_v23, %v4528_v1  ;;  %v657_v33 = vsel %vm646_vm4, %v622_v28, %v4527_v29  ;;  %v625_v32 = vsel %vm611_vm3, %v352_v47, %v4533_v54  ;;  %v624_v37 = vsel %vm611_vm3, %v351_v46, %v4532_v39 }
 0x18f   :  { %v686_v60 = vpack.c.bf16 %v658_v3, %v657_v33  ;;  %v6920_v3 = vmax.f32 %v5476_v15, 0.0  ;;  %v6921_v15 = vmax.f32 %v5495_v36, 0.0 }
 0x191   :  { %4387 = vmatmul.mubr.msk.bf16.gmra.mrb[20].mxu1 %vm729_vm5, %v686_v60 }
 0x192   :  { %4390 = vmatprep.mubr.msk.bf16.mxu1 %vm5094_vm1, %v5093_v0 }
 0x193   :  { %v4536_v35 = vpop.permute.xlu1 %4535  ;;  %v4541_v55 = vpop.permute.xlu0 %4540 }
 0x194   :  { %v4538_v49 = vunpack.i.h.bf16 %v4536_v35  ;;  %v4537_v38 = vunpack.i.l.bf16 %v4536_v35  ;;  %v4543_v5 = vunpack.i.h.bf16 %v4541_v55  ;;  %v4542_v10 = vunpack.i.l.bf16 %v4541_v55 }
 0x196   :  { %v660_v8 = vsel %vm646_vm4, %v625_v32, %v4538_v49  ;;  %v659_v2 = vsel %vm646_vm4, %v624_v37, %v4537_v38  ;;  %v627_v46 = vsel %vm611_vm3, %v6915_v41, %v4543_v5  ;;  %v626_v42 = vsel %vm611_vm3, %v6916_v40, %v4542_v10 }
 0x197   :  { %v687_v11 = vpack.c.bf16 %v660_v8, %v659_v2  ;;  %v6922_v8 = vmax.f32 %v5490_v31, 0.0  ;;  %v6923_v31 = vmax.f32 %v5509_v52, 0.0 }
 0x199   :  { %4391 = vmatmul.mubr.msk.bf16.gmra.mrb[24].mxu1 %vm729_vm5, %v687_v11 }
 0x19a   :  { %4394 = vmatprep.mubr.msk.bf16.mxu1 %vm5094_vm1, %v5093_v0 }
 0x19b   :  { %v4546_v44 = vpop.permute.xlu1 %4545  ;;  %v4551_v24 = vpop.permute.xlu0 %4550 }
 0x19c   :  { %v4548_v7 = vunpack.i.h.bf16 %v4546_v44  ;;  %v4547_v47 = vunpack.i.l.bf16 %v4546_v44  ;;  %v4553_v57 = vunpack.i.h.bf16 %v4551_v24  ;;  %v4552_v20 = vunpack.i.l.bf16 %v4551_v24 }
 0x19e   :  { %v662_v56 = vsel %vm646_vm4, %v627_v46, %v4548_v7  ;;  %v661_v9 = vsel %vm646_vm4, %v626_v42, %v4547_v47  ;;  %v629_v25 = vsel %vm611_vm3, %v6917_v50, %v4553_v57  ;;  %v628_v22 = vsel %vm611_vm3, %v6918_v59, %v4552_v20 }
 0x19f   :  { %v688_v17 = vpack.c.bf16 %v662_v56, %v661_v9  ;;  %v6924_v42 = vmax.f32 %v5504_v48, 0.0  ;;  %v6925_v48 = vmax.f32 %v5523_v16, 0.0 }
 0x1a1   :  { %4395 = vmatmul.mubr.msk.bf16.gmra.mrb[28].mxu1 %vm729_vm5, %v688_v17 }
 0x1a2   :  { %4398 = vmatprep.mubr.msk.bf16.mxu1 %vm5094_vm1, %v5093_v0 }
 0x1a3   :  { %v4556_v53 = vpop.permute.xlu1 %4555  ;;  %v4561_v27 = vpop.permute.xlu0 %4560 }
 0x1a4   :  { %v4558_v14 = vunpack.i.h.bf16 %v4556_v53  ;;  %v4557_v19 = vunpack.i.l.bf16 %v4556_v53  ;;  %v4563_v1 = vunpack.i.h.bf16 %v4561_v27  ;;  %v4562_v29 = vunpack.i.l.bf16 %v4561_v27 }
 0x1a6   :  { %v664_v61 = vsel %vm646_vm4, %v629_v25, %v4558_v14  ;;  %v663_v58 = vsel %vm646_vm4, %v628_v22, %v4557_v19  ;;  %v631_v63 = vsel %vm611_vm3, %v6919_v62, %v4563_v1  ;;  %v630_v33 = vsel %vm611_vm3, %v6920_v3, %v4562_v29 }
 0x1a7   :  { %v689_v26 = vpack.c.bf16 %v664_v61, %v663_v58  ;;  %v6926_v25 = vmax.f32 %v5518_v6, 0.0  ;;  %v6927_v6 = vmax.f32 %v5537_v45, 0.0 }
 0x1a9   :  { %4399 = vmatmul.mubr.msk.bf16.gmra.mrb[32].mxu1 %vm729_vm5, %v689_v26 }
 0x1aa   :  { %4402 = vmatprep.mubr.msk.bf16.mxu1 %vm5094_vm1, %v5093_v0 }
 0x1ab   :  { %v4566_v4 = vpop.permute.xlu1 %4565  ;;  %v4571_v60 = vpop.permute.xlu0 %4570 }
 0x1ac   :  { %v4568_v23 = vunpack.i.h.bf16 %v4566_v4  ;;  %v4567_v28 = vunpack.i.l.bf16 %v4566_v4  ;;  %v4573_v49 = vunpack.i.h.bf16 %v4571_v60  ;;  %v4572_v38 = vunpack.i.l.bf16 %v4571_v60 }
 0x1ae   :  { %v666_v54 = vsel %vm646_vm4, %v631_v63, %v4568_v23  ;;  %v665_v39 = vsel %vm646_vm4, %v630_v33, %v4567_v28  ;;  %v633_v55 = vsel %vm611_vm3, %v6921_v15, %v4573_v49  ;;  %v632_v2 = vsel %vm611_vm3, %v6922_v8, %v4572_v38 }
 0x1af   :  { %v690_v35 = vpack.c.bf16 %v666_v54, %v665_v39  ;;  %v6928_v28 = vmax.f32 %v5532_v34, 0.0  ;;  %v6929_v34 = vmax.f32 %v5551_v30, 0.0 }
 0x1b1   :  { %4403 = vmatmul.mubr.msk.bf16.gmra.mrb[36].mxu1 %vm729_vm5, %v690_v35 }
 0x1b2   :  { %4406 = vmatprep.mubr.msk.bf16.mxu1 %vm5094_vm1, %v5093_v0 }
 0x1b3   :  { %v4576_v21 = vpop.permute.xlu1 %4575  ;;  %v4581_v11 = vpop.permute.xlu0 %4580 }
 0x1b4   :  { %v4578_v32 = vunpack.i.h.bf16 %v4576_v21  ;;  %v4577_v37 = vunpack.i.l.bf16 %v4576_v21  ;;  %v4583_v7 = vunpack.i.h.bf16 %v4581_v11  ;;  %v4582_v47 = vunpack.i.l.bf16 %v4581_v11 }
 0x1b5   :  { %v6930_v21 = vmax.f32 %v5546_v12, 0.0  ;;  %v6931_v12 = vmax.f32 %v5565_v18, 0.0 }
 0x1b6   :  { %v668_v5 = vsel %vm646_vm4, %v633_v55, %v4578_v32  ;;  %v667_v10 = vsel %vm646_vm4, %v632_v2, %v4577_v37  ;;  %v635_v40 = vsel %vm611_vm3, %v6923_v31, %v4583_v7  ;;  %v634_v24 = vsel %vm611_vm3, %v6924_v42, %v4582_v47 }
 0x1b7   :  { %v691_v44 = vpack.c.bf16 %v668_v5, %v667_v10  ;;  %v6932_v47 = vmax.f32 %v5560_v51, 0.0 }
 0x1b9   :  { %4407 = vmatmul.mubr.msk.bf16.gmra.mrb[40].mxu1 %vm729_vm5, %v691_v44 }
 0x1ba   :  { %4410 = vmatprep.mubr.msk.bf16.mxu1 %vm5094_vm1, %v5093_v0 }
 0x1bb   :  { %v4586_v36 = vpop.permute.xlu1 %4585  ;;  %v4591_v56 = vpop.permute.xlu0 %4590 }
 0x1bc   :  { %v4588_v41 = vunpack.i.h.bf16 %v4586_v36  ;;  %v4587_v46 = vunpack.i.l.bf16 %v4586_v36  ;;  %v4593_v20 = vunpack.i.h.bf16 %v4591_v56  ;;  %v4592_v53 = vunpack.i.l.bf16 %v4591_v56 }
 0x1be   :  { %v670_v9 = vsel %vm646_vm4, %v635_v40, %v4588_v41  ;;  %v669_v17 = vsel %vm646_vm4, %v634_v24, %v4587_v46  ;;  %v637_v50 = vsel %vm611_vm3, %v6925_v48, %v4593_v20  ;;  %v636_v59 = vsel %vm611_vm3, %v6926_v25, %v4592_v53  ;;  %v4739_v53 = vld [vmem:[%s6876_s5 + $0xc0] sm:$0xff]  }
 0x1bf   :  { %v692_v57 = vpack.c.bf16 %v670_v9, %v669_v17  ;;  %v6933_v24 = vmax.f32 %v5574_v43, 0.0  ;;  %v6934_v9 = vmax.f32 %v5579_v13, 0.0  ;;  %v4737_v43 = vld [vmem:[%s6876_s5 + $0x40] sm:$0xff]   ;;  %4257 = vmatprep.subr.bf16.mxu1 %v4739_v53 }
 0x1c0   :  { %v4738_v13 = vld [vmem:[%s6876_s5] sm:$0xff]   ;;  %4235 = vmatprep.subr.bf16.mxu0 %v4737_v43 }
 0x1c1   :  { %4411 = vmatmul.mubr.msk.bf16.gmra.mrb[44].mxu1 %vm729_vm5, %v692_v57  ;;  %4236 = vmatpush3.bf16.msra.mxu0 %v4738_v13 }
 0x1c2   :  { %4414 = vmatprep.mubr.msk.bf16.mxu1 %vm5094_vm1, %v5093_v0 }
 0x1c3   :  { %v4596_v52 = vpop.permute.xlu1 %4595  ;;  %v4601_v22 = vpop.permute.xlu0 %4600 }
 0x1c4   :  { %v4598_v14 = vunpack.i.h.bf16 %v4596_v52  ;;  %v4597_v19 = vunpack.i.l.bf16 %v4596_v52  ;;  %v4603_v26 = vunpack.i.h.bf16 %v4601_v22  ;;  %v4602_v1 = vunpack.i.l.bf16 %v4601_v22  ;;  %v4740_v52 = vld [vmem:[%s6876_s5 + $0x80] sm:$0xff]  }
 0x1c5   :  { %4258 = vmatpush3.bf16.msra.mxu1 %v4740_v52  ;;  %v5801_v22 = vld [vmem:[%s6877_s4] ss:$0 sm:$0xff]  ;;  %v4758_v52 = vld [vmem:[%s6876_s5 + $0x30] sm:$0xff]  }
 0x1c6   :  { %v672_v27 = vsel %vm646_vm4, %v637_v50, %v4598_v14  ;;  %v671_v61 = vsel %vm646_vm4, %v636_v59, %v4597_v19  ;;  %v639_v23 = vsel %vm611_vm3, %v6927_v6, %v4603_v26  ;;  %v638_v62 = vsel %vm611_vm3, %v6928_v28, %v4602_v1  ;;  %v4741_v19 = vld [vmem:[%s6876_s5 + $0x48] sm:$0xff]   ;;  %v4745_v28 = vld [vmem:[%s6876_s5 + $0x50] sm:$0xff]  }
 0x1c7   :  { %v693_v58 = vpack.c.bf16 %v672_v27, %v671_v61  ;;  %4237 = vmatprep.subr.bf16.mxu0 %v4741_v19  ;;  %v4742_v59 = vld [vmem:[%s6876_s5 + $0x8] sm:$0xff]  }
 0x1c8   :  { %4238 = vmatpush3.bf16.msra.mxu0 %v4742_v59  ;;  %v4743_v61 = vld [vmem:[%s6876_s5 + $0xc8] sm:$0xff]  }
 0x1c9   :  { %4415 = vmatmul.mubr.msk.bf16.gmra.mrb[48].mxu1 %vm729_vm5, %v693_v58  ;;  %v4744_v58 = vld [vmem:[%s6876_s5 + $0x88] sm:$0xff]   ;;  %4259 = vmatprep.subr.bf16.mxu1 %v4743_v61 }
 0x1ca   :  { %4418 = vmatprep.mubr.msk.bf16.mxu1 %vm5094_vm1, %v5093_v0  ;;  %4260 = vmatpush3.bf16.msra.mxu1 %v4744_v58  ;;  %v4759_v58 = vld [vmem:[%s6876_s5 + $0xe0] sm:$0xff]  }
 0x1cb   :  { %v4606_v16 = vpop.permute.xlu1 %4605  ;;  %v4611_v63 = vpop.permute.xlu0 %4610  ;;  %4239 = vmatprep.subr.bf16.mxu0 %v4745_v28 }
 0x1cc   :  { %v4608_v29 = vunpack.i.h.bf16 %v4606_v16  ;;  %v4607_v4 = vunpack.i.l.bf16 %v4606_v16  ;;  %v4613_v54 = vunpack.i.h.bf16 %v4611_v63  ;;  %v4612_v39 = vunpack.i.l.bf16 %v4611_v63  ;;  %v4747_v63 = vld [vmem:[%s6876_s5 + $0xd0] sm:$0xff]  }
 0x1cd   :  { %4261 = vmatprep.subr.bf16.mxu1 %v4747_v63 }
 0x1ce   :  { %v674_v3 = vsel %vm646_vm4, %v639_v23, %v4608_v29  ;;  %v673_v33 = vsel %vm646_vm4, %v638_v62, %v4607_v4  ;;  %v641_v38 = vsel %vm611_vm3, %v6929_v34, %v4613_v54  ;;  %v640_v32 = vsel %vm611_vm3, %v6930_v21, %v4612_v39  ;;  %v4746_v62 = vld [vmem:[%s6876_s5 + $0x10] sm:$0xff]  }
 0x1cf   :  { %v694_v60 = vpack.c.bf16 %v674_v3, %v673_v33  ;;  %4240 = vmatpush3.bf16.msra.mxu0 %v4746_v62  ;;  %v4748_v21 = vld [vmem:[%s6876_s5 + $0x90] sm:$0xff]  }
 0x1d0   :  { %4262 = vmatpush3.bf16.msra.mxu1 %v4748_v21  ;;  %v4766_v21 = vld [vmem:[%s6876_s5 + $0xa8] sm:$0xff]  }
 0x1d1   :  { %4419 = vmatmul.mubr.msk.bf16.gmra.mrb[52].mxu1 %vm729_vm5, %v694_v60 }
 0x1d2   :  { %4422 = vmatprep.mubr.msk.bf16.mxu1 %vm5094_vm1, %v5093_v0 }
 0x1d3   :  { %v4616_v45 = vpop.permute.xlu1 %4615  ;;  %v4621_v55 = vpop.permute.xlu0 %4620 }
 0x1d4   :  { %v4618_v35 = vunpack.i.h.bf16 %v4616_v45  ;;  %v4617_v49 = vunpack.i.l.bf16 %v4616_v45  ;;  %v4623_v2 = vunpack.i.h.bf16 %v4621_v55  ;;  %v4622_v11 = vunpack.i.l.bf16 %v4621_v55 }
 0x1d6   :  { %v676_v37 = vsel %vm646_vm4, %v641_v38, %v4618_v35  ;;  %v675_v15 = vsel %vm646_vm4, %v640_v32, %v4617_v49  ;;  %v643_v7 = vsel %vm611_vm3, %v6931_v12, %v4623_v2  ;;  %v642_v36 = vsel %vm611_vm3, %v6932_v47, %v4622_v11  ;;  %v4749_v32 = vld [vmem:[%s6876_s5 + $0x58] sm:$0xff]  }
 0x1d7   :  { %v695_v8 = vpack.c.bf16 %v676_v37, %v675_v15  ;;  %v4750_v37 = vld [vmem:[%s6876_s5 + $0x18] sm:$0xff]   ;;  %4241 = vmatprep.subr.bf16.mxu0 %v4749_v32 }
 0x1d8   :  { %4242 = vmatpush3.bf16.msra.mxu0 %v4750_v37 }
 0x1d9   :  { %4423 = vmatmul.mubr.msk.bf16.gmra.mrb[56].mxu1 %vm729_vm5, %v695_v8 }
 0x1da   :  { %4426 = vmatprep.mubr.msk.bf16.mxu1 %vm5094_vm1, %v5093_v0 }
 0x1db   :  { %v4631_v30 = vpop.permute.xlu0 %4630 }
 0x1dc   :  { %v4626_v5 = vpop.permute.xlu1 %4625  ;;  %v4633_v41 = vunpack.i.h.bf16 %v4631_v30  ;;  %v4632_v46 = vunpack.i.l.bf16 %v4631_v30 }
 0x1dd   :  { %v4628_v10 = vunpack.i.h.bf16 %v4626_v5  ;;  %v4627_v44 = vunpack.i.l.bf16 %v4626_v5 }
 0x1de   :  { %v644_v56 = vsel %vm611_vm3, %v6933_v24, %v4632_v46  ;;  %v645_v18 = vsel %vm611_vm3, %v6934_v9, %v4633_v41  ;;  %v4751_v41 = vld [vmem:[%s6876_s5 + $0xd8] sm:$0xff]  }
 0x1df   :  { %v678_v31 = vsel %vm646_vm4, %v643_v7, %v4628_v10  ;;  %v677_v40 = vsel %vm646_vm4, %v642_v36, %v4627_v44  ;;  %v4752_v46 = vld [vmem:[%s6876_s5 + $0x98] sm:$0xff]   ;;  %4263 = vmatprep.subr.bf16.mxu1 %v4751_v41 }
 0x1e0   :  { %v696_v42 = vpack.c.bf16 %v678_v31, %v677_v40  ;;  %v577_v17 = vpop.permute.xlu1 %576  ;;  %v4753_v31 = vld [vmem:[%s6876_s5 + $0x60] sm:$0xff]   ;;  %4264 = vmatpush3.bf16.msra.mxu1 %v4752_v46 }
 0x1e1   :  { %v679_v51 = vsel %vm646_vm4, %v644_v56, %v577_v17  ;;  %v680_v57 = vsel %vm646_vm4, %v645_v18, %v577_v17  ;;  %v4754_v40 = vld [vmem:[%s6876_s5 + $0x20] sm:$0xff]   ;;  %4243 = vmatprep.subr.bf16.mxu0 %v4753_v31  ;;  %4265 = vmatprep.subr.bf16.mxu1 %v4759_v58 }
 0x1e2   :  { %4427 = vmatmul.mubr.msk.bf16.gmra.mrb[60].mxu1 %vm729_vm5, %v696_v42  ;;  %v697_v20 = vpack.c.bf16 %v680_v57, %v679_v51  ;;  %4244 = vmatpush3.bf16.msra.mxu0 %v4754_v40  ;;  %v4755_v51 = vld [vmem:[%s6876_s5 + $0x68] sm:$0xff]  }
 0x1e3   :  { %4430 = vmatprep.mubr.msk.bf16.mxu1 %vm5094_vm1, %v5093_v0  ;;  %v4756_v57 = vld [vmem:[%s6876_s5 + $0x28] sm:$0xff]   ;;  %4245 = vmatprep.subr.bf16.mxu0 %v4755_v51 }
 0x1e6   :  { %4246 = vmatpush3.bf16.msra.mxu0 %v4756_v57 }
 0x1ea   :  { %4431 = vmatmul.mubr.msk.bf16.gmra.mrb[64].mxu1 %vm729_vm5, %v697_v20  ;;  %v4757_v20 = vld [vmem:[%s6876_s5 + $0x70] sm:$0xff]  }
 0x1eb   :  { %4247 = vmatprep.subr.bf16.mxu0 %v4757_v20 }
 0x1ec   :  { %4248 = vmatpush3.bf16.msra.mxu0 %v4758_v52 }
 0x23c   :  { %v5788_v14 = vpop.f32.mrb[0].mxu1 }
 0x23d   :  { %v4368_v48 = vpop.f32.mrb[1].mxu1 }
 0x23e   :  { %v5793_v50 = vpop.f32.mrb[2].mxu1 }
 0x23f   :  { %v4369_v25 = vpop.f32.mrb[3].mxu1 }
 0x244   :  { %v823_v27 = vpop.f32.mrb[4].mxu1 }
 0x245   :  { %v824_v26 = vadd.f32 %v5801_v22, %v823_v27  ;;  %v4372_v1 = vpop.f32.mrb[5].mxu1 }
 0x246   :  { %v826_v16 = vpop.f32.mrb[6].mxu1  ;;  %v4761_v1 = vld [vmem:[%s6876_s5 + $0xa0] sm:$0xff]  }
 0x247   :  { %v827_v29 = vadd.f32 %v5801_v22, %v826_v16  ;;  %v4373_v4 = vpop.f32.mrb[7].mxu1  ;;  %v952_v6 = vmax.f32 %v824_v26, 0.0  ;;  %v4760_v26 = vld [vmem:[%s6876_s5 + $0x78] sm:$0xff]   ;;  %4266 = vmatpush3.bf16.msra.mxu1 %v4761_v1 }
 0x248   :  { %v4762_v4 = vld [vmem:[%s6876_s5 + $0x38] sm:$0xff]   ;;  %4249 = vmatprep.subr.bf16.mxu0 %v4760_v26 }
 0x249   :  { %v953_v23 = vmax.f32 %v827_v29, 0.0  ;;  %4250 = vmatpush3.bf16.msra.mxu0 %v4762_v4 }
 0x24a   :  { %4434 = vmatprep.subr.bf16.mxu0 %v5093_v0 }
 0x24b   :  { %v4634_v3 = vpack.i.bf16 %v953_v23, %v952_v6 }
 0x24c   :  { %v831_v33 = vpop.f32.mrb[8].mxu1 }
 0x24d   :  { %v832_v60 = vadd.f32 %v5801_v22, %v831_v33  ;;  %v4376_v54 = vpop.f32.mrb[9].mxu1  ;;  %4635 = vrot.lane.b32.xlu1 %v4634_v3, %s5096_s3 }
 0x24e   :  { %v834_v39 = vpop.f32.mrb[10].mxu1 }
 0x24f   :  { %v835_v45 = vadd.f32 %v5801_v22, %v834_v39  ;;  %v4377_v35 = vpop.f32.mrb[11].mxu1  ;;  %v954_v49 = vmax.f32 %v832_v60, 0.0 }
 0x251   :  { %v955_v34 = vmax.f32 %v835_v45, 0.0 }
 0x253   :  { %v4639_v38 = vpack.i.bf16 %v955_v34, %v954_v49 }
 0x254   :  { %v839_v15 = vpop.f32.mrb[12].mxu1 }
 0x255   :  { %v840_v55 = vadd.f32 %v5801_v22, %v839_v15  ;;  %v4380_v8 = vpop.f32.mrb[13].mxu1  ;;  %4640 = vrot.lane.b32.xlu1 %v4639_v38, %s5097_s2  ;;  %v4765_v38 = vld [vmem:[%s6876_s5 + $0xe8] sm:$0xff]  }
 0x256   :  { %v842_v2 = vpop.f32.mrb[14].mxu1  ;;  %4267 = vmatprep.subr.bf16.mxu1 %v4765_v38 }
 0x257   :  { %v843_v11 = vadd.f32 %v5801_v22, %v842_v2  ;;  %v4381_v30 = vpop.f32.mrb[15].mxu1  ;;  %v956_v5 = vmax.f32 %v840_v55, 0.0  ;;  %4268 = vmatpush3.bf16.msra.mxu1 %v4766_v21 }
 0x259   :  { %v957_v10 = vmax.f32 %v843_v11, 0.0 }
 0x25b   :  { %v4644_v44 = vpack.i.bf16 %v957_v10, %v956_v5 }
 0x25c   :  { %v5835_v12 = vpop.f32.mrb[16].mxu1 }
 0x25d   :  { %v4384_v7 = vpop.f32.mrb[17].mxu1  ;;  %4645 = vrot.lane.b32.xlu1 %v4644_v44, %s5098_s29 }
 0x25e   :  { %v5838_v47 = vpop.f32.mrb[18].mxu1 }
 0x25f   :  { %v4385_v36 = vpop.f32.mrb[19].mxu1 }
 0x264   :  { %v855_v42 = vpop.f32.mrb[20].mxu1 }
 0x265   :  { %v856_v24 = vadd.f32 %v5801_v22, %v855_v42  ;;  %v4388_v56 = vpop.f32.mrb[21].mxu1 }
 0x266   :  { %v858_v9 = vpop.f32.mrb[22].mxu1  ;;  %v4768_v56 = vld [vmem:[%s6876_s5 + $0xb0] sm:$0xff]  }
 0x267   :  { %v859_v18 = vadd.f32 %v5801_v22, %v858_v9  ;;  %v4389_v17 = vpop.f32.mrb[23].mxu1  ;;  %v960_v43 = vmax.f32 %v856_v24, 0.0  ;;  %v4767_v24 = vld [vmem:[%s6876_s5 + $0xf0] sm:$0xff]  }
 0x268   :  { %4269 = vmatprep.subr.bf16.mxu1 %v4767_v24 }
 0x269   :  { %v961_v13 = vmax.f32 %v859_v18, 0.0  ;;  %4270 = vmatpush3.bf16.msra.mxu1 %v4768_v56 }
 0x26b   :  { %v4649_v53 = vpack.i.bf16 %v961_v13, %v960_v43 }
 0x26c   :  { %v863_v19 = vpop.f32.mrb[24].mxu1 }
 0x26d   :  { %v864_v48 = vadd.f32 %v5801_v22, %v863_v19  ;;  %v4392_v25 = vpop.f32.mrb[25].mxu1  ;;  %4650 = vrot.lane.b32.xlu0 %v4649_v53, %s5096_s3 }
 0x26e   :  { %v866_v59 = vpop.f32.mrb[26].mxu1 }
 0x26f   :  { %v867_v27 = vadd.f32 %v5801_v22, %v866_v59  ;;  %v4393_v61 = vpop.f32.mrb[27].mxu1  ;;  %v962_v16 = vmax.f32 %v864_v48, 0.0  ;;  %v4769_v59 = vld [vmem:[%s6876_s5 + $0xf8] sm:$0xff]  }
 0x270   :  { %4271 = vmatprep.subr.bf16.mxu1 %v4769_v59 }
 0x271   :  { %v963_v29 = vmax.f32 %v867_v27, 0.0  ;;  %v4770_v27 = vld [vmem:[%s6876_s5 + $0xb8] sm:$0xff]  }
 0x272   :  { %4272 = vmatpush3.bf16.msra.mxu1 %v4770_v27 }
 0x273   :  { %v4654_v6 = vpack.i.bf16 %v963_v29, %v962_v16 }
 0x274   :  { %v871_v23 = vpop.f32.mrb[28].mxu1 }
 0x275   :  { %v872_v28 = vadd.f32 %v5801_v22, %v871_v23  ;;  %v4396_v62 = vpop.f32.mrb[29].mxu1  ;;  %4655 = vrot.lane.b32.xlu0 %v4654_v6, %s5097_s2 }
 0x276   :  { %v874_v63 = vpop.f32.mrb[30].mxu1 }
 0x277   :  { %v875_v3 = vadd.f32 %v5801_v22, %v874_v63  ;;  %v4397_v33 = vpop.f32.mrb[31].mxu1  ;;  %v964_v60 = vmax.f32 %v872_v28, 0.0 }
 0x279   :  { %v965_v54 = vmax.f32 %v875_v3, 0.0 }
 0x27b   :  { %v4659_v39 = vpack.i.bf16 %v965_v54, %v964_v60 }
 0x27c   :  { %v5885_v45 = vpop.f32.mrb[32].mxu1 }
 0x27d   :  { %v4400_v35 = vpop.f32.mrb[33].mxu1  ;;  %4660 = vrot.lane.b32.xlu0 %v4659_v39, %s5098_s29 }
 0x27e   :  { %v5888_v49 = vpop.f32.mrb[34].mxu1 }
 0x27f   :  { %v4401_v34 = vpop.f32.mrb[35].mxu1 }
 0x284   :  { %v887_v32 = vpop.f32.mrb[36].mxu1 }
 0x285   :  { %v888_v37 = vadd.f32 %v5801_v22, %v887_v32  ;;  %v4404_v15 = vpop.f32.mrb[37].mxu1 }
 0x286   :  { %v890_v55 = vpop.f32.mrb[38].mxu1 }
 0x287   :  { %v891_v8 = vadd.f32 %v5801_v22, %v890_v55  ;;  %v4405_v2 = vpop.f32.mrb[39].mxu1  ;;  %v968_v11 = vmax.f32 %v888_v37, 0.0 }
 0x289   :  { %v969_v30 = vmax.f32 %v891_v8, 0.0 }
 0x28b   :  { %v4664_v5 = vpack.i.bf16 %v969_v30, %v968_v11 }
 0x28c   :  { %v895_v10 = vpop.f32.mrb[40].mxu1 }
 0x28d   :  { %v896_v44 = vadd.f32 %v5801_v22, %v895_v10  ;;  %v4408_v7 = vpop.f32.mrb[41].mxu1  ;;  %4665 = vrot.lane.b32.xlu1 %v4664_v5, %s5096_s3 }
 0x28e   :  { %v898_v36 = vpop.f32.mrb[42].mxu1 }
 0x28f   :  { %v899_v41 = vadd.f32 %v5801_v22, %v898_v36  ;;  %v4409_v46 = vpop.f32.mrb[43].mxu1  ;;  %v970_v31 = vmax.f32 %v896_v44, 0.0 }
 0x291   :  { %v971_v40 = vmax.f32 %v899_v41, 0.0 }
 0x293   :  { %v4669_v42 = vpack.i.bf16 %v971_v40, %v970_v31  ;;  %v816_v40 = vadd.f32 %v5801_v22, %v5788_v14 }
 0x294   :  { %v903_v9 = vpop.f32.mrb[44].mxu1 }
 0x295   :  { %v904_v18 = vadd.f32 %v5801_v22, %v903_v9  ;;  %v4412_v17 = vpop.f32.mrb[45].mxu1  ;;  %4670 = vrot.lane.b32.xlu1 %v4669_v42, %s5097_s2  ;;  %v819_v42 = vadd.f32 %v5801_v22, %v5793_v50 }
 0x296   :  { %v906_v51 = vpop.f32.mrb[46].mxu1 }
 0x297   :  { %v907_v57 = vadd.f32 %v5801_v22, %v906_v51  ;;  %v4413_v20 = vpop.f32.mrb[47].mxu1  ;;  %v972_v43 = vmax.f32 %v904_v18, 0.0  ;;  %v950_v51 = vmax.f32 %v816_v40, 0.0 }
 0x299   :  { %v973_v13 = vmax.f32 %v907_v57, 0.0  ;;  %v951_v57 = vmax.f32 %v819_v42, 0.0 }
 0x29b   :  { %v4689_v53 = vpack.i.bf16 %v973_v13, %v972_v43 }
 0x29c   :  { %v5910_v52 = vpop.f32.mrb[48].mxu1 }
 0x29d   :  { %v4416_v19 = vpop.f32.mrb[49].mxu1  ;;  %4690 = vrot.lane.b32.xlu1 %v4689_v53, %s5098_s29 }
 0x29e   :  { %v5913_v48 = vpop.f32.mrb[50].mxu1 }
 0x29f   :  { %v4417_v25 = vpop.f32.mrb[51].mxu1 }
 0x2a4   :  { %v919_v61 = vpop.f32.mrb[52].mxu1 }
 0x2a5   :  { %v920_v58 = vadd.f32 %v5801_v22, %v919_v61  ;;  %v4420_v26 = vpop.f32.mrb[53].mxu1 }
 0x2a6   :  { %v922_v1 = vpop.f32.mrb[54].mxu1  ;;  %v851_v26 = vadd.f32 %v5801_v22, %v5838_v47 }
 0x2a7   :  { %v923_v16 = vadd.f32 %v5801_v22, %v922_v1  ;;  %v4421_v29 = vpop.f32.mrb[55].mxu1  ;;  %v976_v4 = vmax.f32 %v920_v58, 0.0  ;;  %v848_v58 = vadd.f32 %v5801_v22, %v5835_v12 }
 0x2a9   :  { %v977_v6 = vmax.f32 %v923_v16, 0.0 }
 0x2ab   :  { %v4674_v23 = vpack.i.bf16 %v977_v6, %v976_v4 }
 0x2ac   :  { %v927_v28 = vpop.f32.mrb[56].mxu1 }
 0x2ad   :  { %v928_v62 = vadd.f32 %v5801_v22, %v927_v28  ;;  %v4424_v63 = vpop.f32.mrb[57].mxu1  ;;  %4675 = vrot.lane.b32.xlu0 %v4674_v23, %s5096_s3  ;;  %v958_v23 = vmax.f32 %v848_v58, 0.0  ;;  %v959_v28 = vmax.f32 %v851_v26, 0.0  ;;  %v4776_v58 = vld [vmem:[%s6878_s7 + $0x14] ss:$8 sps:$4 sm:$0xff]  }
 0x2ae   :  { %v930_v3 = vpop.f32.mrb[58].mxu1  ;;  %v4774_v26 = vld [vmem:[%s6878_s7 + $0x10] ss:$8 sps:$4 sm:$0xff]  }
 0x2af   :  { %v931_v33 = vadd.f32 %v5801_v22, %v930_v3  ;;  %v4425_v60 = vpop.f32.mrb[59].mxu1  ;;  %v978_v54 = vmax.f32 %v928_v62, 0.0 }
 0x2b1   :  { %v979_v39 = vmax.f32 %v931_v33, 0.0 }
 0x2b3   :  { %v4679_v35 = vpack.i.bf16 %v979_v39, %v978_v54 }
 0x2b5   :  { %v935_v34 = vpop.f32.mrb[60].mxu1  ;;  %4680 = vrot.lane.b32.xlu0 %v4679_v35, %s5097_s2 }
 0x2b6   :  { %v936_v38 = vadd.f32 %v5801_v22, %v935_v34  ;;  %v4428_v21 = vpop.f32.mrb[61].mxu1  ;;  %v4763_v34 = vld [vmem:[%s6876_s5 + $0x100] sm:$0xff]  }
 0x2b7   :  { %v938_v32 = vpop.f32.mrb[62].mxu1 }
 0x2b8   :  { %v939_v37 = vadd.f32 %v5801_v22, %v938_v32  ;;  %v4429_v15 = vpop.f32.mrb[63].mxu1  ;;  %v980_v55 = vmax.f32 %v936_v38, 0.0  ;;  %v4764_v38 = vld [vmem:[%s6876_s5 + $0x108] sm:$0xff]   ;;  %v880_v32 = vadd.f32 %v5801_v22, %v5885_v45 }
 0x2ba   :  { %v981_v8 = vmax.f32 %v939_v37, 0.0  ;;  %v883_v37 = vadd.f32 %v5801_v22, %v5888_v49 }
 0x2bc   :  { %v4684_v2 = vpack.i.bf16 %v981_v8, %v980_v55 }
 0x2bd   :  { %v943_v11 = vpop.f32.mrb[64].mxu1 }
 0x2be   :  { %v944_v30 = vadd.f32 %v5801_v22, %v943_v11  ;;  %4685 = vrot.lane.b32.xlu0 %v4684_v2, %s5098_s29  ;;  %v4432_v5 = vpop.f32.mrb[65].mxu1 }
 0x2bf   :  { %v946_v10 = vpop.f32.mrb[66].mxu1  ;;  %v4636_v31 = vpop.permute.xlu1 %4635  ;;  %v967_v5 = vmax.f32 %v883_v37, 0.0 }
 0x2c0   :  { %v947_v44 = vadd.f32 %v5801_v22, %v946_v10  ;;  %v4433_v7 = vpop.f32.mrb[67].mxu1  ;;  %v982_v36 = vmax.f32 %v944_v30, 0.0  ;;  %v4638_v56 = vunpack.i.h.bf16 %v4636_v31  ;;  %v4637_v9 = vunpack.i.l.bf16 %v4636_v31 }
 0x2c1   :  { %v966_v30 = vmax.f32 %v880_v32, 0.0  ;;  %v5099_v32 = vmov 0  }
 0x2c2   :  { %v983_v41 = vmax.f32 %v947_v44, 0.0  ;;  %v1081_v43 = vsel %vm646_vm4, %v951_v57, %v4638_v56  ;;  %v1080_v13 = vsel %vm646_vm4, %v950_v51, %v4637_v9  ;;  %v915_v56 = vadd.f32 %v5801_v22, %v5913_v48 }
 0x2c4   :  { %v1110_v46 = vpack.c.bf16 %v983_v41, %v982_v36 }
 0x2c7   :  { %v4641_v24 = vpop.permute.xlu1 %4640 }
 0x2c8   :  { %v4643_v18 = vunpack.i.h.bf16 %v4641_v24  ;;  %v4642_v17 = vunpack.i.l.bf16 %v4641_v24  ;;  %v912_v24 = vadd.f32 %v5801_v22, %v5910_v52 }
 0x2ca   :  { %v1083_v14 = vsel %vm1082_vm6, %v1080_v13, %v4642_v17  ;;  %v1084_v50 = vsel %vm1082_vm6, %v1081_v43, %v4643_v18  ;;  %v975_v43 = vmax.f32 %v915_v56, 0.0 }
 0x2cf   :  { %v4646_v20 = vpop.permute.xlu1 %4645 }
 0x2d0   :  { %v4648_v53 = vunpack.i.h.bf16 %v4646_v20  ;;  %v4647_v19 = vunpack.i.l.bf16 %v4646_v20  ;;  %v974_v20 = vmax.f32 %v912_v24, 0.0 }
 0x2d2   :  { %v1086_v25 = vsel %vm1085_vm7, %v1083_v14, %v4647_v19  ;;  %v1087_v59 = vsel %vm1085_vm7, %v1084_v50, %v4648_v53 }
 0x2d3   :  { %v1106_v27 = vpack.c.bf16 %v1087_v59, %v1086_v25 }
 0x2df   :  { %v4651_v61 = vpop.permute.xlu0 %4650 }
 0x2e0   :  { %v4653_v16 = vunpack.i.h.bf16 %v4651_v61  ;;  %v4652_v29 = vunpack.i.l.bf16 %v4651_v61  ;;  %v4773_v61 = vld [vmem:[%s6878_s7 + $0x4] ss:$8 sps:$4 sm:$0xff]  }
 0x2e2   :  { %v1089_v63 = vsel %vm646_vm4, %v959_v28, %v4653_v16  ;;  %v1088_v3 = vsel %vm646_vm4, %v958_v23, %v4652_v29  ;;  %v4777_v16 = vld [vmem:[%s6878_s7 + $0x20] ss:$8 sps:$4 sm:$0xff]   ;;  %v4782_v29 = vld [vmem:[%s6878_s7 + $0x34] ss:$8 sps:$4 sm:$0xff]   ;;  %v6015_v28 = vld [vmem:[%s6879_s8 + $0x4] ss:$8 sps:$4 sm:$0xff]  }
 0x2e3   :  { %v4783_v23 = vld [vmem:[%s6878_s7 + $0x40] ss:$8 sps:$4 sm:$0xff]   ;;  %1741 = vmatprep.subr.bf16.mxu1 %v6015_v28 }
 0x2e7   :  { %v4656_v1 = vpop.permute.xlu0 %4655 }
 0x2e8   :  { %v4658_v4 = vunpack.i.h.bf16 %v4656_v1  ;;  %v4657_v6 = vunpack.i.l.bf16 %v4656_v1  ;;  %v4779_v1 = vld [vmem:[%s6878_s7 + $0x24] ss:$8 sps:$4 sm:$0xff]  }
 0x2ea   :  { %v1090_v54 = vsel %vm1082_vm6, %v1088_v3, %v4657_v6  ;;  %v1091_v12 = vsel %vm1082_vm6, %v1089_v63, %v4658_v4  ;;  %v4780_v4 = vld [vmem:[%s6878_s7 + $0x30] ss:$8 sps:$4 sm:$0xff]   ;;  %v4785_v6 = vld [vmem:[%s6878_s7 + $0x44] ss:$8 sps:$4 sm:$0xff]   ;;  %v4791_v63 = vld [vmem:[%s6878_s7 + $0x54] ss:$8 sps:$4 sm:$0xff]  }
 0x2eb   :  { %v4789_v3 = vld [vmem:[%s6878_s7 + $0x50] ss:$8 sps:$4 sm:$0xff]  }
 0x2ef   :  { %v4661_v62 = vpop.permute.xlu0 %4660 }
 0x2f0   :  { %v4663_v33 = vunpack.i.h.bf16 %v4661_v62  ;;  %v4662_v60 = vunpack.i.l.bf16 %v4661_v62  ;;  %v6020_v62 = vld [vmem:[%s6879_s8] ss:$8 sps:$4 sm:$0xff]  }
 0x2f2   :  { %v1092_v47 = vsel %vm1085_vm7, %v1090_v54, %v4662_v60  ;;  %v1093_v39 = vsel %vm1085_vm7, %v1091_v12, %v4663_v33  ;;  %v6033_v33 = vld [vmem:[%s6879_s8 + $0x14] ss:$8 sps:$4 sm:$0xff]   ;;  %v6038_v60 = vld [vmem:[%s6879_s8 + $0x10] ss:$8 sps:$4 sm:$0xff]   ;;  %v4797_v54 = vld [vmem:[%s6878_s7 + $0x64] ss:$8 sps:$4 sm:$0xff]  }
 0x2f3   :  { %v1107_v35 = vpack.c.bf16 %v1093_v39, %v1092_v47  ;;  %v4795_v12 = vld [vmem:[%s6878_s7 + $0x60] ss:$8 sps:$4 sm:$0xff]   ;;  %v6051_v47 = vld [vmem:[%s6879_s8 + $0x24] ss:$8 sps:$4 sm:$0xff]  }
 0x2f4   :  { %v6056_v39 = vld [vmem:[%s6879_s8 + $0x20] ss:$8 sps:$4 sm:$0xff]  }
 0x2f5   :  { %1425 = vmatprep.mubr.bf16.mxu0 %v1107_v35  ;;  %v4803_v35 = vld [vmem:[%s6878_s7 + $0x74] ss:$8 sps:$4 sm:$0xff]  }
 0x2f6   :  { %1426 = vmatmul.mubr.bf16.vlgmr.msra.gmra.mrb[68].mxu0 %v1106_v27  ;;  %v4771_v27 = vld [vmem:[%s6878_s7] ss:$8 sps:$4 sm:$0xff]  }
 0x2f7   :  { %4435 = vmatpush3.bf16.msra.mxu0 %v4763_v34  ;;  %4438 = vmatprep.mubr.msk.bf16.mxu0 %vm5094_vm1, %v5093_v0  ;;  %v4801_v34 = vld [vmem:[%s6878_s7 + $0x70] ss:$8 sps:$4 sm:$0xff]  }
 0x2f8   :  { %4436 = vmatprep.subr.bf16.mxu0 %v5093_v0 }
 0x2fb   :  { %4437 = vmatpush3.bf16.msra.mxu0 %v4764_v38  ;;  %v6069_v38 = vld [vmem:[%s6879_s8 + $0x34] ss:$8 sps:$4 sm:$0xff]  }
 0x2fc   :  { %1644 = vmatprep.subr.bf16.mxu0 %v4773_v61 }
 0x2fe   :  { %4439 = vmatmul.mubr.msk.bf16.vlgmr.msra.gmra.mrb[72].mxu0 %vm646_vm4, %v1110_v46 }
 0x2ff   :  { %v4666_v21 = vpop.permute.xlu1 %4665  ;;  %1645 = vmatpush1.bf16.msra.mxu0 %v4771_v27  ;;  %1676 = vmatprep.mubr.bf16.mxu0 %v5099_v32 }
 0x300   :  { %v4668_v55 = vunpack.i.h.bf16 %v4666_v21  ;;  %v4667_v8 = vunpack.i.l.bf16 %v4666_v21  ;;  %1646 = vmatprep.subr.bf16.mxu0 %v4776_v58  ;;  %v6074_v21 = vld [vmem:[%s6879_s8 + $0x30] ss:$8 sps:$4 sm:$0xff]  }
 0x302   :  { %v1095_v44 = vsel %vm646_vm4, %v967_v5, %v4668_v55  ;;  %v1094_v7 = vsel %vm646_vm4, %v966_v30, %v4667_v8 }
 0x303   :  { %1647 = vmatpush1.bf16.msra.mxu0 %v4774_v26 }
 0x304   :  { %1648 = vmatprep.subr.bf16.mxu0 %v4779_v1 }
 0x307   :  { %v4671_v15 = vpop.permute.xlu1 %4670  ;;  %1649 = vmatpush1.bf16.msra.mxu0 %v4777_v16 }
 0x308   :  { %v4673_v2 = vunpack.i.h.bf16 %v4671_v15  ;;  %v4672_v11 = vunpack.i.l.bf16 %v4671_v15  ;;  %1650 = vmatprep.subr.bf16.mxu0 %v4782_v29 }
 0x30a   :  { %v1096_v46 = vsel %vm1082_vm6, %v1094_v7, %v4672_v11  ;;  %v1097_v45 = vsel %vm1082_vm6, %v1095_v44, %v4673_v2  ;;  %v4064_v7 = vld [vmem:[%s6880_s6] ss:$0 sm:$0xff] }
 0x30b   :  { %1651 = vmatpush1.bf16.msra.mxu0 %v4780_v4 }
 0x30c   :  { %1652 = vmatprep.subr.bf16.mxu0 %v4785_v6 }
 0x30f   :  { %v4691_v10 = vpop.permute.xlu1 %4690  ;;  %1653 = vmatpush1.bf16.msra.mxu0 %v4783_v23 }
 0x310   :  { %v4693_v36 = vunpack.i.h.bf16 %v4691_v10  ;;  %v4692_v41 = vunpack.i.l.bf16 %v4691_v10  ;;  %1654 = vmatprep.subr.bf16.mxu0 %v4791_v63 }
 0x312   :  { %v1098_v49 = vsel %vm1085_vm7, %v1096_v46, %v4692_v41  ;;  %v1099_v31 = vsel %vm1085_vm7, %v1097_v45, %v4693_v36 }
 0x313   :  { %v1108_v40 = vpack.c.bf16 %v1099_v31, %v1098_v49  ;;  %1655 = vmatpush1.bf16.msra.mxu0 %v4789_v3 }
 0x314   :  { %1656 = vmatprep.subr.bf16.mxu0 %v4797_v54 }
 0x317   :  { %1657 = vmatpush1.bf16.msra.mxu0 %v4795_v12 }
 0x318   :  { %1658 = vmatprep.subr.bf16.mxu0 %v4803_v35 }
 0x31b   :  { %1659 = vmatpush1.bf16.msra.mxu0 %v4801_v34 }
 0x31c   :  { %1969 = vmatprep.subr.bf16.mxu0 %v6015_v28 }
 0x31f   :  { %v4676_v42 = vpop.permute.xlu0 %4675 }
 0x320   :  { %v4678_v18 = vunpack.i.h.bf16 %v4676_v42  ;;  %v4677_v17 = vunpack.i.l.bf16 %v4676_v42 }
 0x322   :  { %v1101_v53 = vsel %vm646_vm4, %v975_v43, %v4678_v18  ;;  %v1100_v19 = vsel %vm646_vm4, %v974_v20, %v4677_v17 }
 0x327   :  { %v4681_v9 = vpop.permute.xlu0 %4680 }
 0x328   :  { %v4683_v51 = vunpack.i.h.bf16 %v4681_v9  ;;  %v4682_v57 = vunpack.i.l.bf16 %v4681_v9 }
 0x32a   :  { %v1102_v25 = vsel %vm1082_vm6, %v1100_v19, %v4682_v57  ;;  %v1103_v52 = vsel %vm1082_vm6, %v1101_v53, %v4683_v51  ;;  %v1518_v19 = vlaneseq }
 0x32c   :  { %v1519_v35 = vand.u32 127, %v1518_v19 }
 0x32e   :  { %vm1521_vm8 = vcmp.ge.s32.totalorder %v1519_v35, 64  ;;  %vm1523_vm9 = vcmp.lt.s32.totalorder %v1519_v35, 96 }
 0x32f   :  { %vm6127_vm10 = vmand %vm1521_vm8, %vm1523_vm9 }
 0x330   :  { %v4686_v13 = vpop.permute.xlu0 %4685 }
 0x331   :  { %v4688_v14 = vunpack.i.h.bf16 %v4686_v13  ;;  %v4687_v50 = vunpack.i.l.bf16 %v4686_v13 }
 0x333   :  { %v1104_v22 = vsel %vm1085_vm7, %v1102_v25, %v4687_v50  ;;  %v1105_v48 = vsel %vm1085_vm7, %v1103_v52, %v4688_v14  ;;  %v6104_v14 = vshrl.u32 %v1518_v19, 7  ;;  %v1552_v25 = vld [vmem:[%s6881_s9] sm:$0x3] }
 0x334   :  { %v1109_v59 = vpack.c.bf16 %v1105_v48, %v1104_v22 }
 0x335   :  { %v1556_v50 = vsub.s32 0, %v6104_v14  ;;  %v1560_v52 = vsub.s32 1, %v6104_v14 }
 0x336   :  { %1466 = vmatprep.mubr.bf16.mxu1 %v1109_v59 }
 0x337   :  { %1467 = vmatmul.mubr.bf16.vlgmr.msra.gmra.mrb[68].mxu1 %v1108_v40  ;;  %v1557_v22 = vrot.slane %v1552_v25, %v1556_v50  ;;  %v1561_v48 = vrot.slane %v1552_v25, %v1560_v52 }
 0x338   :  { %1742 = vmatpush1.bf16.msra.mxu1 %v6020_v62  ;;  %1773 = vmatprep.mubr.bf16.mxu1 %v5099_v32 }
 0x339   :  { %1743 = vmatprep.subr.bf16.mxu1 %v6033_v33 }
 0x33c   :  { %1744 = vmatpush1.bf16.msra.mxu1 %v6038_v60 }
 0x33d   :  { %1745 = vmatprep.subr.bf16.mxu1 %v6051_v47 }
 0x340   :  { %1746 = vmatpush1.bf16.msra.mxu1 %v6056_v39 }
 0x341   :  { %1747 = vmatprep.subr.bf16.mxu1 %v6069_v38 }
 0x344   :  { %1748 = vmatpush1.bf16.msra.mxu1 %v6074_v21 }
 0x345   :  { %1849 = vmatprep.subr.bf16.mxu1 %v6015_v28 }
 0x347   :  { %1774 = vmatmul.mubr.bf16.vlgmr.msra.gmra.mrb[72].mxu1 %v5099_v32 }
 0x348   :  { %1850 = vmatpush1.bf16.msra.mxu1 %v6020_v62  ;;  %1881 = vmatprep.mubr.bf16.mxu1 %v5099_v32 }
 0x349   :  { %1851 = vmatprep.subr.bf16.mxu1 %v6033_v33 }
 0x34c   :  { %1852 = vmatpush1.bf16.msra.mxu1 %v6038_v60 }
 0x34d   :  { %1853 = vmatprep.subr.bf16.mxu1 %v6051_v47 }
 0x350   :  { %1854 = vmatpush1.bf16.msra.mxu1 %v6056_v39 }
 0x351   :  { %1855 = vmatprep.subr.bf16.mxu1 %v6069_v38 }
 0x354   :  { %1856 = vmatpush1.bf16.msra.mxu1 %v6074_v21 }
 0x355   :  { %2089 = vmatprep.subr.bf16.mxu1 %v6015_v28 }
 0x3c9   :  { %v4251_v37 = vpop.f32.mrb[68].mxu0 }
 0x3ca   :  { %v4252_v15 = vpop.f32.mrb[69].mxu0 }
 0x3cb   :  { %v4253_v55 = vadd.f32 %v4252_v15, %v4251_v37  ;;  %v4254_v8 = vpop.f32.mrb[70].mxu0  ;;  %v1520_v15 = vadd.s32 128, %v1519_v35 }
 0x3cc   :  { %v4255_v2 = vpop.f32.mrb[71].mxu0 }
 0x3cd   :  { %v4256_v11 = vadd.f32 %v4255_v2, %v4254_v8  ;;  %v1428_v46 = vadd.f32 %v4253_v55, %v4064_v7  ;;  %vm1528_vm11 = vcmp.ge.s32.totalorder %v1520_v15, 192  ;;  %vm1530_vm12 = vcmp.lt.s32.totalorder %v1520_v15, 224 }
 0x3ce   :  { %vm6134_vm13 = vmand %vm1528_vm11, %vm1530_vm12 }
 0x3cf   :  { %v1431_v40 = vadd.f32 %v4256_v11, %v4064_v7 }
 0x3d1   :  { %v1509_v30 = vpop.f32.mrb[72].mxu0 }
 0x3d2   :  { %v4440_v5 = vpop.f32.mrb[73].mxu0 }
 0x3d3   :  { %v1512_v10 = vpop.f32.mrb[74].mxu0 }
 0x3d4   :  { %v4441_v44 = vpop.f32.mrb[75].mxu0 }
 0x40a   :  { %v4273_v36 = vpop.f32.mrb[68].mxu1 }
 0x40b   :  { %v4274_v41 = vpop.f32.mrb[69].mxu1 }
 0x40c   :  { %v4275_v45 = vadd.f32 %v4274_v41, %v4273_v36  ;;  %v4276_v49 = vpop.f32.mrb[70].mxu1 }
 0x40d   :  { %v4277_v31 = vpop.f32.mrb[71].mxu1 }
 0x40e   :  { %v1469_v42 = vadd.f32 %v4275_v45, %v1428_v46  ;;  %v4278_v24 = vadd.f32 %v4277_v31, %v4276_v49 }
 0x410   :  { %v1510_v56 = vadd.f32 %v1509_v30, %v1469_v42  ;;  %v1472_v9 = vadd.f32 %v4278_v24, %v1431_v40 }
 0x412   :  { %v1513_v18 = vadd.f32 %v1512_v10, %v1472_v9  ;;  %v1516_v17 = vmax.f32 %v1510_v56, 0.0 }
 0x414   :  { %v1517_v51 = vmax.f32 %v1513_v18, 0.0 }
 0x416   :  { %v1535_v57 = vpack.c.bf16 %v1517_v51, %v1516_v17 }
 0x418   :  { %1677 = vmatmul.mubr.bf16.vlgmr.msra.gmra.mrb[76].mxu0 %v1535_v57 }
 0x419   :  { %1970 = vmatpush1.bf16.msra.mxu0 %v6020_v62  ;;  %2001 = vmatprep.mubr.bf16.mxu0 %v5099_v32 }
 0x41a   :  { %1971 = vmatprep.subr.bf16.mxu0 %v6033_v33  ;;  %v1775_v20 = vpop.f32.mrb[72].mxu1 }
 0x41b   :  { %v1777_v43 = vpop.f32.mrb[73].mxu1 }
 0x41c   :  { %v1779_v13 = vpop.f32.mrb[74].mxu1 }
 0x41d   :  { %1972 = vmatpush1.bf16.msra.mxu0 %v6038_v60  ;;  %v1780_v53 = vpop.f32.mrb[75].mxu1 }
 0x41e   :  { %1973 = vmatprep.subr.bf16.mxu0 %v6051_v47 }
 0x421   :  { %1974 = vmatpush1.bf16.msra.mxu0 %v6056_v39 }
 0x422   :  { %1975 = vmatprep.subr.bf16.mxu0 %v6069_v38 }
 0x425   :  { %1976 = vmatpush1.bf16.msra.mxu0 %v6074_v21 }
 0x426   :  { %2212 = vmatprep.subr.bf16.mxu0 %v6015_v28 }
 0x4eb   :  { %v1678_v59 = vpop.f32.mrb[76].mxu0 }
 0x4ec   :  { %v6115_v27 = vadd.f32 %v1678_v59, %v1557_v22  ;;  %v1680_v61 = vpop.f32.mrb[77].mxu0 }
 0x4ed   :  { %v6117_v58 = vadd.f32 %v1680_v61, %v1561_v48  ;;  %v1682_v26 = vpop.f32.mrb[78].mxu0 }
 0x4ee   :  { %v6119_v1 = vadd.f32 %v1682_v26, %v1557_v22  ;;  %v1782_v16 = vadd.f32 %v1775_v20, %v6115_v27  ;;  %v1684_v29 = vpop.f32.mrb[79].mxu0 }
 0x4ef   :  { %v6122_v4 = vadd.f32 %v1684_v29, %v1561_v48 }
 0x4f0   :  { %v4124_v6 = vmul.f32 -1.442695, %v1782_v16 }
 0x4f1   :  { %v1696_v23 = vrot.slane %v6122_v4, 6  ;;  %v1843_v48 = vrot.slane %v6122_v4, 2 }
 0x4f2   :  { %4837 = vpow2.f32 %v4124_v6 }
 0x4f3   :  { %v1783_v63 = vadd.f32 %v1777_v43, %v1696_v23 }
 0x4f5   :  { %v4125_v3 = vmul.f32 -1.442695, %v1783_v63 }
 0x4f7   :  { %4839 = vpow2.f32 %v4125_v3 }
 0x4f8   :  { %4841 = vtanh.f32 %v1782_v16 }
 0x4fc   :  { %v4838_v54 = vpop.eup %4837 }
 0x4fd   :  { %v1792_v12 = vadd.f32 1.0, %v4838_v54 }
 0x4ff   :  { %4843 = vrcp.f32 %v1792_v12 }
 0x500   :  { %4845 = vtanh.f32 %v1783_v63 }
 0x501   :  { %v4840_v34 = vpop.eup %4839 }
 0x502   :  { %v1793_v37 = vadd.f32 1.0, %v4840_v34  ;;  %v4842_v8 = vpop.eup %4841 }
 0x504   :  { %4847 = vrcp.f32 %v1793_v37 }
 0x509   :  { %v4844_v2 = vpop.eup %4843 }
 0x50a   :  { %v1798_v11 = vsel %vm6127_vm10, %v4842_v8, %v4844_v2  ;;  %v4846_v5 = vpop.eup %4845 }
 0x50b   :  { %1802 = vrot.lane.b32.xlu0 %v1798_v11, %s5097_s2  ;;  %v1800_v45 = vmul.f32 0.0, %v1798_v11 }
 0x50e   :  { %v4848_v10 = vpop.eup %4847 }
 0x50f   :  { %v1799_v44 = vsel %vm6134_vm13, %v4846_v5, %v4848_v10 }
 0x510   :  { %1813 = vrot.lane.b32.xlu1 %v1799_v44, %s5097_s2  ;;  %v1811_v40 = vmul.f32 0.0, %v1799_v44 }
 0x57d   :  { %v1803_v7 = vpop.permute.xlu0 %1802 }
 0x57e   :  { %v1805_v36 = vmul.f32 %v1803_v7, %v1798_v11 }
 0x580   :  { %1807 = vrot.lane.b32.xlu0 %v1805_v36, %s5096_s3 }
 0x582   :  { %v1814_v41 = vpop.permute.xlu1 %1813 }
 0x583   :  { %v1816_v46 = vmul.f32 %v1814_v41, %v1799_v44 }
 0x585   :  { %1818 = vrot.lane.b32.xlu1 %v1816_v46, %s5096_s3 }
 0x5f2   :  { %v1808_v49 = vpop.permute.xlu0 %1807 }
 0x5f3   :  { %v6143_v31 = vadd.f32 %v1808_v49, %v1800_v45 }
 0x5f5   :  { %4849 = vtanh.f32 %v6143_v31  ;;  %v1915_v36 = vrot.slane %v6143_v31, 6 }
 0x5f7   :  { %v1819_v42 = vpop.permute.xlu1 %1818 }
 0x5f8   :  { %v6146_v24 = vadd.f32 %v1819_v42, %v1811_v40 }
 0x5fa   :  { %4851 = vtanh.f32 %v6146_v24  ;;  %v1929_v41 = vrot.slane %v6146_v24, 6 }
 0x5ff   :  { %v4850_v56 = vpop.eup %4849 }
 0x600   :  { %1824 = vrot.lane.b32.xlu0 %v4850_v56, %s5097_s2 }
 0x604   :  { %v4852_v9 = vpop.eup %4851 }
 0x605   :  { %1830 = vrot.lane.b32.xlu1 %v4852_v9, %s5097_s2 }
 0x672   :  { %v1825_v18 = vpop.permute.xlu0 %1824 }
 0x673   :  { %v1827_v17 = vmul.f32 %v1825_v18, %v1798_v11 }
 0x675   :  { %1835 = vrot.lane.b32.xlu0 %v1827_v17, %s5096_s3 }
 0x677   :  { %v1831_v51 = vpop.permute.xlu1 %1830 }
 0x678   :  { %v6152_v57 = vmul.f32 %v1831_v51, %v1799_v44 }
 0x67a   :  { %1839 = vrot.lane.b32.xlu1 %v6152_v57, %s5097_s2 }
 0x6e7   :  { %v6156_v20 = vpop.permute.xlu0 %1835 }
 0x6ec   :  { %v1840_v43 = vpop.permute.xlu1 %1839 }
 0x6ed   :  { %v1842_v13 = vsel %vm646_vm4, %v6156_v20, %v1840_v43 }
 0x6ee   :  { %v1845_v53 = vpack.c.bf16 %v1842_v13, %v1842_v13 }
 0x6f0   :  { %4126 = vmatmul.mubr.msk.bf16.vlgmr.msra.gmra.mrb[76].mxu1 %vm1082_vm6, %v1845_v53 }
 0x6f1   :  { %2090 = vmatpush1.bf16.msra.mxu1 %v6020_v62  ;;  %2121 = vmatprep.mubr.bf16.mxu1 %v5099_v32 }
 0x6f2   :  { %2091 = vmatprep.subr.bf16.mxu1 %v6033_v33 }
 0x6f5   :  { %2092 = vmatpush1.bf16.msra.mxu1 %v6038_v60 }
 0x6f6   :  { %2093 = vmatprep.subr.bf16.mxu1 %v6051_v47 }
 0x6f9   :  { %2094 = vmatpush1.bf16.msra.mxu1 %v6056_v39 }
 0x6fa   :  { %2095 = vmatprep.subr.bf16.mxu1 %v6069_v38 }
 0x6fd   :  { %2096 = vmatpush1.bf16.msra.mxu1 %v6074_v21 }
 0x6fe   :  { %2326 = vmatprep.subr.bf16.mxu1 %v6015_v28 }
 0x7c3   :  { %v1883_v19 = vpop.f32.mrb[76].mxu1 }
 0x7c4   :  { %v1892_v25 = vrot.slane %v1883_v19, 6  ;;  %v1885_v22 = vpop.f32.mrb[77].mxu1 }
 0x7c5   :  { %v1893_v59 = vrot.slane %v1885_v22, 6  ;;  %v1887_v61 = vpop.f32.mrb[78].mxu1 }
 0x7c6   :  { %v1896_v26 = vadd.f32 %v1892_v25, %v6115_v27  ;;  %v1888_v16 = vpop.f32.mrb[79].mxu1 }
 0x7c7   :  { %v1897_v29 = vadd.f32 %v1893_v59, %v1843_v48 }
 0x7c8   :  { %v4127_v6 = vmul.f32 -1.442695, %v1896_v26 }
 0x7c9   :  { %v4128_v63 = vmul.f32 -1.442695, %v1897_v29 }
 0x7ca   :  { %4853 = vpow2.f32 %v4127_v6 }
 0x7cb   :  { %4855 = vpow2.f32 %v4128_v63 }
 0x7cc   :  { %4857 = vtanh.f32 %v1896_v26 }
 0x7cd   :  { %4859 = vtanh.f32 %v1897_v29 }
 0x7d4   :  { %v4854_v3 = vpop.eup %4853 }
 0x7d5   :  { %v4856_v54 = vpop.eup %4855  ;;  %v1906_v12 = vadd.f32 1.0, %v4854_v3 }
 0x7d6   :  { %v1907_v35 = vadd.f32 1.0, %v4856_v54  ;;  %v4858_v34 = vpop.eup %4857 }
 0x7d7   :  { %4861 = vrcp.f32 %v1906_v12  ;;  %v4860_v37 = vpop.eup %4859 }
 0x7d8   :  { %4863 = vrcp.f32 %v1907_v35 }
 0x7e1   :  { %v4862_v15 = vpop.eup %4861 }
 0x7e2   :  { %v4864_v8 = vpop.eup %4863  ;;  %v1912_v2 = vsel %vm6127_vm10, %v4858_v34, %v4862_v15 }
 0x7e3   :  { %1919 = vrot.lane.b32.xlu0 %v1912_v2, %s5097_s2  ;;  %v1913_v11 = vsel %vm6134_vm13, %v4860_v37, %v4864_v8  ;;  %v1917_v46 = vmul.f32 %v1915_v36, %v1912_v2 }
 0x7e4   :  { %1933 = vrot.lane.b32.xlu1 %v1913_v11, %s5097_s2  ;;  %v1931_v49 = vmul.f32 %v1929_v41, %v1913_v11 }
 0x855   :  { %v1920_v5 = vpop.permute.xlu0 %1919 }
 0x856   :  { %v1922_v10 = vmul.f32 %v1920_v5, %v1912_v2  ;;  %v1934_v44 = vpop.permute.xlu1 %1933 }
 0x857   :  { %v1936_v7 = vmul.f32 %v1934_v44, %v1913_v11 }
 0x858   :  { %1924 = vrot.lane.b32.xlu0 %v1922_v10, %s5096_s3 }
 0x859   :  { %1938 = vrot.lane.b32.xlu1 %v1936_v7, %s5096_s3 }
 0x8ca   :  { %v1925_v45 = vpop.permute.xlu0 %1924 }
 0x8cb   :  { %v6184_v40 = vadd.f32 %v1925_v45, %v1917_v46  ;;  %v1939_v42 = vpop.permute.xlu1 %1938 }
 0x8cc   :  { %v6186_v56 = vadd.f32 %v1939_v42, %v1931_v49 }
 0x8cd   :  { %4865 = vtanh.f32 %v6184_v40  ;;  %v2035_v41 = vrot.slane %v6184_v40, 6 }
 0x8ce   :  { %4867 = vtanh.f32 %v6186_v56  ;;  %v2049_v46 = vrot.slane %v6186_v56, 6 }
 0x8d7   :  { %v4866_v9 = vpop.eup %4865 }
 0x8d8   :  { %v4868_v18 = vpop.eup %4867  ;;  %1944 = vrot.lane.b32.xlu0 %v4866_v9, %s5097_s2 }
 0x8d9   :  { %1950 = vrot.lane.b32.xlu1 %v4868_v18, %s5097_s2 }
 0x94a   :  { %v1945_v31 = vpop.permute.xlu0 %1944 }
 0x94b   :  { %v1947_v24 = vmul.f32 %v1945_v31, %v1912_v2  ;;  %v1951_v17 = vpop.permute.xlu1 %1950 }
 0x94c   :  { %v6192_v51 = vmul.f32 %v1951_v17, %v1913_v11 }
 0x94d   :  { %1955 = vrot.lane.b32.xlu0 %v1947_v24, %s5096_s3 }
 0x94e   :  { %1959 = vrot.lane.b32.xlu1 %v6192_v51, %s5097_s2 }
 0x9bf   :  { %v6197_v43 = vpop.permute.xlu0 %1955 }
 0x9c0   :  { %v1960_v13 = vpop.permute.xlu1 %1959 }
 0x9c1   :  { %v1962_v53 = vsel %vm646_vm4, %v6197_v43, %v1960_v13 }
 0x9c2   :  { %v1963_v19 = vpack.c.bf16 %v1962_v53, %v1962_v53 }
 0x9c4   :  { %v1965_v25 = vrot.slane %v1963_v19, 1 }
 0x9c6   :  { %4129 = vmatmul.mubr.msk.bf16.vlgmr.msra.gmra.mrb[80].mxu0 %vm1082_vm6, %v1965_v25 }
 0x9c7   :  { %2213 = vmatpush1.bf16.msra.mxu0 %v6020_v62  ;;  %2244 = vmatprep.mubr.bf16.mxu0 %v5099_v32 }
 0x9c8   :  { %2214 = vmatprep.subr.bf16.mxu0 %v6033_v33 }
 0x9cb   :  { %2215 = vmatpush1.bf16.msra.mxu0 %v6038_v60 }
 0x9cc   :  { %2216 = vmatprep.subr.bf16.mxu0 %v6051_v47 }
 0x9cf   :  { %2217 = vmatpush1.bf16.msra.mxu0 %v6056_v39 }
 0x9d0   :  { %2218 = vmatprep.subr.bf16.mxu0 %v6069_v38 }
 0x9d3   :  { %2219 = vmatpush1.bf16.msra.mxu0 %v6074_v21 }
 0x9d4   :  { %2446 = vmatprep.subr.bf16.mxu0 %v6015_v28 }
 0xa99   :  { %v2003_v22 = vpop.f32.mrb[80].mxu0 }
 0xa9a   :  { %v2012_v59 = vrot.slane %v2003_v22, 4  ;;  %v2005_v61 = vpop.f32.mrb[81].mxu0 }
 0xa9b   :  { %v2013_v26 = vrot.slane %v2005_v61, 4  ;;  %v2007_v16 = vpop.f32.mrb[82].mxu0 }
 0xa9c   :  { %v2016_v29 = vadd.f32 %v2012_v59, %v6115_v27  ;;  %v2008_v6 = vpop.f32.mrb[83].mxu0 }
 0xa9d   :  { %v2017_v63 = vadd.f32 %v2013_v26, %v1696_v23 }
 0xa9e   :  { %v4130_v3 = vmul.f32 -1.442695, %v2016_v29 }
 0xa9f   :  { %v4131_v54 = vmul.f32 -1.442695, %v2017_v63 }
 0xaa0   :  { %4869 = vpow2.f32 %v4130_v3 }
 0xaa1   :  { %4871 = vpow2.f32 %v4131_v54 }
 0xaa2   :  { %4873 = vtanh.f32 %v2016_v29 }
 0xaa3   :  { %4875 = vtanh.f32 %v2017_v63 }
 0xaaa   :  { %v4870_v12 = vpop.eup %4869 }
 0xaab   :  { %v4872_v35 = vpop.eup %4871  ;;  %v2026_v34 = vadd.f32 1.0, %v4870_v12 }
 0xaac   :  { %v2027_v37 = vadd.f32 1.0, %v4872_v35  ;;  %v4874_v15 = vpop.eup %4873 }
 0xaad   :  { %4877 = vrcp.f32 %v2026_v34  ;;  %v4876_v8 = vpop.eup %4875 }
 0xaae   :  { %4879 = vrcp.f32 %v2027_v37 }
 0xab7   :  { %v4878_v2 = vpop.eup %4877 }
 0xab8   :  { %v4880_v11 = vpop.eup %4879  ;;  %v2032_v5 = vsel %vm6127_vm10, %v4874_v15, %v4878_v2 }
 0xab9   :  { %2039 = vrot.lane.b32.xlu0 %v2032_v5, %s5097_s2  ;;  %v2033_v23 = vsel %vm6134_vm13, %v4876_v8, %v4880_v11  ;;  %v2037_v45 = vmul.f32 %v2035_v41, %v2032_v5 }
 0xaba   :  { %2053 = vrot.lane.b32.xlu1 %v2033_v23, %s5097_s2  ;;  %v2051_v42 = vmul.f32 %v2049_v46, %v2033_v23 }
 0xb2b   :  { %v2040_v10 = vpop.permute.xlu0 %2039 }
 0xb2c   :  { %v2042_v44 = vmul.f32 %v2040_v10, %v2032_v5  ;;  %v2054_v7 = vpop.permute.xlu1 %2053 }
 0xb2d   :  { %v2056_v36 = vmul.f32 %v2054_v7, %v2033_v23 }
 0xb2e   :  { %2044 = vrot.lane.b32.xlu0 %v2042_v44, %s5096_s3 }
 0xb2f   :  { %2058 = vrot.lane.b32.xlu1 %v2056_v36, %s5096_s3 }
 0xba0   :  { %v2045_v49 = vpop.permute.xlu0 %2044 }
 0xba1   :  { %v6224_v9 = vadd.f32 %v2045_v49, %v2037_v45  ;;  %v2059_v18 = vpop.permute.xlu1 %2058 }
 0xba2   :  { %v6226_v31 = vadd.f32 %v2059_v18, %v2051_v42 }
 0xba3   :  { %4881 = vtanh.f32 %v6224_v9  ;;  %v2155_v36 = vrot.slane %v6224_v9, 6 }
 0xba4   :  { %4883 = vtanh.f32 %v6226_v31  ;;  %v2169_v41 = vrot.slane %v6226_v31, 6 }
 0xbad   :  { %v4882_v24 = vpop.eup %4881 }
 0xbae   :  { %v4884_v17 = vpop.eup %4883  ;;  %2064 = vrot.lane.b32.xlu0 %v4882_v24, %s5097_s2 }
 0xbaf   :  { %2070 = vrot.lane.b32.xlu1 %v4884_v17, %s5097_s2 }
 0xc20   :  { %v2065_v40 = vpop.permute.xlu0 %2064 }
 0xc21   :  { %v2067_v56 = vmul.f32 %v2065_v40, %v2032_v5  ;;  %v2071_v13 = vpop.permute.xlu1 %2070 }
 0xc22   :  { %v6232_v53 = vmul.f32 %v2071_v13, %v2033_v23 }
 0xc23   :  { %2075 = vrot.lane.b32.xlu0 %v2067_v56, %s5096_s3 }
 0xc24   :  { %2079 = vrot.lane.b32.xlu1 %v6232_v53, %s5097_s2 }
 0xc95   :  { %v6237_v19 = vpop.permute.xlu0 %2075 }
 0xc96   :  { %v2080_v25 = vpop.permute.xlu1 %2079 }
 0xc97   :  { %v2082_v22 = vsel %vm646_vm4, %v6237_v19, %v2080_v25  ;;  %v2697_v25 = vrot.slane %v6232_v53, 2 }
 0xc98   :  { %v2083_v59 = vpack.c.bf16 %v2082_v22, %v2082_v22 }
 0xc9a   :  { %v2085_v61 = vrot.slane %v2083_v59, 2 }
 0xc9c   :  { %4132 = vmatmul.mubr.msk.bf16.vlgmr.msra.gmra.mrb[80].mxu1 %vm1082_vm6, %v2085_v61 }
 0xc9d   :  { %2327 = vmatpush1.bf16.msra.mxu1 %v6020_v62  ;;  %2358 = vmatprep.mubr.bf16.mxu1 %v5099_v32 }
 0xc9e   :  { %2328 = vmatprep.subr.bf16.mxu1 %v6033_v33 }
 0xca1   :  { %2329 = vmatpush1.bf16.msra.mxu1 %v6038_v60 }
 0xca2   :  { %2330 = vmatprep.subr.bf16.mxu1 %v6051_v47 }
 0xca5   :  { %2331 = vmatpush1.bf16.msra.mxu1 %v6056_v39 }
 0xca6   :  { %2332 = vmatprep.subr.bf16.mxu1 %v6069_v38 }
 0xca9   :  { %2333 = vmatpush1.bf16.msra.mxu1 %v6074_v21 }
 0xcaa   :  { %2566 = vmatprep.subr.bf16.mxu1 %v6015_v28 }
 0xd6f   :  { %v2123_v26 = vpop.f32.mrb[80].mxu1 }
 0xd70   :  { %v2132_v16 = vrot.slane %v2123_v26, 2  ;;  %v2125_v29 = vpop.f32.mrb[81].mxu1 }
 0xd71   :  { %v2133_v6 = vrot.slane %v2125_v29, 2  ;;  %v2127_v63 = vpop.f32.mrb[82].mxu1 }
 0xd72   :  { %v2136_v3 = vadd.f32 %v2132_v16, %v6115_v27  ;;  %v2128_v54 = vpop.f32.mrb[83].mxu1  ;;  %v2204_v63 = vrot.slane %v6117_v58, 6 }
 0xd73   :  { %v2137_v12 = vadd.f32 %v2133_v6, %v1843_v48 }
 0xd74   :  { %v4133_v35 = vmul.f32 -1.442695, %v2136_v3 }
 0xd75   :  { %v4134_v34 = vmul.f32 -1.442695, %v2137_v12 }
 0xd76   :  { %4885 = vpow2.f32 %v4133_v35 }
 0xd77   :  { %4887 = vpow2.f32 %v4134_v34 }
 0xd78   :  { %4889 = vtanh.f32 %v2136_v3 }
 0xd79   :  { %4891 = vtanh.f32 %v2137_v12 }
 0xd80   :  { %v4886_v37 = vpop.eup %4885 }
 0xd81   :  { %v4888_v15 = vpop.eup %4887  ;;  %v2146_v8 = vadd.f32 1.0, %v4886_v37 }
 0xd82   :  { %v2147_v28 = vadd.f32 1.0, %v4888_v15  ;;  %v4890_v2 = vpop.eup %4889 }
 0xd83   :  { %4893 = vrcp.f32 %v2146_v8  ;;  %v4892_v11 = vpop.eup %4891 }
 0xd84   :  { %4895 = vrcp.f32 %v2147_v28 }
 0xd8d   :  { %v4894_v5 = vpop.eup %4893 }
 0xd8e   :  { %v4896_v27 = vpop.eup %4895  ;;  %v2152_v4 = vsel %vm6127_vm10, %v4890_v2, %v4894_v5 }
 0xd8f   :  { %2159 = vrot.lane.b32.xlu0 %v2152_v4, %s5097_s2  ;;  %v2153_v48 = vsel %vm6134_vm13, %v4892_v11, %v4896_v27  ;;  %v2157_v46 = vmul.f32 %v2155_v36, %v2152_v4 }
 0xd90   :  { %2173 = vrot.lane.b32.xlu1 %v2153_v48, %s5097_s2  ;;  %v2171_v49 = vmul.f32 %v2169_v41, %v2153_v48 }
 0xe01   :  { %v2160_v23 = vpop.permute.xlu0 %2159 }
 0xe02   :  { %v2162_v10 = vmul.f32 %v2160_v23, %v2152_v4  ;;  %v2174_v44 = vpop.permute.xlu1 %2173 }
 0xe03   :  { %v2176_v7 = vmul.f32 %v2174_v44, %v2153_v48 }
 0xe04   :  { %2164 = vrot.lane.b32.xlu0 %v2162_v10, %s5096_s3 }
 0xe05   :  { %2178 = vrot.lane.b32.xlu1 %v2176_v7, %s5096_s3 }
 0xe76   :  { %v2165_v45 = vpop.permute.xlu0 %2164 }
 0xe77   :  { %v6264_v42 = vadd.f32 %v2165_v45, %v2157_v46  ;;  %v2179_v18 = vpop.permute.xlu1 %2178 }
 0xe78   :  { %v6266_v24 = vadd.f32 %v2179_v18, %v2171_v49 }
 0xe79   :  { %4897 = vtanh.f32 %v6264_v42  ;;  %v2272_v46 = vrot.slane %v6264_v42, 6 }
 0xe7a   :  { %4899 = vtanh.f32 %v6266_v24  ;;  %v2286_v45 = vrot.slane %v6266_v24, 6 }
 0xe83   :  { %v4898_v17 = vpop.eup %4897 }
 0xe84   :  { %v4900_v40 = vpop.eup %4899  ;;  %2184 = vrot.lane.b32.xlu0 %v4898_v17, %s5097_s2 }
 0xe85   :  { %2190 = vrot.lane.b32.xlu1 %v4900_v40, %s5097_s2 }
 0xef6   :  { %v2185_v9 = vpop.permute.xlu0 %2184 }
 0xef7   :  { %v2187_v31 = vmul.f32 %v2185_v9, %v2152_v4  ;;  %v2191_v56 = vpop.permute.xlu1 %2190 }
 0xef8   :  { %v2193_v13 = vmul.f32 %v2191_v56, %v2153_v48 }
 0xef9   :  { %2195 = vrot.lane.b32.xlu0 %v2187_v31, %s5096_s3 }
 0xefa   :  { %v2692_v22 = vrot.slane %v2193_v13, 6  ;;  %2199 = vrot.lane.b32.xlu1 %v2193_v13, %s5097_s2 }
 0xefc   :  { %v6275_v59 = vpack.i.bf16 %v2697_v25, %v2692_v22 }
 0xf6b   :  { %v6277_v61 = vpop.permute.xlu0 %2195 }
 0xf6c   :  { %v2200_v26 = vpop.permute.xlu1 %2199 }
 0xf6d   :  { %v2202_v16 = vsel %vm646_vm4, %v6277_v61, %v2200_v26  ;;  %v2711_v26 = vrot.slane %v6152_v57, 2 }
 0xf6e   :  { %v2206_v29 = vpack.c.bf16 %v2202_v16, %v2202_v16 }
 0xf70   :  { %v2208_v6 = vrot.slane %v2206_v29, 3 }
 0xf72   :  { %4135 = vmatmul.mubr.msk.bf16.vlgmr.msra.gmra.mrb[84].mxu0 %vm1082_vm6, %v2208_v6 }
 0xf73   :  { %2447 = vmatpush1.bf16.msra.mxu0 %v6020_v62  ;;  %2478 = vmatprep.mubr.bf16.mxu0 %v5099_v32 }
 0xf74   :  { %2448 = vmatprep.subr.bf16.mxu0 %v6033_v33 }
 0xf77   :  { %2449 = vmatpush1.bf16.msra.mxu0 %v6038_v60 }
 0xf78   :  { %2450 = vmatprep.subr.bf16.mxu0 %v6051_v47 }
 0xf7b   :  { %2451 = vmatpush1.bf16.msra.mxu0 %v6056_v39 }
 0xf7c   :  { %2452 = vmatprep.subr.bf16.mxu0 %v6069_v38 }
 0xf7f   :  { %2453 = vmatpush1.bf16.msra.mxu0 %v6074_v21 }
0x1045   :  { %v2246_v53 = vpop.f32.mrb[84].mxu0 }
0x1046   :  { %v2253_v3 = vadd.f32 %v2246_v53, %v6119_v1  ;;  %v2248_v54 = vpop.f32.mrb[85].mxu0 }
0x1047   :  { %v2254_v12 = vadd.f32 %v2248_v54, %v2204_v63  ;;  %v2250_v35 = vpop.f32.mrb[86].mxu0 }
0x1048   :  { %v4136_v34 = vmul.f32 -1.442695, %v2253_v3  ;;  %v2251_v37 = vpop.f32.mrb[87].mxu0 }
0x1049   :  { %v4137_v15 = vmul.f32 -1.442695, %v2254_v12 }
0x104a   :  { %4901 = vpow2.f32 %v4136_v34  ;;  %v2320_v34 = vrot.slane %v6117_v58, 2 }
0x104b   :  { %4903 = vpow2.f32 %v4137_v15 }
0x104c   :  { %4905 = vtanh.f32 %v2253_v3 }
0x104d   :  { %4907 = vtanh.f32 %v2254_v12 }
0x1054   :  { %v4902_v8 = vpop.eup %4901 }
0x1055   :  { %v4904_v28 = vpop.eup %4903  ;;  %v2263_v2 = vadd.f32 1.0, %v4902_v8 }
0x1056   :  { %v2264_v11 = vadd.f32 1.0, %v4904_v28  ;;  %v4906_v5 = vpop.eup %4905 }
0x1057   :  { %4909 = vrcp.f32 %v2263_v2  ;;  %v4908_v27 = vpop.eup %4907 }
0x1058   :  { %4911 = vrcp.f32 %v2264_v11 }
0x1061   :  { %v4910_v4 = vpop.eup %4909 }
0x1062   :  { %v4912_v48 = vpop.eup %4911  ;;  %v2269_v23 = vsel %vm6127_vm10, %v4906_v5, %v4910_v4 }
0x1063   :  { %2276 = vrot.lane.b32.xlu0 %v2269_v23, %s5097_s2  ;;  %v2270_v10 = vsel %vm6134_vm13, %v4908_v27, %v4912_v48  ;;  %v2274_v49 = vmul.f32 %v2272_v46, %v2269_v23 }
0x1064   :  { %2290 = vrot.lane.b32.xlu1 %v2270_v10, %s5097_s2  ;;  %v2288_v17 = vmul.f32 %v2286_v45, %v2270_v10 }
0x10d5   :  { %v2277_v44 = vpop.permute.xlu0 %2276 }
0x10d6   :  { %v2279_v7 = vmul.f32 %v2277_v44, %v2269_v23  ;;  %v2291_v36 = vpop.permute.xlu1 %2290 }
0x10d7   :  { %v2293_v41 = vmul.f32 %v2291_v36, %v2270_v10 }
0x10d8   :  { %2281 = vrot.lane.b32.xlu0 %v2279_v7, %s5096_s3 }
0x10d9   :  { %2295 = vrot.lane.b32.xlu1 %v2293_v41, %s5096_s3 }
0x114a   :  { %v2282_v18 = vpop.permute.xlu0 %2281 }
0x114b   :  { %v6304_v40 = vadd.f32 %v2282_v18, %v2274_v49  ;;  %v2296_v9 = vpop.permute.xlu1 %2295 }
0x114c   :  { %v6306_v31 = vadd.f32 %v2296_v9, %v2288_v17 }
0x114d   :  { %4913 = vtanh.f32 %v6304_v40  ;;  %v2392_v36 = vrot.slane %v6304_v40, 6 }
0x114e   :  { %4915 = vtanh.f32 %v6306_v31  ;;  %v2406_v41 = vrot.slane %v6306_v31, 6  ;;  %v2702_v31 = vrot.slane %v6192_v51, 6 }
0x1157   :  { %v4914_v56 = vpop.eup %4913 }
0x1158   :  { %v4916_v13 = vpop.eup %4915  ;;  %2301 = vrot.lane.b32.xlu0 %v4914_v56, %s5097_s2 }
0x1159   :  { %2307 = vrot.lane.b32.xlu1 %v4916_v13, %s5097_s2 }
0x11ca   :  { %v2302_v42 = vpop.permute.xlu0 %2301 }
0x11cb   :  { %v2304_v24 = vmul.f32 %v2302_v42, %v2269_v23  ;;  %v2308_v25 = vpop.permute.xlu1 %2307 }
0x11cc   :  { %v2310_v22 = vmul.f32 %v2308_v25, %v2270_v10 }
0x11cd   :  { %2312 = vrot.lane.b32.xlu0 %v2304_v24, %s5096_s3 }
0x11ce   :  { %v2687_v16 = vrot.slane %v2310_v22, 2  ;;  %2316 = vrot.lane.b32.xlu1 %v2310_v22, %s5097_s2 }
0x11d0   :  { %v6315_v29 = vpack.i.bf16 %v2711_v26, %v2687_v16 }
0x123f   :  { %v6317_v6 = vpop.permute.xlu0 %2312 }
0x1240   :  { %v2317_v53 = vpop.permute.xlu1 %2316 }
0x1241   :  { %v2319_v3 = vsel %vm646_vm4, %v6317_v6, %v2317_v53 }
0x1242   :  { %v2322_v54 = vpack.c.bf16 %v2319_v3, %v2319_v3 }
0x1244   :  { %4138 = vmatmul.mubr.msk.bf16.vlgmr.msra.gmra.mrb[84].mxu1 %vm1082_vm6, %v2322_v54 }
0x1245   :  { %2567 = vmatpush1.bf16.msra.mxu1 %v6020_v62  ;;  %2598 = vmatprep.mubr.bf16.mxu1 %v5099_v32 }
0x1246   :  { %2568 = vmatprep.subr.bf16.mxu1 %v6033_v33 }
0x1249   :  { %2569 = vmatpush1.bf16.msra.mxu1 %v6038_v60 }
0x124a   :  { %2570 = vmatprep.subr.bf16.mxu1 %v6051_v47 }
0x124d   :  { %2571 = vmatpush1.bf16.msra.mxu1 %v6056_v39 }
0x124e   :  { %2572 = vmatprep.subr.bf16.mxu1 %v6069_v38 }
0x1251   :  { %2573 = vmatpush1.bf16.msra.mxu1 %v6074_v21 }
0x1317   :  { %v2360_v57 = vpop.f32.mrb[84].mxu1 }
0x1318   :  { %v2369_v12 = vrot.slane %v2360_v57, 6  ;;  %v2362_v35 = vpop.f32.mrb[85].mxu1 }
0x1319   :  { %v2370_v62 = vrot.slane %v2362_v35, 6  ;;  %v2364_v37 = vpop.f32.mrb[86].mxu1 }
0x131a   :  { %v2373_v15 = vadd.f32 %v2369_v12, %v6119_v1  ;;  %v2365_v33 = vpop.f32.mrb[87].mxu1 }
0x131b   :  { %v2374_v60 = vadd.f32 %v2370_v62, %v2320_v34 }
0x131c   :  { %v4139_v47 = vmul.f32 -1.442695, %v2373_v15 }
0x131d   :  { %v4140_v8 = vmul.f32 -1.442695, %v2374_v60 }
0x131e   :  { %4917 = vpow2.f32 %v4139_v47 }
0x131f   :  { %4919 = vpow2.f32 %v4140_v8 }
0x1320   :  { %4921 = vtanh.f32 %v2373_v15 }
0x1321   :  { %4923 = vtanh.f32 %v2374_v60 }
0x1328   :  { %v4918_v39 = vpop.eup %4917 }
0x1329   :  { %v4920_v38 = vpop.eup %4919  ;;  %v2383_v21 = vadd.f32 1.0, %v4918_v39 }
0x132a   :  { %v2384_v28 = vadd.f32 1.0, %v4920_v38  ;;  %v4922_v2 = vpop.eup %4921 }
0x132b   :  { %4925 = vrcp.f32 %v2383_v21  ;;  %v4924_v11 = vpop.eup %4923 }
0x132c   :  { %4927 = vrcp.f32 %v2384_v28 }
0x1335   :  { %v4926_v5 = vpop.eup %4925 }
0x1336   :  { %v4928_v27 = vpop.eup %4927  ;;  %v2389_v4 = vsel %vm6127_vm10, %v4922_v2, %v4926_v5 }
0x1337   :  { %2396 = vrot.lane.b32.xlu0 %v2389_v4, %s5097_s2  ;;  %v2390_v48 = vsel %vm6134_vm13, %v4924_v11, %v4928_v27  ;;  %v2394_v46 = vmul.f32 %v2392_v36, %v2389_v4 }
0x1338   :  { %2410 = vrot.lane.b32.xlu1 %v2390_v48, %s5097_s2  ;;  %v2408_v49 = vmul.f32 %v2406_v41, %v2390_v48 }
0x13a9   :  { %v2397_v23 = vpop.permute.xlu0 %2396 }
0x13aa   :  { %v2399_v10 = vmul.f32 %v2397_v23, %v2389_v4  ;;  %v2411_v44 = vpop.permute.xlu1 %2410 }
0x13ab   :  { %v2413_v7 = vmul.f32 %v2411_v44, %v2390_v48 }
0x13ac   :  { %2401 = vrot.lane.b32.xlu0 %v2399_v10, %s5096_s3 }
0x13ad   :  { %2415 = vrot.lane.b32.xlu1 %v2413_v7, %s5096_s3 }
0x141e   :  { %v2402_v45 = vpop.permute.xlu0 %2401 }
0x141f   :  { %v2404_v18 = vadd.f32 %v2402_v45, %v2394_v46  ;;  %v2416_v17 = vpop.permute.xlu1 %2415 }
0x1420   :  { %v2418_v9 = vadd.f32 %v2416_v17, %v2408_v49 }
0x1421   :  { %4929 = vtanh.f32 %v2404_v18  ;;  %v2512_v7 = vrot.slane %v2404_v18, 6 }
0x1422   :  { %4931 = vtanh.f32 %v2418_v9  ;;  %v2526_v36 = vrot.slane %v2418_v9, 6 }
0x142b   :  { %v4930_v56 = vpop.eup %4929 }
0x142c   :  { %v4932_v13 = vpop.eup %4931  ;;  %2421 = vrot.lane.b32.xlu0 %v4930_v56, %s5097_s2 }
0x142d   :  { %2427 = vrot.lane.b32.xlu1 %v4932_v13, %s5097_s2 }
0x149e   :  { %v2422_v42 = vpop.permute.xlu0 %2421 }
0x149f   :  { %v2424_v24 = vmul.f32 %v2422_v42, %v2389_v4  ;;  %v2428_v25 = vpop.permute.xlu1 %2427 }
0x14a0   :  { %v2430_v40 = vmul.f32 %v2428_v25, %v2390_v48 }
0x14a1   :  { %2432 = vrot.lane.b32.xlu0 %v2424_v24, %s5096_s3 }
0x14a2   :  { %v2682_v22 = vrot.slane %v2430_v40, 6  ;;  %2436 = vrot.lane.b32.xlu1 %v2430_v40, %s5097_s2 }
0x14a4   :  { %v6349_v26 = vpack.i.bf16 %v2702_v31, %v2682_v22 }
0x1513   :  { %v6351_v16 = vpop.permute.xlu0 %2432 }
0x1514   :  { %v2437_v53 = vpop.permute.xlu1 %2436 }
0x1515   :  { %v2439_v3 = vsel %vm646_vm4, %v6351_v16, %v2437_v53 }
0x1516   :  { %v2440_v54 = vpack.c.bf16 %v2439_v3, %v2439_v3 }
0x1518   :  { %v2442_v57 = vrot.slane %v2440_v54, 1 }
0x151a   :  { %4141 = vmatmul.mubr.msk.bf16.vlgmr.msra.gmra.mrb[88].mxu0 %vm1082_vm6, %v2442_v57 }
0x151b   :  { %2821 = vmatprep.mubr.bf16.mxu0 %v5099_v32 }
0x15ed   :  { %v2480_v12 = vpop.f32.mrb[88].mxu0 }
0x15ee   :  { %v2489_v35 = vrot.slane %v2480_v12, 4  ;;  %v2482_v51 = vpop.f32.mrb[89].mxu0 }
0x15ef   :  { %v2490_v62 = vrot.slane %v2482_v51, 4  ;;  %v2484_v37 = vpop.f32.mrb[90].mxu0 }
0x15f0   :  { %v2493_v15 = vadd.f32 %v2489_v35, %v6119_v1  ;;  %v2485_v33 = vpop.f32.mrb[91].mxu0 }
0x15f1   :  { %v2494_v60 = vadd.f32 %v2490_v62, %v2204_v63 }
0x15f2   :  { %v4142_v47 = vmul.f32 -1.442695, %v2493_v15 }
0x15f3   :  { %v4143_v8 = vmul.f32 -1.442695, %v2494_v60 }
0x15f4   :  { %4933 = vpow2.f32 %v4142_v47 }
0x15f5   :  { %4935 = vpow2.f32 %v4143_v8 }
0x15f6   :  { %4937 = vtanh.f32 %v2493_v15 }
0x15f7   :  { %4939 = vtanh.f32 %v2494_v60 }
0x15fe   :  { %v4934_v39 = vpop.eup %4933 }
0x15ff   :  { %v4936_v38 = vpop.eup %4935  ;;  %v2503_v21 = vadd.f32 1.0, %v4934_v39 }
0x1600   :  { %v2504_v28 = vadd.f32 1.0, %v4936_v38  ;;  %v4938_v2 = vpop.eup %4937 }
0x1601   :  { %4941 = vrcp.f32 %v2503_v21  ;;  %v4940_v11 = vpop.eup %4939 }
0x1602   :  { %4943 = vrcp.f32 %v2504_v28 }
0x160b   :  { %v4942_v5 = vpop.eup %4941 }
0x160c   :  { %v4944_v27 = vpop.eup %4943  ;;  %v2509_v4 = vsel %vm6127_vm10, %v4938_v2, %v4942_v5 }
0x160d   :  { %2516 = vrot.lane.b32.xlu0 %v2509_v4, %s5097_s2  ;;  %v2510_v63 = vsel %vm6134_vm13, %v4940_v11, %v4944_v27  ;;  %v2514_v41 = vmul.f32 %v2512_v7, %v2509_v4 }
0x160e   :  { %2530 = vrot.lane.b32.xlu1 %v2510_v63, %s5097_s2  ;;  %v2528_v45 = vmul.f32 %v2526_v36, %v2510_v63 }
0x167f   :  { %v2517_v48 = vpop.permute.xlu0 %2516 }
0x1680   :  { %v2519_v23 = vmul.f32 %v2517_v48, %v2509_v4  ;;  %v2531_v10 = vpop.permute.xlu1 %2530 }
0x1681   :  { %v2533_v44 = vmul.f32 %v2531_v10, %v2510_v63 }
0x1682   :  { %2521 = vrot.lane.b32.xlu0 %v2519_v23, %s5096_s3 }
0x1683   :  { %2535 = vrot.lane.b32.xlu1 %v2533_v44, %s5096_s3 }
0x16f4   :  { %v2522_v46 = vpop.permute.xlu0 %2521 }
0x16f5   :  { %v2524_v49 = vadd.f32 %v2522_v46, %v2514_v41  ;;  %v2536_v17 = vpop.permute.xlu1 %2535 }
0x16f6   :  { %v2538_v56 = vadd.f32 %v2536_v17, %v2528_v45  ;;  %v4807_v45 = vld [vmem:[%s6882_s10] ss:$8 sps:$4 sm:$0xff]  }
0x16f7   :  { %4945 = vtanh.f32 %v2524_v49 }
0x16f8   :  { %4947 = vtanh.f32 %v2538_v56  ;;  %v2646_v48 = vrot.slane %v2538_v56, 6  ;;  %v6408_v56 = vld [vmem:[%s6883_s11 + $0x4] ss:$8 sps:$4 sm:$0xff]  }
0x16f9   :  { %2883 = vmatprep.subr.bf16.mxu1 %v6408_v56 }
0x1701   :  { %v4946_v13 = vpop.eup %4945 }
0x1702   :  { %v4948_v42 = vpop.eup %4947  ;;  %2541 = vrot.lane.b32.xlu0 %v4946_v13, %s5097_s2  ;;  %v6413_v13 = vld [vmem:[%s6883_s11] ss:$8 sps:$4 sm:$0xff]  }
0x1703   :  { %2547 = vrot.lane.b32.xlu1 %v4948_v42, %s5097_s2  ;;  %v4813_v42 = vld [vmem:[%s6882_s10 + $0x10] ss:$8 sps:$4 sm:$0xff]  }
0x1774   :  { %v2542_v24 = vpop.permute.xlu0 %2541 }
0x1775   :  { %v2544_v25 = vmul.f32 %v2542_v24, %v2509_v4  ;;  %v2548_v40 = vpop.permute.xlu1 %2547  ;;  %v4815_v24 = vld [vmem:[%s6882_s10 + $0x14] ss:$8 sps:$4 sm:$0xff]  }
0x1776   :  { %v6370_v31 = vmul.f32 %v2548_v40, %v2510_v63  ;;  %v2632_v63 = vrot.slane %v2524_v49, 6  ;;  %v4809_v49 = vld [vmem:[%s6882_s10 + $0x4] ss:$8 sps:$4 sm:$0xff]   ;;  %v6433_v40 = vld [vmem:[%s6883_s11 + $0x10] ss:$8 sps:$4 sm:$0xff]  }
0x1777   :  { %2552 = vrot.lane.b32.xlu0 %v2544_v25, %s5096_s3  ;;  %2789 = vmatprep.subr.bf16.mxu0 %v4809_v49  ;;  %v6425_v25 = vld [vmem:[%s6883_s11 + $0x14] ss:$8 sps:$4 sm:$0xff]  }
0x1778   :  { %2556 = vrot.lane.b32.xlu1 %v6370_v31, %s5097_s2  ;;  %2790 = vmatpush1.bf16.msra.mxu0 %v4807_v45 }
0x1779   :  { %2791 = vmatprep.subr.bf16.mxu0 %v4815_v24 }
0x177c   :  { %2792 = vmatpush1.bf16.msra.mxu0 %v4813_v42 }
0x17e9   :  { %v6375_v18 = vpop.permute.xlu0 %2552 }
0x17ea   :  { %v2557_v9 = vpop.permute.xlu1 %2556 }
0x17eb   :  { %v2559_v22 = vsel %vm646_vm4, %v6375_v18, %v2557_v9  ;;  %v4819_v9 = vld [vmem:[%s6882_s10 + $0x20] ss:$8 sps:$4 sm:$0xff]  }
0x17ec   :  { %v2560_v53 = vpack.c.bf16 %v2559_v22, %v2559_v22  ;;  %v4827_v22 = vld [vmem:[%s6882_s10 + $0x34] ss:$8 sps:$4 sm:$0xff]  }
0x17ee   :  { %v2562_v3 = vrot.slane %v2560_v53, 2  ;;  %v4825_v53 = vld [vmem:[%s6882_s10 + $0x30] ss:$8 sps:$4 sm:$0xff]  }
0x17f0   :  { %4144 = vmatmul.mubr.msk.bf16.vlgmr.msra.gmra.mrb[88].mxu1 %vm1082_vm6, %v2562_v3  ;;  %v6468_v3 = vld [vmem:[%s6883_s11 + $0x34] ss:$8 sps:$4 sm:$0xff]  }
0x17f1   :  { %2915 = vmatprep.mubr.bf16.mxu1 %v5099_v32  ;;  %2884 = vmatpush1.bf16.msra.mxu1 %v6413_v13 }
0x17f2   :  { %2885 = vmatprep.subr.bf16.mxu1 %v6425_v25 }
0x17f5   :  { %2886 = vmatpush1.bf16.msra.mxu1 %v6433_v40 }
0x18c3   :  { %v2600_v54 = vpop.f32.mrb[88].mxu1 }
0x18c4   :  { %v2609_v57 = vrot.slane %v2600_v54, 2  ;;  %v2602_v12 = vpop.f32.mrb[89].mxu1  ;;  %v6473_v54 = vld [vmem:[%s6883_s11 + $0x30] ss:$8 sps:$4 sm:$0xff]  }
0x18c5   :  { %v2610_v35 = vrot.slane %v2602_v12, 2  ;;  %v2604_v51 = vpop.f32.mrb[90].mxu1 }
0x18c6   :  { %v2613_v62 = vadd.f32 %v2609_v57, %v6119_v1  ;;  %v2605_v37 = vpop.f32.mrb[91].mxu1 }
0x18c7   :  { %v2614_v15 = vadd.f32 %v2610_v35, %v2320_v34  ;;  %v2677_v35 = vrot.slane %v6370_v31, 2 }
0x18c8   :  { %v4145_v33 = vmul.f32 -1.442695, %v2613_v62 }
0x18c9   :  { %v4146_v60 = vmul.f32 -1.442695, %v2614_v15 }
0x18ca   :  { %4949 = vpow2.f32 %v4145_v33 }
0x18cb   :  { %4951 = vpow2.f32 %v4146_v60 }
0x18cc   :  { %4953 = vtanh.f32 %v2613_v62 }
0x18cd   :  { %4955 = vtanh.f32 %v2614_v15 }
0x18d4   :  { %v4950_v47 = vpop.eup %4949 }
0x18d5   :  { %v4952_v8 = vpop.eup %4951  ;;  %v2623_v39 = vadd.f32 1.0, %v4950_v47 }
0x18d6   :  { %v2624_v38 = vadd.f32 1.0, %v4952_v8  ;;  %v4954_v21 = vpop.eup %4953 }
0x18d7   :  { %4957 = vrcp.f32 %v2623_v39  ;;  %v4956_v28 = vpop.eup %4955 }
0x18d8   :  { %4959 = vrcp.f32 %v2624_v38 }
0x18e1   :  { %v4958_v2 = vpop.eup %4957 }
0x18e2   :  { %v4960_v1 = vpop.eup %4959  ;;  %v6386_v58 = vsel %vm6127_vm10, %v4954_v21, %v4958_v2 }
0x18e3   :  { %2636 = vrot.lane.b32.xlu1 %v6386_v58, %s5097_s2  ;;  %v2630_v34 = vsel %vm6134_vm13, %v4956_v28, %v4960_v1  ;;  %v2634_v23 = vmul.f32 %v2632_v63, %v6386_v58 }
0x18e4   :  { %2650 = vrot.lane.b32.xlu0 %v2630_v34, %s5097_s2  ;;  %v2648_v44 = vmul.f32 %v2646_v48, %v2630_v34 }
0x1955   :  { %v2637_v11 = vpop.permute.xlu1 %2636 }
0x1956   :  { %v2639_v5 = vmul.f32 %v2637_v11, %v6386_v58  ;;  %v2651_v27 = vpop.permute.xlu0 %2650 }
0x1957   :  { %v2653_v4 = vmul.f32 %v2651_v27, %v2630_v34 }
0x1958   :  { %2641 = vrot.lane.b32.xlu1 %v2639_v5, %s5096_s3 }
0x1959   :  { %2655 = vrot.lane.b32.xlu0 %v2653_v4, %s5096_s3 }
0x19ca   :  { %v2642_v10 = vpop.permute.xlu1 %2641 }
0x19cb   :  { %v2644_v7 = vadd.f32 %v2642_v10, %v2634_v23  ;;  %v2656_v36 = vpop.permute.xlu0 %2655 }
0x19cc   :  { %v2658_v41 = vadd.f32 %v2656_v36, %v2648_v44 }
0x19cd   :  { %4961 = vtanh.f32 %v2644_v7 }
0x19ce   :  { %4963 = vtanh.f32 %v2658_v41 }
0x19d7   :  { %v4962_v46 = vpop.eup %4961 }
0x19d8   :  { %v4964_v17 = vpop.eup %4963  ;;  %2661 = vrot.lane.b32.xlu1 %v4962_v46, %s5097_s2  ;;  %v2734_v46 = vld [vmem:[%s6884_s12] sm:$0x3] }
0x19d9   :  { %2667 = vrot.lane.b32.xlu0 %v4964_v17, %s5097_s2  ;;  %v2739_v45 = vrot.slane %v2734_v46, %v1556_v50  ;;  %v2743_v17 = vrot.slane %v2734_v46, %v1560_v52 }
0x19dc   :  { %4695 = vrot.lane.b32.xlu1 %v6275_v59, %s5097_s2  ;;  %v4821_v59 = vld [vmem:[%s6882_s10 + $0x24] ss:$8 sps:$4 sm:$0xff]  }
0x19dd   :  { %4700 = vrot.lane.b32.xlu0 %v6349_v26, %s5097_s2  ;;  %2793 = vmatprep.subr.bf16.mxu0 %v4821_v59  ;;  %v6450_v26 = vld [vmem:[%s6883_s11 + $0x24] ss:$8 sps:$4 sm:$0xff]  }
0x19de   :  { %2794 = vmatpush1.bf16.msra.mxu0 %v4819_v9  ;;  %2887 = vmatprep.subr.bf16.mxu1 %v6450_v26 }
0x19df   :  { %2795 = vmatprep.subr.bf16.mxu0 %v4827_v22 }
0x19e0   :  { %4705 = vrot.lane.b32.xlu1 %v6315_v29, %s5097_s2  ;;  %v6455_v29 = vld [vmem:[%s6883_s11 + $0x20] ss:$8 sps:$4 sm:$0xff]  }
0x19e1   :  { %2888 = vmatpush1.bf16.msra.mxu1 %v6455_v29 }
0x19e2   :  { %2796 = vmatpush1.bf16.msra.mxu0 %v4825_v53  ;;  %2889 = vmatprep.subr.bf16.mxu1 %v6468_v3 }
0x19e3   :  { %2991 = vmatprep.subr.bf16.mxu0 %v6408_v56 }
0x19e5   :  { %2890 = vmatpush1.bf16.msra.mxu1 %v6473_v54 }
0x19e6   :  { %3111 = vmatprep.subr.bf16.mxu1 %v6408_v56 }
0x19e8   :  { %2916 = vmatmul.mubr.bf16.vlgmr.msra.gmra.mrb[92].mxu1 %v5099_v32 }
0x19e9   :  { %3112 = vmatpush1.bf16.msra.mxu1 %v6413_v13  ;;  %3143 = vmatprep.mubr.bf16.mxu1 %v5099_v32 }
0x19ea   :  { %3113 = vmatprep.subr.bf16.mxu1 %v6425_v25 }
0x19ed   :  { %3114 = vmatpush1.bf16.msra.mxu1 %v6433_v40 }
0x19ee   :  { %3115 = vmatprep.subr.bf16.mxu1 %v6450_v26 }
0x19f1   :  { %3116 = vmatpush1.bf16.msra.mxu1 %v6455_v29 }
0x19f2   :  { %3117 = vmatprep.subr.bf16.mxu1 %v6468_v3 }
0x19f5   :  { %3118 = vmatpush1.bf16.msra.mxu1 %v6473_v54 }
0x19f6   :  { %3354 = vmatprep.subr.bf16.mxu1 %v6408_v56 }
0x1a4a   :  { %v2662_v37 = vpop.permute.xlu1 %2661 }
0x1a4b   :  { %v2668_v57 = vpop.permute.xlu0 %2667  ;;  %v2664_v15 = vmul.f32 %v2662_v37, %v6386_v58 }
0x1a4c   :  { %v2670_v12 = vmul.f32 %v2668_v57, %v2630_v34 }
0x1a4e   :  { %v2672_v51 = vrot.slane %v2670_v12, 6  ;;  %v4696_v31 = vpop.permute.xlu1 %4695 }
0x1a4f   :  { %v4698_v33 = vunpack.i.h.bf16 %v4696_v31  ;;  %v4697_v60 = vunpack.i.l.bf16 %v4696_v31  ;;  %v4701_v47 = vpop.permute.xlu0 %4700 }
0x1a50   :  { %v4709_v62 = vpack.i.bf16 %v2677_v35, %v2672_v51  ;;  %v4703_v8 = vunpack.i.h.bf16 %v4701_v47  ;;  %v4702_v28 = vunpack.i.l.bf16 %v4701_v47 }
0x1a51   :  { %v2701_v38 = vsel %vm646_vm4, %v6351_v16, %v4698_v33  ;;  %v2696_v21 = vsel %vm646_vm4, %v6317_v6, %v4697_v60 }
0x1a52   :  { %4710 = vrot.lane.b32.xlu0 %v4709_v62, %s5097_s2  ;;  %v4706_v39 = vpop.permute.xlu1 %4705  ;;  %v2706_v11 = vsel %vm646_vm4, %v6375_v18, %v4703_v8  ;;  %v2722_v5 = vsel %vm2716_vm14, %v2696_v21, %v2701_v38  ;;  %v2686_v6 = vsel %vm646_vm4, %v6237_v19, %v4702_v28 }
0x1a53   :  { %v4707_v1 = vunpack.i.l.bf16 %v4706_v39  ;;  %v4708_v27 = vunpack.i.h.bf16 %v4706_v39  ;;  %v2723_v44 = vsel %vm2718_vm15, %v2722_v5, %v2706_v11 }
0x1a55   :  { %v2691_v18 = vsel %vm646_vm4, %v6277_v61, %v4707_v1 }
0x1a56   :  { %2708 = vrot.lane.b32.xlu0 %v2664_v15, %s5096_s3 }
0x1abb   :  { %v2917_v19 = vpop.f32.mrb[92].mxu1 }
0x1abc   :  { %v2919_v61 = vpop.f32.mrb[93].mxu1 }
0x1abd   :  { %v2921_v36 = vpop.f32.mrb[94].mxu1 }
0x1abe   :  { %v2922_v41 = vpop.f32.mrb[95].mxu1 }
0x1ac4   :  { %v4711_v2 = vpop.permute.xlu0 %4710 }
0x1ac5   :  { %v4713_v58 = vunpack.i.h.bf16 %v4711_v2  ;;  %v4712_v34 = vunpack.i.l.bf16 %v4711_v2 }
0x1ac7   :  { %v2681_v4 = vsel %vm646_vm4, %v6197_v43, %v4713_v58  ;;  %v2676_v16 = vsel %vm646_vm4, %v6156_v20, %v4712_v34 }
0x1ac8   :  { %v2717_v63 = vsel %vm2716_vm14, %v2676_v16, %v2681_v4  ;;  %v2709_v48 = vpop.permute.xlu0 %2708 }
0x1ac9   :  { %v2715_v23 = vsel %vm646_vm4, %v2709_v48, %v4708_v27  ;;  %v2719_v10 = vsel %vm2718_vm15, %v2717_v63, %v2686_v6 }
0x1aca   :  { %v2721_v43 = vsel %vm2720_vm0, %v2719_v10, %v2691_v18  ;;  %v2724_v20 = vsel %vm2720_vm0, %v2723_v44, %v2715_v23 }
0x1acb   :  { %v2725_v7 = vpack.c.bf16 %v2724_v20, %v2721_v43 }
0x1acd   :  { %4155 = vmatmul.mubr.msk.bf16.vlgmr.msra.gmra.mrb[92].mxu0 %vm1082_vm6, %v2725_v7 }
0x1ace   :  { %2992 = vmatpush1.bf16.msra.mxu0 %v6413_v13  ;;  %3023 = vmatprep.mubr.bf16.mxu0 %v5099_v32 }
0x1acf   :  { %2993 = vmatprep.subr.bf16.mxu0 %v6425_v25 }
0x1ad2   :  { %2994 = vmatpush1.bf16.msra.mxu0 %v6433_v40 }
0x1ad3   :  { %2995 = vmatprep.subr.bf16.mxu0 %v6450_v26 }
0x1ad6   :  { %2996 = vmatpush1.bf16.msra.mxu0 %v6455_v29 }
0x1ad7   :  { %2997 = vmatprep.subr.bf16.mxu0 %v6468_v3 }
0x1ada   :  { %2998 = vmatpush1.bf16.msra.mxu0 %v6473_v54 }
0x1adb   :  { %3231 = vmatprep.subr.bf16.mxu0 %v6408_v56 }
0x1ba0   :  { %v2823_v49 = vpop.f32.mrb[92].mxu0 }
0x1ba1   :  { %v6531_v42 = vadd.f32 %v2823_v49, %v2739_v45  ;;  %v2825_v24 = vpop.f32.mrb[93].mxu0 }
0x1ba2   :  { %v6533_v59 = vadd.f32 %v2825_v24, %v2743_v17  ;;  %v2827_v9 = vpop.f32.mrb[94].mxu0 }
0x1ba3   :  { %v6535_v22 = vadd.f32 %v2827_v9, %v2739_v45  ;;  %v2924_v53 = vadd.f32 %v2917_v19, %v6531_v42  ;;  %v2829_v57 = vpop.f32.mrb[95].mxu0 }
0x1ba4   :  { %v6538_v12 = vadd.f32 %v2829_v57, %v2743_v17 }
0x1ba5   :  { %v4164_v35 = vmul.f32 -1.442695, %v2924_v53 }
0x1ba6   :  { %v2841_v50 = vrot.slane %v6538_v12, 6 }
0x1ba7   :  { %4965 = vpow2.f32 %v4164_v35 }
0x1ba8   :  { %v2925_v14 = vadd.f32 %v2919_v61, %v2841_v50  ;;  %v2985_v61 = vrot.slane %v6538_v12, 2 }
0x1baa   :  { %v4165_v52 = vmul.f32 -1.442695, %v2925_v14 }
0x1bac   :  { %4967 = vpow2.f32 %v4165_v52 }
0x1bad   :  { %4969 = vtanh.f32 %v2924_v53 }
0x1bb1   :  { %v4966_v51 = vpop.eup %4965 }
0x1bb2   :  { %v2934_v62 = vadd.f32 1.0, %v4966_v51 }
0x1bb4   :  { %4971 = vrcp.f32 %v2934_v62 }
0x1bb5   :  { %4973 = vtanh.f32 %v2925_v14 }
0x1bb6   :  { %v4968_v37 = vpop.eup %4967 }
0x1bb7   :  { %v2935_v15 = vadd.f32 1.0, %v4968_v37  ;;  %v4970_v31 = vpop.eup %4969 }
0x1bb9   :  { %4975 = vrcp.f32 %v2935_v15 }
0x1bbe   :  { %v4972_v33 = vpop.eup %4971 }
0x1bbf   :  { %v2940_v60 = vsel %vm6127_vm10, %v4970_v31, %v4972_v33  ;;  %v4974_v47 = vpop.eup %4973 }
0x1bc0   :  { %2944 = vrot.lane.b32.xlu1 %v2940_v60, %s5097_s2  ;;  %v2942_v1 = vmul.f32 0.0, %v2940_v60 }
0x1bc3   :  { %v4976_v8 = vpop.eup %4975 }
0x1bc4   :  { %v2941_v39 = vsel %vm6134_vm13, %v4974_v47, %v4976_v8 }
0x1bc5   :  { %2955 = vrot.lane.b32.xlu0 %v2941_v39, %s5097_s2  ;;  %v2953_v11 = vmul.f32 0.0, %v2941_v39 }
0x1c32   :  { %v2945_v38 = vpop.permute.xlu1 %2944 }
0x1c33   :  { %v2947_v21 = vmul.f32 %v2945_v38, %v2940_v60 }
0x1c35   :  { %2949 = vrot.lane.b32.xlu1 %v2947_v21, %s5096_s3 }
0x1c37   :  { %v2956_v28 = vpop.permute.xlu0 %2955 }
0x1c38   :  { %v2958_v2 = vmul.f32 %v2956_v28, %v2941_v39 }
0x1c3a   :  { %2960 = vrot.lane.b32.xlu0 %v2958_v2, %s5096_s3 }
0x1ca7   :  { %v2950_v58 = vpop.permute.xlu1 %2949 }
0x1ca8   :  { %v6551_v34 = vadd.f32 %v2950_v58, %v2942_v1 }
0x1caa   :  { %4977 = vtanh.f32 %v6551_v34  ;;  %v3057_v8 = vrot.slane %v6551_v34, 6 }
0x1cac   :  { %v2961_v5 = vpop.permute.xlu0 %2960 }
0x1cad   :  { %v6554_v27 = vadd.f32 %v2961_v5, %v2953_v11 }
0x1caf   :  { %4979 = vtanh.f32 %v6554_v27 }
0x1cb4   :  { %v4978_v4 = vpop.eup %4977 }
0x1cb5   :  { %2966 = vrot.lane.b32.xlu1 %v4978_v4, %s5097_s2 }
0x1cb9   :  { %v4980_v16 = vpop.eup %4979 }
0x1cba   :  { %2972 = vrot.lane.b32.xlu0 %v4980_v16, %s5097_s2 }
0x1d27   :  { %v2967_v6 = vpop.permute.xlu1 %2966 }
0x1d28   :  { %v2969_v63 = vmul.f32 %v2967_v6, %v2940_v60 }
0x1d2a   :  { %2977 = vrot.lane.b32.xlu1 %v2969_v63, %s5096_s3 }
0x1d2c   :  { %v2973_v48 = vpop.permute.xlu0 %2972 }
0x1d2d   :  { %v6560_v18 = vmul.f32 %v2973_v48, %v2941_v39  ;;  %v3071_v39 = vrot.slane %v6554_v27, 6 }
0x1d2f   :  { %2981 = vrot.lane.b32.xlu0 %v6560_v18, %s5097_s2 }
0x1d9c   :  { %v6564_v23 = vpop.permute.xlu1 %2977 }
0x1da1   :  { %v2982_v10 = vpop.permute.xlu0 %2981 }
0x1da2   :  { %v2984_v44 = vsel %vm646_vm4, %v6564_v23, %v2982_v10 }
0x1da3   :  { %v2987_v43 = vpack.c.bf16 %v2984_v44, %v2984_v44 }
0x1da5   :  { %4166 = vmatmul.mubr.msk.bf16.vlgmr.msra.gmra.mrb[96].mxu0 %vm1082_vm6, %v2987_v43 }
0x1da6   :  { %3232 = vmatpush1.bf16.msra.mxu0 %v6413_v13  ;;  %3263 = vmatprep.mubr.bf16.mxu0 %v5099_v32 }
0x1da7   :  { %3233 = vmatprep.subr.bf16.mxu0 %v6425_v25 }
0x1daa   :  { %3234 = vmatpush1.bf16.msra.mxu0 %v6433_v40 }
0x1dab   :  { %3235 = vmatprep.subr.bf16.mxu0 %v6450_v26 }
0x1dae   :  { %3236 = vmatpush1.bf16.msra.mxu0 %v6455_v29 }
0x1daf   :  { %3237 = vmatprep.subr.bf16.mxu0 %v6468_v3 }
0x1db2   :  { %3238 = vmatpush1.bf16.msra.mxu0 %v6473_v54 }
0x1db3   :  { %3468 = vmatprep.subr.bf16.mxu0 %v6408_v56 }
0x1e78   :  { %v3025_v20 = vpop.f32.mrb[96].mxu0 }
0x1e79   :  { %v3034_v7 = vrot.slane %v3025_v20, 6  ;;  %v3027_v19 = vpop.f32.mrb[97].mxu0 }
0x1e7a   :  { %v3035_v36 = vrot.slane %v3027_v19, 6  ;;  %v3029_v41 = vpop.f32.mrb[98].mxu0 }
0x1e7b   :  { %v3038_v46 = vadd.f32 %v3034_v7, %v6531_v42  ;;  %v3030_v45 = vpop.f32.mrb[99].mxu0 }
0x1e7c   :  { %v3039_v17 = vadd.f32 %v3035_v36, %v2985_v61 }
0x1e7d   :  { %v4167_v49 = vmul.f32 -1.442695, %v3038_v46 }
0x1e7e   :  { %v4168_v24 = vmul.f32 -1.442695, %v3039_v17 }
0x1e7f   :  { %4981 = vpow2.f32 %v4167_v49 }
0x1e80   :  { %4983 = vpow2.f32 %v4168_v24 }
0x1e81   :  { %4985 = vtanh.f32 %v3038_v46 }
0x1e82   :  { %4987 = vtanh.f32 %v3039_v17 }
0x1e89   :  { %v4982_v9 = vpop.eup %4981 }
0x1e8a   :  { %v4984_v53 = vpop.eup %4983  ;;  %v3048_v57 = vadd.f32 1.0, %v4982_v9 }
0x1e8b   :  { %v3049_v35 = vadd.f32 1.0, %v4984_v53  ;;  %v4986_v14 = vpop.eup %4985 }
0x1e8c   :  { %4989 = vrcp.f32 %v3048_v57  ;;  %v4988_v52 = vpop.eup %4987 }
0x1e8d   :  { %4991 = vrcp.f32 %v3049_v35 }
0x1e96   :  { %v4990_v51 = vpop.eup %4989 }
0x1e97   :  { %v4992_v62 = vpop.eup %4991  ;;  %v3054_v37 = vsel %vm6127_vm10, %v4986_v14, %v4990_v51 }
0x1e98   :  { %3061 = vrot.lane.b32.xlu1 %v3054_v37, %s5097_s2  ;;  %v3055_v15 = vsel %vm6134_vm13, %v4988_v52, %v4992_v62  ;;  %v3059_v38 = vmul.f32 %v3057_v8, %v3054_v37 }
0x1e99   :  { %3075 = vrot.lane.b32.xlu0 %v3055_v15, %s5097_s2  ;;  %v3073_v28 = vmul.f32 %v3071_v39, %v3055_v15 }
0x1f0a   :  { %v3062_v31 = vpop.permute.xlu1 %3061 }
0x1f0b   :  { %v3064_v33 = vmul.f32 %v3062_v31, %v3054_v37  ;;  %v3076_v60 = vpop.permute.xlu0 %3075 }
0x1f0c   :  { %v3078_v47 = vmul.f32 %v3076_v60, %v3055_v15 }
0x1f0d   :  { %3066 = vrot.lane.b32.xlu1 %v3064_v33, %s5096_s3 }
0x1f0e   :  { %3080 = vrot.lane.b32.xlu0 %v3078_v47, %s5096_s3 }
0x1f7f   :  { %v3067_v21 = vpop.permute.xlu1 %3066 }
0x1f80   :  { %v6592_v2 = vadd.f32 %v3067_v21, %v3059_v38  ;;  %v3081_v1 = vpop.permute.xlu0 %3080 }
0x1f81   :  { %v6594_v58 = vadd.f32 %v3081_v1, %v3073_v28 }
0x1f82   :  { %4993 = vtanh.f32 %v6592_v2  ;;  %v3177_v60 = vrot.slane %v6592_v2, 6 }
0x1f83   :  { %4995 = vtanh.f32 %v6594_v58  ;;  %v3191_v47 = vrot.slane %v6594_v58, 6 }
0x1f8c   :  { %v4994_v11 = vpop.eup %4993 }
0x1f8d   :  { %v4996_v5 = vpop.eup %4995  ;;  %3086 = vrot.lane.b32.xlu1 %v4994_v11, %s5097_s2 }
0x1f8e   :  { %3092 = vrot.lane.b32.xlu0 %v4996_v5, %s5097_s2 }
0x1fff   :  { %v3087_v34 = vpop.permute.xlu1 %3086 }
0x2000   :  { %v3089_v27 = vmul.f32 %v3087_v34, %v3054_v37  ;;  %v3093_v4 = vpop.permute.xlu0 %3092 }
0x2001   :  { %v6600_v16 = vmul.f32 %v3093_v4, %v3055_v15 }
0x2002   :  { %3097 = vrot.lane.b32.xlu1 %v3089_v27, %s5096_s3 }
0x2003   :  { %3101 = vrot.lane.b32.xlu0 %v6600_v16, %s5097_s2 }
0x2074   :  { %v6605_v6 = vpop.permute.xlu1 %3097 }
0x2075   :  { %v3102_v63 = vpop.permute.xlu0 %3101 }
0x2076   :  { %v3104_v48 = vsel %vm646_vm4, %v6605_v6, %v3102_v63 }
0x2077   :  { %v3105_v10 = vpack.c.bf16 %v3104_v48, %v3104_v48 }
0x2079   :  { %v3107_v44 = vrot.slane %v3105_v10, 1 }
0x207b   :  { %4169 = vmatmul.mubr.msk.bf16.vlgmr.msra.gmra.mrb[96].mxu1 %vm1082_vm6, %v3107_v44 }
0x207c   :  { %3355 = vmatpush1.bf16.msra.mxu1 %v6413_v13  ;;  %3386 = vmatprep.mubr.bf16.mxu1 %v5099_v32 }
0x207d   :  { %3356 = vmatprep.subr.bf16.mxu1 %v6425_v25 }
0x2080   :  { %3357 = vmatpush1.bf16.msra.mxu1 %v6433_v40 }
0x2081   :  { %3358 = vmatprep.subr.bf16.mxu1 %v6450_v26 }
0x2084   :  { %3359 = vmatpush1.bf16.msra.mxu1 %v6455_v29 }
0x2085   :  { %3360 = vmatprep.subr.bf16.mxu1 %v6468_v3 }
0x2088   :  { %3361 = vmatpush1.bf16.msra.mxu1 %v6473_v54 }
0x2089   :  { %3588 = vmatprep.subr.bf16.mxu1 %v6408_v56 }
0x214e   :  { %v3145_v43 = vpop.f32.mrb[96].mxu1 }
0x214f   :  { %v3154_v20 = vrot.slane %v3145_v43, 4  ;;  %v3147_v7 = vpop.f32.mrb[97].mxu1 }
0x2150   :  { %v3155_v19 = vrot.slane %v3147_v7, 4  ;;  %v3149_v36 = vpop.f32.mrb[98].mxu1 }
0x2151   :  { %v3158_v41 = vadd.f32 %v3154_v20, %v6531_v42  ;;  %v3150_v46 = vpop.f32.mrb[99].mxu1 }
0x2152   :  { %v3159_v45 = vadd.f32 %v3155_v19, %v2841_v50 }
0x2153   :  { %v4170_v17 = vmul.f32 -1.442695, %v3158_v41 }
0x2154   :  { %v4171_v49 = vmul.f32 -1.442695, %v3159_v45 }
0x2155   :  { %4997 = vpow2.f32 %v4170_v17 }
0x2156   :  { %4999 = vpow2.f32 %v4171_v49 }
0x2157   :  { %5001 = vtanh.f32 %v3158_v41 }
0x2158   :  { %5003 = vtanh.f32 %v3159_v45 }
0x215f   :  { %v4998_v24 = vpop.eup %4997 }
0x2160   :  { %v5000_v9 = vpop.eup %4999  ;;  %v3168_v53 = vadd.f32 1.0, %v4998_v24 }
0x2161   :  { %v3169_v57 = vadd.f32 1.0, %v5000_v9  ;;  %v5002_v35 = vpop.eup %5001 }
0x2162   :  { %5005 = vrcp.f32 %v3168_v53  ;;  %v5004_v14 = vpop.eup %5003 }
0x2163   :  { %5007 = vrcp.f32 %v3169_v57 }
0x216c   :  { %v5006_v52 = vpop.eup %5005 }
0x216d   :  { %v5008_v51 = vpop.eup %5007  ;;  %v3174_v62 = vsel %vm6127_vm10, %v5002_v35, %v5006_v52 }
0x216e   :  { %3181 = vrot.lane.b32.xlu1 %v3174_v62, %s5097_s2  ;;  %v3175_v50 = vsel %vm6134_vm13, %v5004_v14, %v5008_v51  ;;  %v3179_v8 = vmul.f32 %v3177_v60, %v3174_v62 }
0x216f   :  { %3195 = vrot.lane.b32.xlu0 %v3175_v50, %s5097_s2  ;;  %v3193_v38 = vmul.f32 %v3191_v47, %v3175_v50 }
0x21e0   :  { %v3182_v37 = vpop.permute.xlu1 %3181 }
0x21e1   :  { %v3184_v15 = vmul.f32 %v3182_v37, %v3174_v62  ;;  %v3196_v31 = vpop.permute.xlu0 %3195 }
0x21e2   :  { %v3198_v33 = vmul.f32 %v3196_v31, %v3175_v50 }
0x21e3   :  { %3186 = vrot.lane.b32.xlu1 %v3184_v15, %s5096_s3 }
0x21e4   :  { %3200 = vrot.lane.b32.xlu0 %v3198_v33, %s5096_s3 }
0x2255   :  { %v3187_v39 = vpop.permute.xlu1 %3186 }
0x2256   :  { %v6632_v21 = vadd.f32 %v3187_v39, %v3179_v8  ;;  %v3201_v28 = vpop.permute.xlu0 %3200 }
0x2257   :  { %v6634_v1 = vadd.f32 %v3201_v28, %v3193_v38 }
0x2258   :  { %5009 = vtanh.f32 %v6632_v21  ;;  %v3297_v37 = vrot.slane %v6632_v21, 6 }
0x2259   :  { %5011 = vtanh.f32 %v6634_v1  ;;  %v3311_v15 = vrot.slane %v6634_v1, 6 }
0x2262   :  { %v5010_v11 = vpop.eup %5009 }
0x2263   :  { %v5012_v5 = vpop.eup %5011  ;;  %3206 = vrot.lane.b32.xlu1 %v5010_v11, %s5097_s2 }
0x2264   :  { %3212 = vrot.lane.b32.xlu0 %v5012_v5, %s5097_s2 }
0x22d5   :  { %v3207_v2 = vpop.permute.xlu1 %3206 }
0x22d6   :  { %v3209_v58 = vmul.f32 %v3207_v2, %v3174_v62  ;;  %v3213_v34 = vpop.permute.xlu0 %3212 }
0x22d7   :  { %v6640_v27 = vmul.f32 %v3213_v34, %v3175_v50 }
0x22d8   :  { %3217 = vrot.lane.b32.xlu1 %v3209_v58, %s5096_s3 }
0x22d9   :  { %3221 = vrot.lane.b32.xlu0 %v6640_v27, %s5097_s2  ;;  %v3839_v2 = vrot.slane %v6640_v27, 2 }
0x234a   :  { %v6645_v4 = vpop.permute.xlu1 %3217 }
0x234b   :  { %v3222_v63 = vpop.permute.xlu0 %3221 }
0x234c   :  { %v3224_v48 = vsel %vm646_vm4, %v6645_v4, %v3222_v63 }
0x234d   :  { %v3225_v10 = vpack.c.bf16 %v3224_v48, %v3224_v48 }
0x234f   :  { %v3227_v44 = vrot.slane %v3225_v10, 2 }
0x2351   :  { %4172 = vmatmul.mubr.msk.bf16.vlgmr.msra.gmra.mrb[100].mxu0 %vm1082_vm6, %v3227_v44 }
0x2352   :  { %3469 = vmatpush1.bf16.msra.mxu0 %v6413_v13  ;;  %3500 = vmatprep.mubr.bf16.mxu0 %v5099_v32 }
0x2353   :  { %3470 = vmatprep.subr.bf16.mxu0 %v6425_v25 }
0x2356   :  { %3471 = vmatpush1.bf16.msra.mxu0 %v6433_v40 }
0x2357   :  { %3472 = vmatprep.subr.bf16.mxu0 %v6450_v26 }
0x235a   :  { %3473 = vmatpush1.bf16.msra.mxu0 %v6455_v29 }
0x235b   :  { %3474 = vmatprep.subr.bf16.mxu0 %v6468_v3 }
0x235e   :  { %3475 = vmatpush1.bf16.msra.mxu0 %v6473_v54 }
0x235f   :  { %3708 = vmatprep.subr.bf16.mxu0 %v6408_v56 }
0x2424   :  { %v3265_v43 = vpop.f32.mrb[100].mxu0 }
0x2425   :  { %v3274_v20 = vrot.slane %v3265_v43, 2  ;;  %v3267_v7 = vpop.f32.mrb[101].mxu0 }
0x2426   :  { %v3275_v19 = vrot.slane %v3267_v7, 2  ;;  %v3269_v36 = vpop.f32.mrb[102].mxu0 }
0x2427   :  { %v3278_v41 = vadd.f32 %v3274_v20, %v6531_v42  ;;  %v3270_v46 = vpop.f32.mrb[103].mxu0  ;;  %v3346_v20 = vrot.slane %v6533_v59, 6 }
0x2428   :  { %v3279_v45 = vadd.f32 %v3275_v19, %v2985_v61 }
0x2429   :  { %v4173_v17 = vmul.f32 -1.442695, %v3278_v41 }
0x242a   :  { %v4174_v49 = vmul.f32 -1.442695, %v3279_v45 }
0x242b   :  { %5013 = vpow2.f32 %v4173_v17 }
0x242c   :  { %5015 = vpow2.f32 %v4174_v49 }
0x242d   :  { %5017 = vtanh.f32 %v3278_v41 }
0x242e   :  { %5019 = vtanh.f32 %v3279_v45 }
0x2435   :  { %v5014_v24 = vpop.eup %5013 }
0x2436   :  { %v5016_v9 = vpop.eup %5015  ;;  %v3288_v53 = vadd.f32 1.0, %v5014_v24 }
0x2437   :  { %v3289_v56 = vadd.f32 1.0, %v5016_v9  ;;  %v5018_v57 = vpop.eup %5017 }
0x2438   :  { %5021 = vrcp.f32 %v3288_v53  ;;  %v5020_v35 = vpop.eup %5019 }
0x2439   :  { %5023 = vrcp.f32 %v3289_v56 }
0x2442   :  { %v5022_v14 = vpop.eup %5021 }
0x2443   :  { %v5024_v42 = vpop.eup %5023  ;;  %v3294_v12 = vsel %vm6127_vm10, %v5018_v57, %v5022_v14 }
0x2444   :  { %3301 = vrot.lane.b32.xlu1 %v3294_v12, %s5097_s2  ;;  %v3295_v61 = vsel %vm6134_vm13, %v5020_v35, %v5024_v42  ;;  %v3299_v31 = vmul.f32 %v3297_v37, %v3294_v12 }
0x2445   :  { %3315 = vrot.lane.b32.xlu0 %v3295_v61, %s5097_s2  ;;  %v3313_v60 = vmul.f32 %v3311_v15, %v3295_v61 }
0x24b6   :  { %v3302_v52 = vpop.permute.xlu1 %3301 }
0x24b7   :  { %v3304_v51 = vmul.f32 %v3302_v52, %v3294_v12  ;;  %v3316_v62 = vpop.permute.xlu0 %3315 }
0x24b8   :  { %v3318_v50 = vmul.f32 %v3316_v62, %v3295_v61 }
0x24b9   :  { %3306 = vrot.lane.b32.xlu1 %v3304_v51, %s5096_s3 }
0x24ba   :  { %3320 = vrot.lane.b32.xlu0 %v3318_v50, %s5096_s3 }
0x252b   :  { %v3307_v33 = vpop.permute.xlu1 %3306 }
0x252c   :  { %v6672_v47 = vadd.f32 %v3307_v33, %v3299_v31  ;;  %v3321_v8 = vpop.permute.xlu0 %3320 }
0x252d   :  { %v6674_v39 = vadd.f32 %v3321_v8, %v3313_v60 }
0x252e   :  { %5025 = vtanh.f32 %v6672_v47  ;;  %v3414_v50 = vrot.slane %v6672_v47, 6 }
0x252f   :  { %5027 = vtanh.f32 %v6674_v39  ;;  %v3428_v37 = vrot.slane %v6674_v39, 6 }
0x2538   :  { %v5026_v38 = vpop.eup %5025 }
0x2539   :  { %v5028_v28 = vpop.eup %5027  ;;  %3326 = vrot.lane.b32.xlu1 %v5026_v38, %s5097_s2 }
0x253a   :  { %3332 = vrot.lane.b32.xlu0 %v5028_v28, %s5097_s2 }
0x25ab   :  { %v3327_v21 = vpop.permute.xlu1 %3326 }
0x25ac   :  { %v3329_v1 = vmul.f32 %v3327_v21, %v3294_v12  ;;  %v3333_v11 = vpop.permute.xlu0 %3332 }
0x25ad   :  { %v3335_v5 = vmul.f32 %v3333_v11, %v3295_v61 }
0x25ae   :  { %3337 = vrot.lane.b32.xlu1 %v3329_v1, %s5096_s3 }
0x25af   :  { %v3834_v58 = vrot.slane %v3335_v5, 6  ;;  %3341 = vrot.lane.b32.xlu0 %v3335_v5, %s5097_s2  ;;  %v3853_v5 = vrot.slane %v6560_v18, 2 }
0x25b1   :  { %v6683_v34 = vpack.i.bf16 %v3839_v2, %v3834_v58 }
0x2620   :  { %v6685_v63 = vpop.permute.xlu1 %3337 }
0x2621   :  { %v3342_v48 = vpop.permute.xlu0 %3341 }
0x2622   :  { %v3344_v10 = vsel %vm646_vm4, %v6685_v63, %v3342_v48 }
0x2623   :  { %v3348_v44 = vpack.c.bf16 %v3344_v10, %v3344_v10 }
0x2625   :  { %v3350_v43 = vrot.slane %v3348_v44, 3 }
0x2627   :  { %4175 = vmatmul.mubr.msk.bf16.vlgmr.msra.gmra.mrb[100].mxu1 %vm1082_vm6, %v3350_v43 }
0x2628   :  { %3589 = vmatpush1.bf16.msra.mxu1 %v6413_v13  ;;  %3620 = vmatprep.mubr.bf16.mxu1 %v5099_v32 }
0x2629   :  { %3590 = vmatprep.subr.bf16.mxu1 %v6425_v25 }
0x262c   :  { %3591 = vmatpush1.bf16.msra.mxu1 %v6433_v40 }
0x262d   :  { %3592 = vmatprep.subr.bf16.mxu1 %v6450_v26 }
0x2630   :  { %3593 = vmatpush1.bf16.msra.mxu1 %v6455_v29 }
0x2631   :  { %3594 = vmatprep.subr.bf16.mxu1 %v6468_v3 }
0x2634   :  { %3595 = vmatpush1.bf16.msra.mxu1 %v6473_v54 }
0x2635   :  { %4442 = vmatprep.subr.bf16.mxu1 %v5093_v0 }
0x26fa   :  { %v3388_v27 = vpop.f32.mrb[100].mxu1 }
0x26fb   :  { %v3395_v7 = vadd.f32 %v3388_v27, %v6535_v22  ;;  %v3390_v19 = vpop.f32.mrb[101].mxu1 }
0x26fc   :  { %v3396_v36 = vadd.f32 %v3390_v19, %v3346_v20  ;;  %v3392_v41 = vpop.f32.mrb[102].mxu1 }
0x26fd   :  { %v4176_v46 = vmul.f32 -1.442695, %v3395_v7  ;;  %v3393_v45 = vpop.f32.mrb[103].mxu1 }
0x26fe   :  { %v4177_v17 = vmul.f32 -1.442695, %v3396_v36 }
0x26ff   :  { %5029 = vpow2.f32 %v4176_v46 }
0x2700   :  { %5031 = vpow2.f32 %v4177_v17 }
0x2701   :  { %5033 = vtanh.f32 %v3395_v7 }
0x2702   :  { %5035 = vtanh.f32 %v3396_v36 }
0x2709   :  { %v5030_v49 = vpop.eup %5029 }
0x270a   :  { %v5032_v24 = vpop.eup %5031  ;;  %v3405_v9 = vadd.f32 1.0, %v5030_v49 }
0x270b   :  { %v3406_v53 = vadd.f32 1.0, %v5032_v24  ;;  %v5034_v56 = vpop.eup %5033 }
0x270c   :  { %5037 = vrcp.f32 %v3405_v9  ;;  %v5036_v57 = vpop.eup %5035 }
0x270d   :  { %5039 = vrcp.f32 %v3406_v53 }
0x2716   :  { %v5038_v35 = vpop.eup %5037 }
0x2717   :  { %v5040_v14 = vpop.eup %5039  ;;  %v3411_v42 = vsel %vm6127_vm10, %v5034_v56, %v5038_v35 }
0x2718   :  { %3418 = vrot.lane.b32.xlu1 %v3411_v42, %s5097_s2  ;;  %v3412_v12 = vsel %vm6134_vm13, %v5036_v57, %v5040_v14  ;;  %v3416_v15 = vmul.f32 %v3414_v50, %v3411_v42 }
0x2719   :  { %3432 = vrot.lane.b32.xlu0 %v3412_v12, %s5097_s2  ;;  %v3430_v33 = vmul.f32 %v3428_v37, %v3412_v12 }
0x278a   :  { %v3419_v61 = vpop.permute.xlu1 %3418 }
0x278b   :  { %v3421_v52 = vmul.f32 %v3419_v61, %v3411_v42  ;;  %v3433_v51 = vpop.permute.xlu0 %3432 }
0x278c   :  { %v3435_v62 = vmul.f32 %v3433_v51, %v3412_v12 }
0x278d   :  { %3423 = vrot.lane.b32.xlu1 %v3421_v52, %s5096_s3 }
0x278e   :  { %3437 = vrot.lane.b32.xlu0 %v3435_v62, %s5096_s3 }
0x27ff   :  { %v3424_v31 = vpop.permute.xlu1 %3423 }
0x2800   :  { %v6713_v60 = vadd.f32 %v3424_v31, %v3416_v15  ;;  %v3438_v8 = vpop.permute.xlu0 %3437 }
0x2801   :  { %v6715_v38 = vadd.f32 %v3438_v8, %v3430_v33 }
0x2802   :  { %5041 = vtanh.f32 %v6713_v60 }
0x2803   :  { %5043 = vtanh.f32 %v6715_v38 }
0x280c   :  { %v5042_v28 = vpop.eup %5041 }
0x280d   :  { %v5044_v21 = vpop.eup %5043  ;;  %3443 = vrot.lane.b32.xlu1 %v5042_v28, %s5097_s2 }
0x280e   :  { %3449 = vrot.lane.b32.xlu0 %v5044_v21, %s5097_s2 }
0x287f   :  { %v3444_v47 = vpop.permute.xlu1 %3443 }
0x2880   :  { %v3446_v39 = vmul.f32 %v3444_v47, %v3411_v42  ;;  %v3450_v1 = vpop.permute.xlu0 %3449  ;;  %v3534_v42 = vrot.slane %v6713_v60, 6 }
0x2881   :  { %v3452_v11 = vmul.f32 %v3450_v1, %v3412_v12  ;;  %v3548_v12 = vrot.slane %v6715_v38, 6  ;;  %v3844_v38 = vrot.slane %v6600_v16, 6 }
0x2882   :  { %3454 = vrot.lane.b32.xlu1 %v3446_v39, %s5096_s3 }
0x2883   :  { %v3829_v2 = vrot.slane %v3452_v11, 2  ;;  %3458 = vrot.lane.b32.xlu0 %v3452_v11, %s5097_s2 }
0x2885   :  { %v6724_v58 = vpack.i.bf16 %v3853_v5, %v3829_v2 }
0x28f4   :  { %v6726_v48 = vpop.permute.xlu1 %3454 }
0x28f5   :  { %v3459_v10 = vpop.permute.xlu0 %3458 }
0x28f6   :  { %v3461_v44 = vsel %vm646_vm4, %v6726_v48, %v3459_v10 }
0x28f7   :  { %v3464_v43 = vpack.c.bf16 %v3461_v44, %v3461_v44 }
0x28f9   :  { %4178 = vmatmul.mubr.msk.bf16.vlgmr.msra.gmra.mrb[104].mxu0 %vm1082_vm6, %v3464_v43 }
0x28fa   :  { %3709 = vmatpush1.bf16.msra.mxu0 %v6413_v13  ;;  %3740 = vmatprep.mubr.bf16.mxu0 %v5099_v32  ;;  %v3462_v13 = vrot.slane %v6533_v59, 2 }
0x28fb   :  { %3710 = vmatprep.subr.bf16.mxu0 %v6425_v25 }
0x28fe   :  { %3711 = vmatpush1.bf16.msra.mxu0 %v6433_v40 }
0x28ff   :  { %3712 = vmatprep.subr.bf16.mxu0 %v6450_v26 }
0x2902   :  { %3713 = vmatpush1.bf16.msra.mxu0 %v6455_v29 }
0x2903   :  { %3714 = vmatprep.subr.bf16.mxu0 %v6468_v3 }
0x2906   :  { %3715 = vmatpush1.bf16.msra.mxu0 %v6473_v54 }
0x2907   :  { %4454 = vmatprep.subr.bf16.mxu0 %v5093_v0 }
0x29cc   :  { %v3502_v18 = vpop.f32.mrb[104].mxu0 }
0x29cd   :  { %v3511_v27 = vrot.slane %v3502_v18, 6  ;;  %v3504_v7 = vpop.f32.mrb[105].mxu0 }
0x29ce   :  { %v3512_v32 = vrot.slane %v3504_v7, 6  ;;  %v3506_v19 = vpop.f32.mrb[106].mxu0 }
0x29cf   :  { %v3515_v25 = vadd.f32 %v3511_v27, %v6535_v22  ;;  %v3507_v40 = vpop.f32.mrb[107].mxu0 }
0x29d0   :  { %v3516_v26 = vadd.f32 %v3512_v32, %v3462_v13 }
0x29d1   :  { %v4179_v29 = vmul.f32 -1.442695, %v3515_v25 }
0x29d2   :  { %v4180_v36 = vmul.f32 -1.442695, %v3516_v26 }
0x29d3   :  { %5045 = vpow2.f32 %v4179_v29 }
0x29d4   :  { %5047 = vpow2.f32 %v4180_v36 }
0x29d5   :  { %5049 = vtanh.f32 %v3515_v25 }
0x29d6   :  { %5051 = vtanh.f32 %v3516_v26 }
0x29dd   :  { %v5046_v3 = vpop.eup %5045 }
0x29de   :  { %v5048_v54 = vpop.eup %5047  ;;  %v3525_v41 = vadd.f32 1.0, %v5046_v3 }
0x29df   :  { %v3526_v46 = vadd.f32 1.0, %v5048_v54  ;;  %v5050_v45 = vpop.eup %5049 }
0x29e0   :  { %5053 = vrcp.f32 %v3525_v41  ;;  %v5052_v17 = vpop.eup %5051 }
0x29e1   :  { %5055 = vrcp.f32 %v3526_v46 }
0x29ea   :  { %v5054_v49 = vpop.eup %5053 }
0x29eb   :  { %v5056_v24 = vpop.eup %5055  ;;  %v3531_v9 = vsel %vm6127_vm10, %v5050_v45, %v5054_v49 }
0x29ec   :  { %3538 = vrot.lane.b32.xlu1 %v3531_v9, %s5097_s2  ;;  %v3532_v53 = vsel %vm6134_vm13, %v5052_v17, %v5056_v24  ;;  %v3536_v61 = vmul.f32 %v3534_v42, %v3531_v9 }
0x29ed   :  { %3552 = vrot.lane.b32.xlu0 %v3532_v53, %s5097_s2  ;;  %v3550_v51 = vmul.f32 %v3548_v12, %v3532_v53 }
0x2a5e   :  { %v3539_v56 = vpop.permute.xlu1 %3538 }
0x2a5f   :  { %v3541_v57 = vmul.f32 %v3539_v56, %v3531_v9  ;;  %v3553_v35 = vpop.permute.xlu0 %3552 }
0x2a60   :  { %v3555_v14 = vmul.f32 %v3553_v35, %v3532_v53 }
0x2a61   :  { %3543 = vrot.lane.b32.xlu1 %v3541_v57, %s5096_s3 }
0x2a62   :  { %3557 = vrot.lane.b32.xlu0 %v3555_v14, %s5096_s3 }
0x2ad3   :  { %v3544_v52 = vpop.permute.xlu1 %3543 }
0x2ad4   :  { %v3546_v62 = vadd.f32 %v3544_v52, %v3536_v61  ;;  %v3558_v50 = vpop.permute.xlu0 %3557 }
0x2ad5   :  { %v3560_v37 = vadd.f32 %v3558_v50, %v3550_v51 }
0x2ad6   :  { %5057 = vtanh.f32 %v3546_v62 }
0x2ad7   :  { %5059 = vtanh.f32 %v3560_v37  ;;  %v3668_v56 = vrot.slane %v3560_v37, 6 }
0x2ae0   :  { %v5058_v15 = vpop.eup %5057 }
0x2ae1   :  { %v5060_v31 = vpop.eup %5059  ;;  %3563 = vrot.lane.b32.xlu1 %v5058_v15, %s5097_s2 }
0x2ae2   :  { %3569 = vrot.lane.b32.xlu0 %v5060_v31, %s5097_s2 }
0x2b53   :  { %v3564_v33 = vpop.permute.xlu1 %3563 }
0x2b54   :  { %v3566_v8 = vmul.f32 %v3564_v33, %v3531_v9  ;;  %v3570_v28 = vpop.permute.xlu0 %3569 }
0x2b55   :  { %v3572_v60 = vmul.f32 %v3570_v28, %v3532_v53  ;;  %v3654_v53 = vrot.slane %v3546_v62, 6 }
0x2b56   :  { %3574 = vrot.lane.b32.xlu1 %v3566_v8, %s5096_s3 }
0x2b57   :  { %v3824_v21 = vrot.slane %v3572_v60, 6  ;;  %3578 = vrot.lane.b32.xlu0 %v3572_v60, %s5097_s2 }
0x2b59   :  { %v6759_v47 = vpack.i.bf16 %v3844_v38, %v3824_v21 }
0x2bc8   :  { %v6761_v39 = vpop.permute.xlu1 %3574 }
0x2bc9   :  { %v3579_v1 = vpop.permute.xlu0 %3578 }
0x2bca   :  { %v3581_v11 = vsel %vm646_vm4, %v6761_v39, %v3579_v1 }
0x2bcb   :  { %v3582_v5 = vpack.c.bf16 %v3581_v11, %v3581_v11 }
0x2bcd   :  { %v3584_v2 = vrot.slane %v3582_v5, 1 }
0x2bcf   :  { %4181 = vmatmul.mubr.msk.bf16.vlgmr.msra.gmra.mrb[104].mxu1 %vm1082_vm6, %v3584_v2 }
0x2bd0   :  { %4450 = vmatprep.mubr.msk.bf16.mxu1 %vm5094_vm1, %v5093_v0 }
0x2ca2   :  { %v3622_v10 = vpop.f32.mrb[104].mxu1 }
0x2ca3   :  { %v3631_v16 = vrot.slane %v3622_v10, 4  ;;  %v3624_v44 = vpop.f32.mrb[105].mxu1 }
0x2ca4   :  { %v3632_v43 = vrot.slane %v3624_v44, 4  ;;  %v3626_v18 = vpop.f32.mrb[106].mxu1 }
0x2ca5   :  { %v3635_v27 = vadd.f32 %v3631_v16, %v6535_v22  ;;  %v3627_v7 = vpop.f32.mrb[107].mxu1 }
0x2ca6   :  { %v3636_v32 = vadd.f32 %v3632_v43, %v3346_v20 }
0x2ca7   :  { %v4182_v19 = vmul.f32 -1.442695, %v3635_v27 }
0x2ca8   :  { %v4183_v25 = vmul.f32 -1.442695, %v3636_v32 }
0x2ca9   :  { %5061 = vpow2.f32 %v4182_v19 }
0x2caa   :  { %5063 = vpow2.f32 %v4183_v25 }
0x2cab   :  { %5065 = vtanh.f32 %v3635_v27 }
0x2cac   :  { %5067 = vtanh.f32 %v3636_v32 }
0x2cb3   :  { %v5062_v40 = vpop.eup %5061 }
0x2cb4   :  { %v5064_v26 = vpop.eup %5063  ;;  %v3645_v29 = vadd.f32 1.0, %v5062_v40 }
0x2cb5   :  { %v3646_v36 = vadd.f32 1.0, %v5064_v26  ;;  %v5066_v3 = vpop.eup %5065 }
0x2cb6   :  { %5069 = vrcp.f32 %v3645_v29  ;;  %v5068_v54 = vpop.eup %5067 }
0x2cb7   :  { %5071 = vrcp.f32 %v3646_v36 }
0x2cc0   :  { %v5070_v41 = vpop.eup %5069 }
0x2cc1   :  { %v5072_v46 = vpop.eup %5071  ;;  %v3651_v45 = vsel %vm6127_vm10, %v5066_v3, %v5070_v41 }
0x2cc2   :  { %3658 = vrot.lane.b32.xlu1 %v3651_v45, %s5097_s2  ;;  %v3652_v20 = vsel %vm6134_vm13, %v5068_v54, %v5072_v46  ;;  %v3656_v57 = vmul.f32 %v3654_v53, %v3651_v45  ;;  %v4832_v53 = vld [vmem:[%s6885_s13 + $0x8] sm:$0xff]  }
0x2cc3   :  { %3672 = vrot.lane.b32.xlu0 %v3652_v20, %s5097_s2  ;;  %v3670_v14 = vmul.f32 %v3668_v56, %v3652_v20  ;;  %v4833_v56 = vld [vmem:[%s6885_s13 + $0x10] sm:$0xff]  }
0x2d34   :  { %v3659_v17 = vpop.permute.xlu1 %3658 }
0x2d35   :  { %v3661_v49 = vmul.f32 %v3659_v17, %v3651_v45  ;;  %v3673_v24 = vpop.permute.xlu0 %3672 }
0x2d36   :  { %v3675_v9 = vmul.f32 %v3673_v24, %v3652_v20  ;;  %v4831_v24 = vld [vmem:[%s6885_s13] sm:$0xff]  }
0x2d37   :  { %3663 = vrot.lane.b32.xlu1 %v3661_v49, %s5096_s3  ;;  %4443 = vmatpush3.bf16.msra.mxu1 %v4831_v24 }
0x2d38   :  { %3677 = vrot.lane.b32.xlu0 %v3675_v9, %s5096_s3  ;;  %4444 = vmatprep.subr.bf16.mxu1 %v5093_v0 }
0x2d3b   :  { %4445 = vmatpush3.bf16.msra.mxu1 %v4832_v53 }
0x2d3c   :  { %4446 = vmatprep.subr.bf16.mxu1 %v5093_v0 }
0x2d3f   :  { %4447 = vmatpush3.bf16.msra.mxu1 %v4833_v56 }
0x2d40   :  { %4448 = vmatprep.subr.bf16.mxu1 %v5093_v0 }
0x2da9   :  { %v3664_v35 = vpop.permute.xlu1 %3663 }
0x2daa   :  { %v3666_v42 = vadd.f32 %v3664_v35, %v3656_v57  ;;  %v3678_v12 = vpop.permute.xlu0 %3677 }
0x2dab   :  { %v3680_v61 = vadd.f32 %v3678_v12, %v3670_v14 }
0x2dac   :  { %5073 = vtanh.f32 %v3666_v42  ;;  %v3774_v54 = vrot.slane %v3666_v42, 6 }
0x2dad   :  { %5075 = vtanh.f32 %v3680_v61  ;;  %v3788_v41 = vrot.slane %v3680_v61, 6 }
0x2db6   :  { %v5074_v52 = vpop.eup %5073 }
0x2db7   :  { %v5076_v51 = vpop.eup %5075  ;;  %3683 = vrot.lane.b32.xlu1 %v5074_v52, %s5097_s2 }
0x2db8   :  { %3689 = vrot.lane.b32.xlu0 %v5076_v51, %s5097_s2 }
0x2e29   :  { %v3684_v50 = vpop.permute.xlu1 %3683 }
0x2e2a   :  { %v3686_v15 = vmul.f32 %v3684_v50, %v3651_v45  ;;  %v3690_v31 = vpop.permute.xlu0 %3689 }
0x2e2b   :  { %v6781_v33 = vmul.f32 %v3690_v31, %v3652_v20 }
0x2e2c   :  { %3694 = vrot.lane.b32.xlu1 %v3686_v15, %s5096_s3 }
0x2e2d   :  { %3698 = vrot.lane.b32.xlu0 %v6781_v33, %s5097_s2  ;;  %v3819_v35 = vrot.slane %v6781_v33, 2 }
0x2e9e   :  { %v6786_v62 = vpop.permute.xlu1 %3694 }
0x2e9f   :  { %v3699_v37 = vpop.permute.xlu0 %3698 }
0x2ea0   :  { %v3701_v8 = vsel %vm646_vm4, %v6786_v62, %v3699_v37 }
0x2ea1   :  { %v3702_v28 = vpack.c.bf16 %v3701_v8, %v3701_v8 }
0x2ea3   :  { %v3704_v60 = vrot.slane %v3702_v28, 2 }
0x2ea5   :  { %4184 = vmatmul.mubr.msk.bf16.vlgmr.msra.gmra.mrb[108].mxu0 %vm1082_vm6, %v3704_v60 }
0x2ea6   :  { %4458 = vmatprep.mubr.msk.bf16.mxu0 %vm5094_vm1, %v5093_v0  ;;  %vm4018_vm1 = vcmask 72704  }
0x2f78   :  { %v3742_v38 = vpop.f32.mrb[108].mxu0 }
0x2f79   :  { %v3751_v21 = vrot.slane %v3742_v38, 2  ;;  %v3744_v1 = vpop.f32.mrb[109].mxu0 }
0x2f7a   :  { %v3752_v11 = vrot.slane %v3744_v1, 2  ;;  %v3746_v5 = vpop.f32.mrb[110].mxu0 }
0x2f7b   :  { %v3755_v2 = vadd.f32 %v3751_v21, %v6535_v22  ;;  %v3747_v10 = vpop.f32.mrb[111].mxu0 }
0x2f7c   :  { %v3756_v16 = vadd.f32 %v3752_v11, %v3462_v13 }
0x2f7d   :  { %v4185_v44 = vmul.f32 -1.442695, %v3755_v2 }
0x2f7e   :  { %v4186_v43 = vmul.f32 -1.442695, %v3756_v16 }
0x2f7f   :  { %5077 = vpow2.f32 %v4185_v44 }
0x2f80   :  { %5079 = vpow2.f32 %v4186_v43 }
0x2f81   :  { %5081 = vtanh.f32 %v3755_v2 }
0x2f82   :  { %5083 = vtanh.f32 %v3756_v16 }
0x2f89   :  { %v5078_v18 = vpop.eup %5077 }
0x2f8a   :  { %v5080_v27 = vpop.eup %5079  ;;  %v3765_v7 = vadd.f32 1.0, %v5078_v18 }
0x2f8b   :  { %v3766_v32 = vadd.f32 1.0, %v5080_v27  ;;  %v5082_v19 = vpop.eup %5081 }
0x2f8c   :  { %5085 = vrcp.f32 %v3765_v7  ;;  %v5084_v25 = vpop.eup %5083  ;;  %v4187_v7 = vld [vmem:[%s6887_s14] ss:$0 sm:$0xff] }
0x2f8d   :  { %5087 = vrcp.f32 %v3766_v32 }
0x2f96   :  { %v5086_v40 = vpop.eup %5085 }
0x2f97   :  { %v5088_v22 = vpop.eup %5087  ;;  %v3771_v59 = vsel %vm6127_vm10, %v5082_v19, %v5086_v40 }
0x2f98   :  { %3778 = vrot.lane.b32.xlu0 %v3771_v59, %s5097_s2  ;;  %v3772_v13 = vsel %vm6134_vm13, %v5084_v25, %v5088_v22  ;;  %v3776_v46 = vmul.f32 %v3774_v54, %v3771_v59 }
0x2f99   :  { %3792 = vrot.lane.b32.xlu1 %v3772_v13, %s5097_s2  ;;  %v3790_v45 = vmul.f32 %v3788_v41, %v3772_v13 }
0x300a   :  { %v3779_v26 = vpop.permute.xlu0 %3778 }
0x300b   :  { %v3781_v29 = vmul.f32 %v3779_v26, %v3771_v59  ;;  %v3793_v36 = vpop.permute.xlu1 %3792 }
0x300c   :  { %v3795_v3 = vmul.f32 %v3793_v36, %v3772_v13 }
0x300d   :  { %3783 = vrot.lane.b32.xlu0 %v3781_v29, %s5096_s3 }
0x300e   :  { %3797 = vrot.lane.b32.xlu1 %v3795_v3, %s5096_s3 }
0x307f   :  { %v3784_v55 = vpop.permute.xlu0 %3783 }
0x3080   :  { %v3786_v20 = vadd.f32 %v3784_v55, %v3776_v46  ;;  %v3798_v17 = vpop.permute.xlu1 %3797 }
0x3081   :  { %v3800_v49 = vadd.f32 %v3798_v17, %v3790_v45 }
0x3082   :  { %5089 = vtanh.f32 %v3786_v20 }
0x3083   :  { %5091 = vtanh.f32 %v3800_v49 }
0x308c   :  { %v5090_v30 = vpop.eup %5089 }
0x308d   :  { %v5092_v9 = vpop.eup %5091  ;;  %3803 = vrot.lane.b32.xlu0 %v5090_v30, %s5097_s2 }
0x308e   :  { %3809 = vrot.lane.b32.xlu1 %v5092_v9, %s5097_s2 }
0x3091   :  { %4715 = vrot.lane.b32.xlu0 %v6683_v34, %s5097_s2  ;;  %v4834_v34 = vld [vmem:[%s6885_s13 + $0x18] sm:$0xff]  }
0x3092   :  { %4720 = vrot.lane.b32.xlu1 %v6759_v47, %s5097_s2  ;;  %4449 = vmatpush3.bf16.msra.mxu1 %v4834_v34 }
0x3095   :  { %4730 = vrot.lane.b32.xlu0 %v6724_v58, %s5097_s2 }
0x30ff   :  { %v3804_v12 = vpop.permute.xlu0 %3803 }
0x3100   :  { %v3810_v57 = vpop.permute.xlu1 %3809  ;;  %v3806_v58 = vmul.f32 %v3804_v12, %v3771_v59 }
0x3101   :  { %v3812_v47 = vmul.f32 %v3810_v57, %v3772_v13 }
0x3103   :  { %v3814_v14 = vrot.slane %v3812_v47, 6  ;;  %v4716_v61 = vpop.permute.xlu0 %4715 }
0x3104   :  { %v4718_v52 = vunpack.i.h.bf16 %v4716_v61  ;;  %v4717_v51 = vunpack.i.l.bf16 %v4716_v61  ;;  %v4721_v50 = vpop.permute.xlu1 %4720 }
0x3105   :  { %v4724_v42 = vpack.i.bf16 %v3819_v35, %v3814_v14  ;;  %v4723_v15 = vunpack.i.h.bf16 %v4721_v50  ;;  %v4722_v8 = vunpack.i.l.bf16 %v4721_v50 }
0x3106   :  { %v3843_v37 = vsel %vm646_vm4, %v6761_v39, %v4718_v52  ;;  %v3838_v33 = vsel %vm646_vm4, %v6726_v48, %v4717_v51 }
0x3107   :  { %4725 = vrot.lane.b32.xlu1 %v4724_v42, %s5097_s2  ;;  %v4731_v31 = vpop.permute.xlu0 %4730  ;;  %v3848_v1 = vsel %vm646_vm4, %v6786_v62, %v4723_v15  ;;  %v3861_v11 = vsel %vm2716_vm14, %v3838_v33, %v3843_v37  ;;  %v3828_v48 = vsel %vm646_vm4, %v6645_v4, %v4722_v8  ;;  %v4835_v4 = vld [vmem:[%s6886_s15] sm:$0xff]  }
0x3108   :  { %v4732_v60 = vunpack.i.l.bf16 %v4731_v31  ;;  %v4733_v5 = vunpack.i.h.bf16 %v4731_v31  ;;  %v3862_v62 = vsel %vm2718_vm15, %v3861_v11, %v3848_v1  ;;  %4455 = vmatpush3.bf16.msra.mxu0 %v4835_v4 }
0x3109   :  { %4456 = vmatprep.subr.bf16.mxu0 %v5093_v0  ;;  %v4193_v0 = vld [vmem:[%s6888_s16] ss:$0 sm:$0xff] }
0x310a   :  { %v3833_v44 = vsel %vm646_vm4, %v6685_v63, %v4732_v60  ;;  %v4836_v63 = vld [vmem:[%s6886_s15 + $0x8] sm:$0xff]  }
0x310b   :  { %3850 = vrot.lane.b32.xlu1 %v3806_v58, %s5096_s3 }
0x310c   :  { %4457 = vmatpush3.bf16.msra.mxu0 %v4836_v63 }
0x3179   :  { %v4726_v28 = vpop.permute.xlu1 %4725 }
0x317a   :  { %v4728_v38 = vunpack.i.h.bf16 %v4726_v28  ;;  %v4727_v21 = vunpack.i.l.bf16 %v4726_v28 }
0x317c   :  { %v3823_v2 = vsel %vm646_vm4, %v6605_v6, %v4728_v38  ;;  %v3818_v39 = vsel %vm646_vm4, %v6564_v23, %v4727_v21 }
0x317d   :  { %v3858_v10 = vsel %vm2716_vm14, %v3818_v39, %v3823_v2  ;;  %v3851_v16 = vpop.permute.xlu1 %3850 }
0x317e   :  { %v3857_v43 = vsel %vm646_vm4, %v3851_v16, %v4733_v5  ;;  %v3859_v18 = vsel %vm2718_vm15, %v3858_v10, %v3828_v48 }
0x317f   :  { %v3860_v6 = vsel %vm2720_vm0, %v3859_v18, %v3833_v44  ;;  %v3863_v27 = vsel %vm2720_vm0, %v3862_v62, %v3857_v43 }
0x3180   :  { %v3864_v23 = vpack.c.bf16 %v3863_v27, %v3860_v6 }
0x3182   :  { %4451 = vmatmul.mubr.msk.bf16.vlgmr.msra.gmra.mrb[108].mxu1 %vm1082_vm6, %v3864_v23 }
0x3255   :  { %v3941_v32 = vpop.f32.mrb[108].mxu1 }
0x3256   :  { %v3942_v19 = vadd.f32 %v4187_v7, %v3941_v32  ;;  %v4452_v25 = vpop.f32.mrb[109].mxu1 }
0x3257   :  { %v3944_v40 = vpop.f32.mrb[110].mxu1 }
0x3258   :  { %v3945_v22 = vadd.f32 %v4187_v7, %v3944_v40  ;;  %v4453_v59 = vpop.f32.mrb[111].mxu1  ;;  %v3948_v13 = vmax.f32 %v3942_v19, 0.0 }
0x325a   :  { %v3949_v26 = vmax.f32 %v3945_v22, 0.0 }
0x325c   :  { %v3950_v29 = vpack.c.bf16 %v3949_v26, %v3948_v13 }
0x325e   :  { %4459 = vmatmul.mubr.msk.bf16.vlgmr.msra.gmra.mrb[112].mxu0 %vm646_vm4, %v3950_v29 }
0x3331   :  { %v4011_v36 = vpop.f32.mrb[112].mxu0 }
0x3332   :  { %v4012_v3 = vadd.f32 %v4193_v0, %v4011_v36  ;;  %v4460_v54 = vpop.f32.mrb[113].mxu0 }
0x3333   :  { %v4014_v41 = vpop.f32.mrb[114].mxu0 }
0x3334   :  { %4019 = vst.msk [vmem:[%s6889_s17] sm:$0xff] %vm4018_vm1, %v4012_v3  ;;  %v4015_v46 = vadd.f32 %v4193_v0, %v4014_v41  ;;  %v4461_v55 = vpop.f32.mrb[115].mxu0 }
0x3336   :  { %4020 = vst.msk [vmem:[%s6889_s17 + $0x8] sm:$0xff] %vm4018_vm1, %v4015_v46 }

</bundles_post_ra>
